<compile_context>
chip_gen: v5e
topology: v5e:2x2
jax: 0.10.0
libtpu: 0.0.40
codegen_flags: <defaults>
</compile_context>

<pallas_src>
import functools
import math

import jax
import jax.numpy as jnp
from jax.experimental import pallas as pl
from jax.experimental.pallas import tpu as pltpu

# --- model hyper-params (small, consistent with the module's __init__) -------
D_MODEL = 32
D_INNER = 64
N_LAYER = 2
N_HEADS = 2
VOCAB_SIZE = 12
PAD_VOCAB_MULTIPLE = 8          # pad_vocab_size_multiple -> padded vocab = 16
NORM_EPS = 1e-5                 # norm_epsilon default
# max_position_embeddings = 0 default -> no position embeddings.

_WEIGHT_ORDER = ("emb",
                 "ln1_w", "ln1_b", "wqkv", "bqkv", "wo", "bo",
                 "ln2_w", "ln2_b", "w1", "b1", "w2", "b2",
                 "ln_f_w", "ln_f_b")

_HI = jax.lax.Precision.HIGHEST


def _layernorm(x, w, b):
    mu = jnp.mean(x, axis=-1, keepdims=True)
    xc = x - mu
    var = jnp.mean(xc * xc, axis=-1, keepdims=True)
    return xc * jax.lax.rsqrt(var + NORM_EPS) * w + b


# Exact (erf-based) GELU matching PyTorch F.gelu(approximate='none'), built
# only from ops guaranteed to lower in Mosaic (abs / exp / mul / where).
# Abramowitz & Stegun 7.1.26 erf polynomial: max abs error ~1.5e-7.
_ERF_P = 0.3275911
_ERF_A = (0.254829592, -0.284496736, 1.421413741, -1.453152027, 1.061405429)


def _erf_poly(x):
    a1, a2, a3, a4, a5 = _ERF_A
    ax = jnp.abs(x)
    t = 1.0 / (1.0 + _ERF_P * ax)
    poly = ((((a5 * t + a4) * t + a3) * t + a2) * t + a1) * t
    e = 1.0 - poly * jnp.exp(-ax * ax)
    return jnp.where(x >= 0, e, -e)


def _gelu_exact(x):
    return 0.5 * x * (1.0 + _erf_poly(x * 0.7071067811865476))


# --------------------------- fused Pallas kernel ------------------------------
def _fused_kernel(ids_ref, emb_ref,
                  ln1_w, ln1_b, wqkv, bqkv, wo, bo,
                  ln2_w, ln2_b, w1, b1, w2, b2,
                  ln_f_w, ln_f_b,
                  o_ref, *, n_layer, n_heads, seq_len, batch_chunk,
                  compute_dtype):
    """Embedding + n_layer pre-norm MHA/MLP blocks + final LN, all in VMEM."""
    M, D = o_ref.shape                       # M = batch_chunk * seq_len rows
    V = emb_ref.shape[0]
    H = n_heads
    dh = D // H
    Bc, L = batch_chunk, seq_len
    cdt = compute_dtype                      # MXU operand dtype (bf16 fast path)
    approx_recip = jnp.dtype(cdt) != jnp.dtype(jnp.float32)

    # ---- embedding: one-hot (M, V) @ (V, D) on the MXU (no XLA gather) ----
    ids = ids_ref[...]                                           # (M, 1) int32
    vocab_iota = jax.lax.broadcasted_iota(jnp.int32, (M, V), 1)
    onehot = (ids == vocab_iota).astype(cdt)
    x = jnp.dot(onehot, emb_ref[...].astype(cdt),
                preferred_element_type=jnp.float32)              # (M, D) f32

    # ---- (L, L) causal additive bias, shared by every sequence/head/layer ----
    r = jax.lax.broadcasted_iota(jnp.int32, (L, L), 0)
    c = jax.lax.broadcasted_iota(jnp.int32, (L, L), 1)
    mask_bias = jnp.where(c <= r, 0.0, -1e30).astype(jnp.float32)

    for lyr in range(n_layer):                      # static unroll, small depth
        # ---- mixer: pre-LN causal multi-head self-attention ----
        h = _layernorm(x, ln1_w[lyr], ln1_b[lyr])                # (M, D) f32
        # Single wide QKV matmul (batch folded into M for MXU fill);
        # 1/sqrt(dh) already folded into the Q weight/bias columns.
        qkv = jnp.dot(h.astype(cdt), wqkv[lyr].astype(cdt),
                      preferred_element_type=jnp.float32) + bqkv[lyr]  # (M, 3D)

        # Per-sequence, per-head attention with the (L, L) causal bias.
        # Static unroll over (batch_chunk, heads): identical MXU work to a
        # batched (Bc*H, L, L) einsum but only 2-D ops (no relayout-prone
        # reshapes/transposes).  For large batch_chunk this should become a
        # batched einsum or more grid steps (compile-time scaling).
        attn_rows = []
        for b in range(Bc):
            row = slice(b * L, (b + 1) * L)
            head_outs = []
            for hd in range(H):
                q = qkv[row, hd * dh:(hd + 1) * dh].astype(cdt)            # (L, dh)
                k = qkv[row, D + hd * dh:D + (hd + 1) * dh].astype(cdt)    # (L, dh)
                v = qkv[row, 2 * D + hd * dh:2 * D + (hd + 1) * dh].astype(cdt)
                s = jax.lax.dot_general(                                   # (L, L)
                    q, k, (((1,), (1,)), ((), ())),
                    preferred_element_type=jnp.float32)
                s = s + mask_bias
                s = s - jnp.max(s, axis=-1, keepdims=True)
                p = jnp.exp(s)
                p = p * pl.reciprocal(jnp.sum(p, axis=-1, keepdims=True),
                                      approx=approx_recip)
                head_outs.append(jnp.dot(p.astype(cdt), v,
                                         preferred_element_type=jnp.float32))
            # merge heads with a cheap lane concat -> (L, D)
            attn_rows.append(jnp.concatenate(head_outs, axis=-1))
        attn_in = (attn_rows[0] if Bc == 1
                   else jnp.concatenate(attn_rows, axis=0))                # (M, D)
        # single output projection over the merged heads
        attn = jnp.dot(attn_in.astype(cdt), wo[lyr].astype(cdt),
                       preferred_element_type=jnp.float32) + bo[lyr]
        x = x + attn

        # ---- MLP: pre-LN, Linear -> GELU(exact erf) -> Linear ----
        h = _layernorm(x, ln2_w[lyr], ln2_b[lyr])
        h = jnp.dot(h.astype(cdt), w1[lyr].astype(cdt),
                    preferred_element_type=jnp.float32) + b1[lyr]
        h = _gelu_exact(h)
        h = jnp.dot(h.astype(cdt), w2[lyr].astype(cdt),
                    preferred_element_type=jnp.float32) + b2[lyr]
        x = x + h

    o_ref[...] = _layernorm(x, ln_f_w[...], ln_f_b[...]).astype(o_ref.dtype)


# ----------------------------- wrapper ----------------------------------------
def _full_spec(a):
    nd = a.ndim
    return pl.BlockSpec(a.shape, lambda i, _nd=nd: (0,) * _nd)


def _default_batch_chunk(B, L):
    """v7x has 2 TensorCores/chip: split the batch across them when it tiles
    cleanly; keep a single fused step on single-TC v5e/v6e."""
    kind = ""
    try:
        kind = jax.devices()[0].device_kind.lower()
    except Exception:
        pass
    if "v7" in kind and B % 2 == 0 and ((B // 2) * L) % 8 == 0:
        return B // 2
    return B


def dna_embedding_forward(input_ids, packed, *, batch_chunk=None,
                          compute_dtype=jnp.bfloat16):
    """Matches DNAEmbeddingModel.forward: returns (hidden_states, None)."""
    B, L = input_ids.shape
    D = packed["emb"].shape[1]
    if batch_chunk is None:
        batch_chunk = _default_batch_chunk(B, L)
    assert B % batch_chunk == 0
    grid = (B // batch_chunk,)
    M = batch_chunk * L
    if grid[0] > 1:
        # (8, 128) tile rule on the (B*L, D)-shaped input/output blocks.
        assert M % 8 == 0, "batch_chunk * seq_len must be a multiple of 8"

    ids = input_ids.reshape(B * L, 1).astype(jnp.int32)
    weights = [packed[name] for name in _WEIGHT_ORDER]

    kernel = functools.partial(_fused_kernel, n_layer=N_LAYER,
                               n_heads=N_HEADS, seq_len=L,
                               batch_chunk=batch_chunk,
                               compute_dtype=compute_dtype)

    out = pl.pallas_call(
        kernel,
        out_shape=jax.ShapeDtypeStruct((B * L, D), jnp.float32),
        grid=grid,
        in_specs=[pl.BlockSpec((M, 1), lambda i: (i, 0))]
                 + [_full_spec(w) for w in weights],
        out_specs=pl.BlockSpec((M, D), lambda i: (i, 0)),
        compiler_params=pltpu.CompilerParams(
            dimension_semantics=("parallel",),
            # Explicit VMEM budget: safe on v5e/v6e (128 MiB) and within v7x's
            # 64 MiB physical; actual use here is well under 1 MiB.
            vmem_limit_bytes=32 * 1024 * 1024),
    )(ids, *weights)
    return out.reshape(B, L, D), None


# --------------------- deterministic init + packing ---------------------------
def init_params(key):
    """Module-style parameters (GPT2Embeddings + blocks + ln_f)."""
    if VOCAB_SIZE % PAD_VOCAB_MULTIPLE != 0:
        vocab = VOCAB_SIZE + PAD_VOCAB_MULTIPLE - VOCAB_SIZE % PAD_VOCAB_MULTIPLE
    else:
        vocab = VOCAB_SIZE
    std = 0.02
    rescale = 1.0 / math.sqrt(2 * N_LAYER)   # _init_weights out_proj/fc2 rescale

    def nrm(k, shape, scale=std):
        return (scale * jax.random.normal(k, shape)).astype(jnp.float32)

    keys = jax.random.split(key, 1 + 5 * N_LAYER)
    params = {"emb": nrm(keys[0], (vocab, D_MODEL)),
              "ln_f_w": jnp.ones((1, D_MODEL), jnp.float32),
              "ln_f_b": jnp.zeros((1, D_MODEL), jnp.float32),
              "layers": []}
    for i in range(N_LAYER):
        k = keys[1 + 5 * i: 1 + 5 * (i + 1)]
        params["layers"].append({
            "ln1_w": jnp.ones((1, D_MODEL), jnp.float32),
            "ln1_b": jnp.zeros((1, D_MODEL), jnp.float32),
            "wqkv": nrm(k[0], (D_MODEL, 3 * D_MODEL)),
            "bqkv": jnp.zeros((1, 3 * D_MODEL), jnp.float32),
            "wo":   nrm(k[1], (D_MODEL, D_MODEL), std * rescale),
            "bo":   jnp.zeros((1, D_MODEL), jnp.float32),
            "ln2_w": jnp.ones((1, D_MODEL), jnp.float32),
            "ln2_b": jnp.zeros((1, D_MODEL), jnp.float32),
            "w1":   nrm(k[2], (D_MODEL, D_INNER)),
            "b1":   jnp.zeros((1, D_INNER), jnp.float32),
            "w2":   nrm(k[3], (D_INNER, D_MODEL), std * rescale),
            "b2":   jnp.zeros((1, D_MODEL), jnp.float32),
        })
    return params


def pack_params(p):
    """One-time constant transform into the kernel's layout.

    Stacks per-layer weights along a leading layer dim and folds 1/sqrt(dh)
    into the Q columns of the (D, 3D) QKV weight and bias so the kernel never
    rescales attention scores (exact: 1/sqrt(16) = 0.25)."""
    D = D_MODEL
    dh = D // N_HEADS
    scale = 1.0 / math.sqrt(dh)
    col_scale = jnp.concatenate([jnp.full((D,), scale, jnp.float32),
                                 jnp.ones((2 * D,), jnp.float32)])

    packed = {"emb": p["emb"], "ln_f_w": p["ln_f_w"], "ln_f_b": p["ln_f_b"]}
    packed["wqkv"] = jnp.stack([lp["wqkv"] * col_scale for lp in p["layers"]])
    packed["bqkv"] = jnp.stack([lp["bqkv"] * col_scale for lp in p["layers"]])
    for name in ("ln1_w", "ln1_b", "wo", "bo",
                 "ln2_w", "ln2_b", "w1", "b1", "w2", "b2"):
        packed[name] = jnp.stack([lp[name] for lp in p["layers"]])
    return packed


# --------------------------- pure-JAX reference --------------------------------
def _reference_forward(input_ids, params):
    x = params["emb"][input_ids].astype(jnp.float32)            # (B, L, D)
    B, L, D = x.shape
    dh = D // N_HEADS
    causal = jnp.tril(jnp.ones((L, L), bool))
    for lp in params["layers"]:
        h = _layernorm(x, lp["ln1_w"], lp["ln1_b"])
        qkv = jnp.einsum('bld,de->ble', h, lp["wqkv"], precision=_HI) + lp["bqkv"]
        q, k, v = qkv[..., :D], qkv[..., D:2 * D], qkv[..., 2 * D:]
        heads = []
        for hd in range(N_HEADS):
            sl = slice(hd * dh, (hd + 1) * dh)
            s = jnp.einsum('bqd,bkd->bqk', q[..., sl], k[..., sl],
                           precision=_HI) / math.sqrt(dh)
            s = jnp.where(causal, s, -1e30)
            pmat = jax.nn.softmax(s, axis=-1)
            heads.append(jnp.einsum('bqk,bkd->bqd', pmat, v[..., sl],
                                    precision=_HI))
        attn = jnp.einsum('bld,de->ble', jnp.concatenate(heads, axis=-1),
                          lp["wo"], precision=_HI) + lp["bo"]
        x = x + attn
        h = _layernorm(x, lp["ln2_w"], lp["ln2_b"])
        h = jax.nn.gelu(jnp.einsum('bld,de->ble', h, lp["w1"], precision=_HI)
                        + lp["b1"], approximate=False)
        x = x + jnp.einsum('bld,de->ble', h, lp["w2"], precision=_HI) + lp["b2"]
    return _layernorm(x, params["ln_f_w"], params["ln_f_b"])


# TODO(synk): the registry-instantiated mixer (`layer=` cfg, e.g. Hyena long
# conv) is represented by causal MHA here; a specific long-conv cfg would need
# its own kernel.

if __name__ == "__main__":
    B, L = 2, 16
    key = jax.random.PRNGKey(0)
    k_ids, k_params = jax.random.split(key)
    params = init_params(k_params)
    packed = pack_params(params)
    input_ids = jax.random.randint(k_ids, (B, L), 0, VOCAB_SIZE, dtype=jnp.int32)

    # Default fast path: bf16 MXU operands (v6e/v7x recommendation).
    hidden, extra = dna_embedding_forward(input_ids, packed)
    hidden = jax.block_until_ready(hidden)
    assert hidden.shape == (B, L, D_MODEL) and extra is None
    assert bool(jnp.all(jnp.isfinite(hidden)))

    # Exact-mode run (f32 MXU operands) for the correctness check.
    hidden_f32, _ = dna_embedding_forward(input_ids, packed,
                                          compute_dtype=jnp.float32)
    hidden_f32 = jax.block_until_ready(hidden_f32)

    ref = _reference_forward(input_ids, params)
    # f32 path: tight structural/numerical check (tolerance allows for MXU
    # f32-matmul pass differences).  bf16 path: few-percent tolerance is
    # expected from bf16 operand rounding through 2 layers + final LN.
    assert bool(jnp.allclose(hidden_f32, ref, rtol=1e-2, atol=1e-2))
    assert bool(jnp.allclose(hidden, ref, rtol=1e-1, atol=1e-1))
    print("KERNEL_OK")
</pallas_src>

<mosaic_0001>
module attributes {stable_mosaic.version = 11 : i64} {
  func.func @_fused_kernel(%arg0: i32, %arg1: memref<32x1xi32, #tpu.memory_space<vmem>>, %arg2: memref<16x32xf32, #tpu.memory_space<vmem>>, %arg3: memref<2x1x32xf32, #tpu.memory_space<vmem>>, %arg4: memref<2x1x32xf32, #tpu.memory_space<vmem>>, %arg5: memref<2x32x96xf32, #tpu.memory_space<vmem>>, %arg6: memref<2x1x96xf32, #tpu.memory_space<vmem>>, %arg7: memref<2x32x32xf32, #tpu.memory_space<vmem>>, %arg8: memref<2x1x32xf32, #tpu.memory_space<vmem>>, %arg9: memref<2x1x32xf32, #tpu.memory_space<vmem>>, %arg10: memref<2x1x32xf32, #tpu.memory_space<vmem>>, %arg11: memref<2x32x64xf32, #tpu.memory_space<vmem>>, %arg12: memref<2x1x64xf32, #tpu.memory_space<vmem>>, %arg13: memref<2x64x32xf32, #tpu.memory_space<vmem>>, %arg14: memref<2x1x32xf32, #tpu.memory_space<vmem>>, %arg15: memref<1x32xf32, #tpu.memory_space<vmem>>, %arg16: memref<1x32xf32, #tpu.memory_space<vmem>>, %arg17: memref<32x32xf32, #tpu.memory_space<vmem>>) attributes {dimension_semantics = [#tpu.dimension_semantics<parallel>], iteration_bounds = array<i64: 1>, scalar_prefetch = 0 : i64, scratch_operands = 0 : i64, tpu.core_type = #tpu.core_type<tc>, window_params = [{transform_indices = @transform_0, window_bounds = array<i64: 32, 1>}, {pipeline_mode = #tpu.pipeline_mode<synchronous>, transform_indices = @transform_1, window_bounds = array<i64: 16, 32>}, {pipeline_mode = #tpu.pipeline_mode<synchronous>, transform_indices = @transform_2, window_bounds = array<i64: 2, 1, 32>}, {pipeline_mode = #tpu.pipeline_mode<synchronous>, transform_indices = @transform_3, window_bounds = array<i64: 2, 1, 32>}, {pipeline_mode = #tpu.pipeline_mode<synchronous>, transform_indices = @transform_4, window_bounds = array<i64: 2, 32, 96>}, {pipeline_mode = #tpu.pipeline_mode<synchronous>, transform_indices = @transform_5, window_bounds = array<i64: 2, 1, 96>}, {pipeline_mode = #tpu.pipeline_mode<synchronous>, transform_indices = @transform_6, window_bounds = array<i64: 2, 32, 32>}, {pipeline_mode = #tpu.pipeline_mode<synchronous>, transform_indices = @transform_7, window_bounds = array<i64: 2, 1, 32>}, {pipeline_mode = #tpu.pipeline_mode<synchronous>, transform_indices = @transform_8, window_bounds = array<i64: 2, 1, 32>}, {pipeline_mode = #tpu.pipeline_mode<synchronous>, transform_indices = @transform_9, window_bounds = array<i64: 2, 1, 32>}, {pipeline_mode = #tpu.pipeline_mode<synchronous>, transform_indices = @transform_10, window_bounds = array<i64: 2, 32, 64>}, {pipeline_mode = #tpu.pipeline_mode<synchronous>, transform_indices = @transform_11, window_bounds = array<i64: 2, 1, 64>}, {pipeline_mode = #tpu.pipeline_mode<synchronous>, transform_indices = @transform_12, window_bounds = array<i64: 2, 64, 32>}, {pipeline_mode = #tpu.pipeline_mode<synchronous>, transform_indices = @transform_13, window_bounds = array<i64: 2, 1, 32>}, {pipeline_mode = #tpu.pipeline_mode<synchronous>, transform_indices = @transform_14, window_bounds = array<i64: 1, 32>}, {pipeline_mode = #tpu.pipeline_mode<synchronous>, transform_indices = @transform_15, window_bounds = array<i64: 1, 32>}, {transform_indices = @transform_16, window_bounds = array<i64: 32, 32>}]} {
    %c0 = arith.constant 0 : index
    %c0_0 = arith.constant 0 : index
    %0 = vector.load %arg1[%c0, %c0_0] : memref<32x1xi32, #tpu.memory_space<vmem>>, vector<32x1xi32>
    %1 = tpu.iota {dimensions = array<i32: 1>} : vector<32x16xi32>
    %2 = vector.broadcast %0 : vector<32x1xi32> to vector<32x16xi32>
    %3 = arith.cmpi eq, %2, %1 : vector<32x16xi32>
    %4 = arith.extui %3 : vector<32x16xi1> to vector<32x16xi32>
    %5 = arith.sitofp %4 : vector<32x16xi32> to vector<32x16xf32>
    %6 = arith.truncf %5 : vector<32x16xf32> to vector<32x16xbf16>
    %c0_1 = arith.constant 0 : index
    %c0_2 = arith.constant 0 : index
    %7 = vector.load %arg2[%c0_1, %c0_2] : memref<16x32xf32, #tpu.memory_space<vmem>>, vector<16x32xf32>
    %8 = arith.truncf %7 : vector<16x32xf32> to vector<16x32xbf16>
    %cst = arith.constant dense<0.000000e+00> : vector<32x32xf32>
    %9 = tpu.matmul %6, %8, %cst {dimension_numbers = #tpu.dot_dimension_numbers<[1], [0], [0], [1], [0, 0, 1, 1], [], []>} : vector<32x16xbf16>, vector<16x32xbf16>, vector<32x32xf32> -> vector<32x32xf32>
    %10 = tpu.iota {dimensions = array<i32: 0>} : vector<16x16xi32>
    %11 = tpu.iota {dimensions = array<i32: 1>} : vector<16x16xi32>
    %12 = arith.cmpi sle, %11, %10 : vector<16x16xi32>
    %cst_3 = arith.constant 0.000000e+00 : f32
    %cst_4 = arith.constant -1.000000e+30 : f32
    %13 = vector.broadcast %cst_3 : f32 to vector<16x16xf32>
    %14 = vector.broadcast %cst_4 : f32 to vector<16x16xf32>
    %15 = arith.select %12, %13, %14 : vector<16x16xi1>, vector<16x16xf32>
    %c0_5 = arith.constant 0 : index
    %c0_6 = arith.constant 0 : index
    %c0_7 = arith.constant 0 : index
    %16 = vector.load %arg3[%c0_5, %c0_6, %c0_7] : memref<2x1x32xf32, #tpu.memory_space<vmem>>, vector<1x1x32xf32>
    %17 = vector.shape_cast %16 : vector<1x1x32xf32> to vector<1x32xf32>
    %c0_8 = arith.constant 0 : index
    %c0_9 = arith.constant 0 : index
    %c0_10 = arith.constant 0 : index
    %18 = vector.load %arg4[%c0_8, %c0_9, %c0_10] : memref<2x1x32xf32, #tpu.memory_space<vmem>>, vector<1x1x32xf32>
    %19 = vector.shape_cast %18 : vector<1x1x32xf32> to vector<1x32xf32>
    %cst_11 = arith.constant dense<0.000000e+00> : vector<32xf32>
    %20 = vector.multi_reduction <add>, %9, %cst_11 [1] : vector<32x32xf32> to vector<32xf32>
    %21 = vector.shape_cast %20 : vector<32xf32> to vector<32x1xf32>
    %cst_12 = arith.constant 3.200000e+01 : f32
    %22 = vector.broadcast %cst_12 : f32 to vector<32x1xf32>
    %23 = arith.divf %21, %22 : vector<32x1xf32>
    %24 = vector.broadcast %23 : vector<32x1xf32> to vector<32x32xf32>
    %25 = arith.subf %9, %24 : vector<32x32xf32>
    %26 = arith.mulf %25, %25 : vector<32x32xf32>
    %cst_13 = arith.constant dense<0.000000e+00> : vector<32xf32>
    %27 = vector.multi_reduction <add>, %26, %cst_13 [1] : vector<32x32xf32> to vector<32xf32>
    %28 = vector.shape_cast %27 : vector<32xf32> to vector<32x1xf32>
    %cst_14 = arith.constant 3.200000e+01 : f32
    %29 = vector.broadcast %cst_14 : f32 to vector<32x1xf32>
    %30 = arith.divf %28, %29 : vector<32x1xf32>
    %cst_15 = arith.constant 9.99999974E-6 : f32
    %31 = vector.broadcast %cst_15 : f32 to vector<32x1xf32>
    %32 = arith.addf %30, %31 : vector<32x1xf32>
    %33 = math.rsqrt %32 : vector<32x1xf32>
    %34 = vector.broadcast %33 : vector<32x1xf32> to vector<32x32xf32>
    %35 = arith.mulf %25, %34 : vector<32x32xf32>
    %36 = vector.broadcast %17 : vector<1x32xf32> to vector<32x32xf32>
    %37 = arith.mulf %35, %36 : vector<32x32xf32>
    %38 = vector.broadcast %19 : vector<1x32xf32> to vector<32x32xf32>
    %39 = arith.addf %37, %38 : vector<32x32xf32>
    %40 = arith.truncf %39 : vector<32x32xf32> to vector<32x32xbf16>
    %c0_16 = arith.constant 0 : index
    %c0_17 = arith.constant 0 : index
    %c0_18 = arith.constant 0 : index
    %41 = vector.load %arg5[%c0_16, %c0_17, %c0_18] : memref<2x32x96xf32, #tpu.memory_space<vmem>>, vector<1x32x96xf32>
    %42 = vector.shape_cast %41 : vector<1x32x96xf32> to vector<32x96xf32>
    %43 = arith.truncf %42 : vector<32x96xf32> to vector<32x96xbf16>
    %cst_19 = arith.constant dense<0.000000e+00> : vector<32x96xf32>
    %44 = tpu.matmul %40, %43, %cst_19 {dimension_numbers = #tpu.dot_dimension_numbers<[1], [0], [0], [1], [0, 0, 1, 1], [], []>} : vector<32x32xbf16>, vector<32x96xbf16>, vector<32x96xf32> -> vector<32x96xf32>
    %c0_20 = arith.constant 0 : index
    %c0_21 = arith.constant 0 : index
    %c0_22 = arith.constant 0 : index
    %45 = vector.load %arg6[%c0_20, %c0_21, %c0_22] : memref<2x1x96xf32, #tpu.memory_space<vmem>>, vector<1x1x96xf32>
    %46 = vector.shape_cast %45 : vector<1x1x96xf32> to vector<1x96xf32>
    %47 = vector.broadcast %46 : vector<1x96xf32> to vector<32x96xf32>
    %48 = arith.addf %44, %47 : vector<32x96xf32>
    %49 = vector.extract_strided_slice %48 {offsets = [0, 0], sizes = [16, 16], strides = [1, 1]} : vector<32x96xf32> to vector<16x16xf32>
    %50 = arith.truncf %49 : vector<16x16xf32> to vector<16x16xbf16>
    %51 = vector.extract_strided_slice %48 {offsets = [0, 32], sizes = [16, 16], strides = [1, 1]} : vector<32x96xf32> to vector<16x16xf32>
    %52 = arith.truncf %51 : vector<16x16xf32> to vector<16x16xbf16>
    %53 = vector.extract_strided_slice %48 {offsets = [0, 64], sizes = [16, 16], strides = [1, 1]} : vector<32x96xf32> to vector<16x16xf32>
    %54 = arith.truncf %53 : vector<16x16xf32> to vector<16x16xbf16>
    %cst_23 = arith.constant dense<0.000000e+00> : vector<16x16xf32>
    %55 = tpu.matmul %50, %52, %cst_23 {dimension_numbers = #tpu.dot_dimension_numbers<[1], [1], [0], [0], [0, 0, 1, 0], [], []>} : vector<16x16xbf16>, vector<16x16xbf16>, vector<16x16xf32> -> vector<16x16xf32>
    %56 = arith.addf %55, %15 : vector<16x16xf32>
    %cst_24 = arith.constant dense<0xFF800000> : vector<16xf32>
    %57 = vector.multi_reduction <maximumf>, %56, %cst_24 [1] : vector<16x16xf32> to vector<16xf32>
    %58 = vector.shape_cast %57 : vector<16xf32> to vector<16x1xf32>
    %59 = vector.broadcast %58 : vector<16x1xf32> to vector<16x16xf32>
    %60 = arith.subf %56, %59 : vector<16x16xf32>
    %61 = math.exp %60 : vector<16x16xf32>
    %cst_25 = arith.constant dense<0.000000e+00> : vector<16xf32>
    %62 = vector.multi_reduction <add>, %61, %cst_25 [1] : vector<16x16xf32> to vector<16xf32>
    %63 = vector.shape_cast %62 : vector<16xf32> to vector<16x1xf32>
    %64 = tpu.reciprocal %63 {approx = true} : vector<16x1xf32> -> vector<16x1xf32>
    %65 = vector.broadcast %64 : vector<16x1xf32> to vector<16x16xf32>
    %66 = arith.mulf %61, %65 : vector<16x16xf32>
    %67 = arith.truncf %66 : vector<16x16xf32> to vector<16x16xbf16>
    %cst_26 = arith.constant dense<0.000000e+00> : vector<16x16xf32>
    %68 = tpu.matmul %67, %54, %cst_26 {dimension_numbers = #tpu.dot_dimension_numbers<[1], [0], [0], [1], [0, 0, 1, 1], [], []>} : vector<16x16xbf16>, vector<16x16xbf16>, vector<16x16xf32> -> vector<16x16xf32>
    %69 = vector.extract_strided_slice %48 {offsets = [0, 16], sizes = [16, 16], strides = [1, 1]} : vector<32x96xf32> to vector<16x16xf32>
    %70 = arith.truncf %69 : vector<16x16xf32> to vector<16x16xbf16>
    %71 = vector.extract_strided_slice %48 {offsets = [0, 48], sizes = [16, 16], strides = [1, 1]} : vector<32x96xf32> to vector<16x16xf32>
    %72 = arith.truncf %71 : vector<16x16xf32> to vector<16x16xbf16>
    %73 = vector.extract_strided_slice %48 {offsets = [0, 80], sizes = [16, 16], strides = [1, 1]} : vector<32x96xf32> to vector<16x16xf32>
    %74 = arith.truncf %73 : vector<16x16xf32> to vector<16x16xbf16>
    %cst_27 = arith.constant dense<0.000000e+00> : vector<16x16xf32>
    %75 = tpu.matmul %70, %72, %cst_27 {dimension_numbers = #tpu.dot_dimension_numbers<[1], [1], [0], [0], [0, 0, 1, 0], [], []>} : vector<16x16xbf16>, vector<16x16xbf16>, vector<16x16xf32> -> vector<16x16xf32>
    %76 = arith.addf %75, %15 : vector<16x16xf32>
    %cst_28 = arith.constant dense<0xFF800000> : vector<16xf32>
    %77 = vector.multi_reduction <maximumf>, %76, %cst_28 [1] : vector<16x16xf32> to vector<16xf32>
    %78 = vector.shape_cast %77 : vector<16xf32> to vector<16x1xf32>
    %79 = vector.broadcast %78 : vector<16x1xf32> to vector<16x16xf32>
    %80 = arith.subf %76, %79 : vector<16x16xf32>
    %81 = math.exp %80 : vector<16x16xf32>
    %cst_29 = arith.constant dense<0.000000e+00> : vector<16xf32>
    %82 = vector.multi_reduction <add>, %81, %cst_29 [1] : vector<16x16xf32> to vector<16xf32>
    %83 = vector.shape_cast %82 : vector<16xf32> to vector<16x1xf32>
    %84 = tpu.reciprocal %83 {approx = true} : vector<16x1xf32> -> vector<16x1xf32>
    %85 = vector.broadcast %84 : vector<16x1xf32> to vector<16x16xf32>
    %86 = arith.mulf %81, %85 : vector<16x16xf32>
    %87 = arith.truncf %86 : vector<16x16xf32> to vector<16x16xbf16>
    %cst_30 = arith.constant dense<0.000000e+00> : vector<16x16xf32>
    %88 = tpu.matmul %87, %74, %cst_30 {dimension_numbers = #tpu.dot_dimension_numbers<[1], [0], [0], [1], [0, 0, 1, 1], [], []>} : vector<16x16xbf16>, vector<16x16xbf16>, vector<16x16xf32> -> vector<16x16xf32>
    %89 = tpu.concatenate %68, %88 in 1 : vector<16x16xf32>, vector<16x16xf32> -> vector<16x32xf32>
    %90 = vector.extract_strided_slice %48 {offsets = [16, 0], sizes = [16, 16], strides = [1, 1]} : vector<32x96xf32> to vector<16x16xf32>
    %91 = arith.truncf %90 : vector<16x16xf32> to vector<16x16xbf16>
    %92 = vector.extract_strided_slice %48 {offsets = [16, 32], sizes = [16, 16], strides = [1, 1]} : vector<32x96xf32> to vector<16x16xf32>
    %93 = arith.truncf %92 : vector<16x16xf32> to vector<16x16xbf16>
    %94 = vector.extract_strided_slice %48 {offsets = [16, 64], sizes = [16, 16], strides = [1, 1]} : vector<32x96xf32> to vector<16x16xf32>
    %95 = arith.truncf %94 : vector<16x16xf32> to vector<16x16xbf16>
    %cst_31 = arith.constant dense<0.000000e+00> : vector<16x16xf32>
    %96 = tpu.matmul %91, %93, %cst_31 {dimension_numbers = #tpu.dot_dimension_numbers<[1], [1], [0], [0], [0, 0, 1, 0], [], []>} : vector<16x16xbf16>, vector<16x16xbf16>, vector<16x16xf32> -> vector<16x16xf32>
    %97 = arith.addf %96, %15 : vector<16x16xf32>
    %cst_32 = arith.constant dense<0xFF800000> : vector<16xf32>
    %98 = vector.multi_reduction <maximumf>, %97, %cst_32 [1] : vector<16x16xf32> to vector<16xf32>
    %99 = vector.shape_cast %98 : vector<16xf32> to vector<16x1xf32>
    %100 = vector.broadcast %99 : vector<16x1xf32> to vector<16x16xf32>
    %101 = arith.subf %97, %100 : vector<16x16xf32>
    %102 = math.exp %101 : vector<16x16xf32>
    %cst_33 = arith.constant dense<0.000000e+00> : vector<16xf32>
    %103 = vector.multi_reduction <add>, %102, %cst_33 [1] : vector<16x16xf32> to vector<16xf32>
    %104 = vector.shape_cast %103 : vector<16xf32> to vector<16x1xf32>
    %105 = tpu.reciprocal %104 {approx = true} : vector<16x1xf32> -> vector<16x1xf32>
    %106 = vector.broadcast %105 : vector<16x1xf32> to vector<16x16xf32>
    %107 = arith.mulf %102, %106 : vector<16x16xf32>
    %108 = arith.truncf %107 : vector<16x16xf32> to vector<16x16xbf16>
    %cst_34 = arith.constant dense<0.000000e+00> : vector<16x16xf32>
    %109 = tpu.matmul %108, %95, %cst_34 {dimension_numbers = #tpu.dot_dimension_numbers<[1], [0], [0], [1], [0, 0, 1, 1], [], []>} : vector<16x16xbf16>, vector<16x16xbf16>, vector<16x16xf32> -> vector<16x16xf32>
    %110 = vector.extract_strided_slice %48 {offsets = [16, 16], sizes = [16, 16], strides = [1, 1]} : vector<32x96xf32> to vector<16x16xf32>
    %111 = arith.truncf %110 : vector<16x16xf32> to vector<16x16xbf16>
    %112 = vector.extract_strided_slice %48 {offsets = [16, 48], sizes = [16, 16], strides = [1, 1]} : vector<32x96xf32> to vector<16x16xf32>
    %113 = arith.truncf %112 : vector<16x16xf32> to vector<16x16xbf16>
    %114 = vector.extract_strided_slice %48 {offsets = [16, 80], sizes = [16, 16], strides = [1, 1]} : vector<32x96xf32> to vector<16x16xf32>
    %115 = arith.truncf %114 : vector<16x16xf32> to vector<16x16xbf16>
    %cst_35 = arith.constant dense<0.000000e+00> : vector<16x16xf32>
    %116 = tpu.matmul %111, %113, %cst_35 {dimension_numbers = #tpu.dot_dimension_numbers<[1], [1], [0], [0], [0, 0, 1, 0], [], []>} : vector<16x16xbf16>, vector<16x16xbf16>, vector<16x16xf32> -> vector<16x16xf32>
    %117 = arith.addf %116, %15 : vector<16x16xf32>
    %cst_36 = arith.constant dense<0xFF800000> : vector<16xf32>
    %118 = vector.multi_reduction <maximumf>, %117, %cst_36 [1] : vector<16x16xf32> to vector<16xf32>
    %119 = vector.shape_cast %118 : vector<16xf32> to vector<16x1xf32>
    %120 = vector.broadcast %119 : vector<16x1xf32> to vector<16x16xf32>
    %121 = arith.subf %117, %120 : vector<16x16xf32>
    %122 = math.exp %121 : vector<16x16xf32>
    %cst_37 = arith.constant dense<0.000000e+00> : vector<16xf32>
    %123 = vector.multi_reduction <add>, %122, %cst_37 [1] : vector<16x16xf32> to vector<16xf32>
    %124 = vector.shape_cast %123 : vector<16xf32> to vector<16x1xf32>
    %125 = tpu.reciprocal %124 {approx = true} : vector<16x1xf32> -> vector<16x1xf32>
    %126 = vector.broadcast %125 : vector<16x1xf32> to vector<16x16xf32>
    %127 = arith.mulf %122, %126 : vector<16x16xf32>
    %128 = arith.truncf %127 : vector<16x16xf32> to vector<16x16xbf16>
    %cst_38 = arith.constant dense<0.000000e+00> : vector<16x16xf32>
    %129 = tpu.matmul %128, %115, %cst_38 {dimension_numbers = #tpu.dot_dimension_numbers<[1], [0], [0], [1], [0, 0, 1, 1], [], []>} : vector<16x16xbf16>, vector<16x16xbf16>, vector<16x16xf32> -> vector<16x16xf32>
    %130 = tpu.concatenate %109, %129 in 1 : vector<16x16xf32>, vector<16x16xf32> -> vector<16x32xf32>
    %131 = tpu.concatenate %89, %130 in 0 : vector<16x32xf32>, vector<16x32xf32> -> vector<32x32xf32>
    %132 = arith.truncf %131 : vector<32x32xf32> to vector<32x32xbf16>
    %c0_39 = arith.constant 0 : index
    %c0_40 = arith.constant 0 : index
    %c0_41 = arith.constant 0 : index
    %133 = vector.load %arg7[%c0_39, %c0_40, %c0_41] : memref<2x32x32xf32, #tpu.memory_space<vmem>>, vector<1x32x32xf32>
    %134 = vector.shape_cast %133 : vector<1x32x32xf32> to vector<32x32xf32>
    %135 = arith.truncf %134 : vector<32x32xf32> to vector<32x32xbf16>
    %cst_42 = arith.constant dense<0.000000e+00> : vector<32x32xf32>
    %136 = tpu.matmul %132, %135, %cst_42 {dimension_numbers = #tpu.dot_dimension_numbers<[1], [0], [0], [1], [0, 0, 1, 1], [], []>} : vector<32x32xbf16>, vector<32x32xbf16>, vector<32x32xf32> -> vector<32x32xf32>
    %c0_43 = arith.constant 0 : index
    %c0_44 = arith.constant 0 : index
    %c0_45 = arith.constant 0 : index
    %137 = vector.load %arg8[%c0_43, %c0_44, %c0_45] : memref<2x1x32xf32, #tpu.memory_space<vmem>>, vector<1x1x32xf32>
    %138 = vector.shape_cast %137 : vector<1x1x32xf32> to vector<1x32xf32>
    %139 = vector.broadcast %138 : vector<1x32xf32> to vector<32x32xf32>
    %140 = arith.addf %136, %139 : vector<32x32xf32>
    %141 = arith.addf %9, %140 : vector<32x32xf32>
    %c0_46 = arith.constant 0 : index
    %c0_47 = arith.constant 0 : index
    %c0_48 = arith.constant 0 : index
    %142 = vector.load %arg9[%c0_46, %c0_47, %c0_48] : memref<2x1x32xf32, #tpu.memory_space<vmem>>, vector<1x1x32xf32>
    %143 = vector.shape_cast %142 : vector<1x1x32xf32> to vector<1x32xf32>
    %c0_49 = arith.constant 0 : index
    %c0_50 = arith.constant 0 : index
    %c0_51 = arith.constant 0 : index
    %144 = vector.load %arg10[%c0_49, %c0_50, %c0_51] : memref<2x1x32xf32, #tpu.memory_space<vmem>>, vector<1x1x32xf32>
    %145 = vector.shape_cast %144 : vector<1x1x32xf32> to vector<1x32xf32>
    %cst_52 = arith.constant dense<0.000000e+00> : vector<32xf32>
    %146 = vector.multi_reduction <add>, %141, %cst_52 [1] : vector<32x32xf32> to vector<32xf32>
    %147 = vector.shape_cast %146 : vector<32xf32> to vector<32x1xf32>
    %cst_53 = arith.constant 3.200000e+01 : f32
    %148 = vector.broadcast %cst_53 : f32 to vector<32x1xf32>
    %149 = arith.divf %147, %148 : vector<32x1xf32>
    %150 = vector.broadcast %149 : vector<32x1xf32> to vector<32x32xf32>
    %151 = arith.subf %141, %150 : vector<32x32xf32>
    %152 = arith.mulf %151, %151 : vector<32x32xf32>
    %cst_54 = arith.constant dense<0.000000e+00> : vector<32xf32>
    %153 = vector.multi_reduction <add>, %152, %cst_54 [1] : vector<32x32xf32> to vector<32xf32>
    %154 = vector.shape_cast %153 : vector<32xf32> to vector<32x1xf32>
    %cst_55 = arith.constant 3.200000e+01 : f32
    %155 = vector.broadcast %cst_55 : f32 to vector<32x1xf32>
    %156 = arith.divf %154, %155 : vector<32x1xf32>
    %cst_56 = arith.constant 9.99999974E-6 : f32
    %157 = vector.broadcast %cst_56 : f32 to vector<32x1xf32>
    %158 = arith.addf %156, %157 : vector<32x1xf32>
    %159 = math.rsqrt %158 : vector<32x1xf32>
    %160 = vector.broadcast %159 : vector<32x1xf32> to vector<32x32xf32>
    %161 = arith.mulf %151, %160 : vector<32x32xf32>
    %162 = vector.broadcast %143 : vector<1x32xf32> to vector<32x32xf32>
    %163 = arith.mulf %161, %162 : vector<32x32xf32>
    %164 = vector.broadcast %145 : vector<1x32xf32> to vector<32x32xf32>
    %165 = arith.addf %163, %164 : vector<32x32xf32>
    %166 = arith.truncf %165 : vector<32x32xf32> to vector<32x32xbf16>
    %c0_57 = arith.constant 0 : index
    %c0_58 = arith.constant 0 : index
    %c0_59 = arith.constant 0 : index
    %167 = vector.load %arg11[%c0_57, %c0_58, %c0_59] : memref<2x32x64xf32, #tpu.memory_space<vmem>>, vector<1x32x64xf32>
    %168 = vector.shape_cast %167 : vector<1x32x64xf32> to vector<32x64xf32>
    %169 = arith.truncf %168 : vector<32x64xf32> to vector<32x64xbf16>
    %cst_60 = arith.constant dense<0.000000e+00> : vector<32x64xf32>
    %170 = tpu.matmul %166, %169, %cst_60 {dimension_numbers = #tpu.dot_dimension_numbers<[1], [0], [0], [1], [0, 0, 1, 1], [], []>} : vector<32x32xbf16>, vector<32x64xbf16>, vector<32x64xf32> -> vector<32x64xf32>
    %c0_61 = arith.constant 0 : index
    %c0_62 = arith.constant 0 : index
    %c0_63 = arith.constant 0 : index
    %171 = vector.load %arg12[%c0_61, %c0_62, %c0_63] : memref<2x1x64xf32, #tpu.memory_space<vmem>>, vector<1x1x64xf32>
    %172 = vector.shape_cast %171 : vector<1x1x64xf32> to vector<1x64xf32>
    %173 = vector.broadcast %172 : vector<1x64xf32> to vector<32x64xf32>
    %174 = arith.addf %170, %173 : vector<32x64xf32>
    %cst_64 = arith.constant 5.000000e-01 : f32
    %175 = vector.broadcast %cst_64 : f32 to vector<32x64xf32>
    %176 = arith.mulf %175, %174 : vector<32x64xf32>
    %cst_65 = arith.constant 0.707106769 : f32
    %177 = vector.broadcast %cst_65 : f32 to vector<32x64xf32>
    %178 = arith.mulf %174, %177 : vector<32x64xf32>
    %179 = math.absf %178 : vector<32x64xf32>
    %cst_66 = arith.constant 0.327591091 : f32
    %180 = vector.broadcast %cst_66 : f32 to vector<32x64xf32>
    %181 = arith.mulf %180, %179 : vector<32x64xf32>
    %cst_67 = arith.constant 1.000000e+00 : f32
    %182 = vector.broadcast %cst_67 : f32 to vector<32x64xf32>
    %183 = arith.addf %182, %181 : vector<32x64xf32>
    %cst_68 = arith.constant 1.000000e+00 : f32
    %184 = vector.broadcast %cst_68 : f32 to vector<32x64xf32>
    %185 = arith.divf %184, %183 : vector<32x64xf32>
    %cst_69 = arith.constant 1.06140542 : f32
    %186 = vector.broadcast %cst_69 : f32 to vector<32x64xf32>
    %187 = arith.mulf %186, %185 : vector<32x64xf32>
    %cst_70 = arith.constant -1.45315206 : f32
    %188 = vector.broadcast %cst_70 : f32 to vector<32x64xf32>
    %189 = arith.addf %187, %188 : vector<32x64xf32>
    %190 = arith.mulf %189, %185 : vector<32x64xf32>
    %cst_71 = arith.constant 1.42141378 : f32
    %191 = vector.broadcast %cst_71 : f32 to vector<32x64xf32>
    %192 = arith.addf %190, %191 : vector<32x64xf32>
    %193 = arith.mulf %192, %185 : vector<32x64xf32>
    %cst_72 = arith.constant -0.284496725 : f32
    %194 = vector.broadcast %cst_72 : f32 to vector<32x64xf32>
    %195 = arith.addf %193, %194 : vector<32x64xf32>
    %196 = arith.mulf %195, %185 : vector<32x64xf32>
    %cst_73 = arith.constant 0.254829586 : f32
    %197 = vector.broadcast %cst_73 : f32 to vector<32x64xf32>
    %198 = arith.addf %196, %197 : vector<32x64xf32>
    %199 = arith.mulf %198, %185 : vector<32x64xf32>
    %cst_74 = arith.constant 0.000000e+00 : f32
    %200 = vector.broadcast %cst_74 : f32 to vector<32x64xf32>
    %201 = arith.subf %200, %179 : vector<32x64xf32>
    %202 = arith.mulf %201, %179 : vector<32x64xf32>
    %203 = math.exp %202 : vector<32x64xf32>
    %204 = arith.mulf %199, %203 : vector<32x64xf32>
    %cst_75 = arith.constant 1.000000e+00 : f32
    %205 = vector.broadcast %cst_75 : f32 to vector<32x64xf32>
    %206 = arith.subf %205, %204 : vector<32x64xf32>
    %cst_76 = arith.constant 0.000000e+00 : f32
    %207 = vector.broadcast %cst_76 : f32 to vector<32x64xf32>
    %208 = arith.cmpf oge, %178, %207 : vector<32x64xf32>
    %cst_77 = arith.constant 0.000000e+00 : f32
    %209 = vector.broadcast %cst_77 : f32 to vector<32x64xf32>
    %210 = arith.subf %209, %206 : vector<32x64xf32>
    %211 = arith.select %208, %206, %210 : vector<32x64xi1>, vector<32x64xf32>
    %cst_78 = arith.constant 1.000000e+00 : f32
    %212 = vector.broadcast %cst_78 : f32 to vector<32x64xf32>
    %213 = arith.addf %212, %211 : vector<32x64xf32>
    %214 = arith.mulf %176, %213 : vector<32x64xf32>
    %215 = arith.truncf %214 : vector<32x64xf32> to vector<32x64xbf16>
    %c0_79 = arith.constant 0 : index
    %c0_80 = arith.constant 0 : index
    %c0_81 = arith.constant 0 : index
    %216 = vector.load %arg13[%c0_79, %c0_80, %c0_81] : memref<2x64x32xf32, #tpu.memory_space<vmem>>, vector<1x64x32xf32>
    %217 = vector.shape_cast %216 : vector<1x64x32xf32> to vector<64x32xf32>
    %218 = arith.truncf %217 : vector<64x32xf32> to vector<64x32xbf16>
    %cst_82 = arith.constant dense<0.000000e+00> : vector<32x32xf32>
    %219 = tpu.matmul %215, %218, %cst_82 {dimension_numbers = #tpu.dot_dimension_numbers<[1], [0], [0], [1], [0, 0, 1, 1], [], []>} : vector<32x64xbf16>, vector<64x32xbf16>, vector<32x32xf32> -> vector<32x32xf32>
    %c0_83 = arith.constant 0 : index
    %c0_84 = arith.constant 0 : index
    %c0_85 = arith.constant 0 : index
    %220 = vector.load %arg14[%c0_83, %c0_84, %c0_85] : memref<2x1x32xf32, #tpu.memory_space<vmem>>, vector<1x1x32xf32>
    %221 = vector.shape_cast %220 : vector<1x1x32xf32> to vector<1x32xf32>
    %222 = vector.broadcast %221 : vector<1x32xf32> to vector<32x32xf32>
    %223 = arith.addf %219, %222 : vector<32x32xf32>
    %224 = arith.addf %141, %223 : vector<32x32xf32>
    %c1 = arith.constant 1 : index
    %c0_86 = arith.constant 0 : index
    %c0_87 = arith.constant 0 : index
    %225 = vector.load %arg3[%c1, %c0_86, %c0_87] : memref<2x1x32xf32, #tpu.memory_space<vmem>>, vector<1x1x32xf32>
    %226 = vector.shape_cast %225 : vector<1x1x32xf32> to vector<1x32xf32>
    %c1_88 = arith.constant 1 : index
    %c0_89 = arith.constant 0 : index
    %c0_90 = arith.constant 0 : index
    %227 = vector.load %arg4[%c1_88, %c0_89, %c0_90] : memref<2x1x32xf32, #tpu.memory_space<vmem>>, vector<1x1x32xf32>
    %228 = vector.shape_cast %227 : vector<1x1x32xf32> to vector<1x32xf32>
    %cst_91 = arith.constant dense<0.000000e+00> : vector<32xf32>
    %229 = vector.multi_reduction <add>, %224, %cst_91 [1] : vector<32x32xf32> to vector<32xf32>
    %230 = vector.shape_cast %229 : vector<32xf32> to vector<32x1xf32>
    %cst_92 = arith.constant 3.200000e+01 : f32
    %231 = vector.broadcast %cst_92 : f32 to vector<32x1xf32>
    %232 = arith.divf %230, %231 : vector<32x1xf32>
    %233 = vector.broadcast %232 : vector<32x1xf32> to vector<32x32xf32>
    %234 = arith.subf %224, %233 : vector<32x32xf32>
    %235 = arith.mulf %234, %234 : vector<32x32xf32>
    %cst_93 = arith.constant dense<0.000000e+00> : vector<32xf32>
    %236 = vector.multi_reduction <add>, %235, %cst_93 [1] : vector<32x32xf32> to vector<32xf32>
    %237 = vector.shape_cast %236 : vector<32xf32> to vector<32x1xf32>
    %cst_94 = arith.constant 3.200000e+01 : f32
    %238 = vector.broadcast %cst_94 : f32 to vector<32x1xf32>
    %239 = arith.divf %237, %238 : vector<32x1xf32>
    %cst_95 = arith.constant 9.99999974E-6 : f32
    %240 = vector.broadcast %cst_95 : f32 to vector<32x1xf32>
    %241 = arith.addf %239, %240 : vector<32x1xf32>
    %242 = math.rsqrt %241 : vector<32x1xf32>
    %243 = vector.broadcast %242 : vector<32x1xf32> to vector<32x32xf32>
    %244 = arith.mulf %234, %243 : vector<32x32xf32>
    %245 = vector.broadcast %226 : vector<1x32xf32> to vector<32x32xf32>
    %246 = arith.mulf %244, %245 : vector<32x32xf32>
    %247 = vector.broadcast %228 : vector<1x32xf32> to vector<32x32xf32>
    %248 = arith.addf %246, %247 : vector<32x32xf32>
    %249 = arith.truncf %248 : vector<32x32xf32> to vector<32x32xbf16>
    %c1_96 = arith.constant 1 : index
    %c0_97 = arith.constant 0 : index
    %c0_98 = arith.constant 0 : index
    %250 = vector.load %arg5[%c1_96, %c0_97, %c0_98] : memref<2x32x96xf32, #tpu.memory_space<vmem>>, vector<1x32x96xf32>
    %251 = vector.shape_cast %250 : vector<1x32x96xf32> to vector<32x96xf32>
    %252 = arith.truncf %251 : vector<32x96xf32> to vector<32x96xbf16>
    %cst_99 = arith.constant dense<0.000000e+00> : vector<32x96xf32>
    %253 = tpu.matmul %249, %252, %cst_99 {dimension_numbers = #tpu.dot_dimension_numbers<[1], [0], [0], [1], [0, 0, 1, 1], [], []>} : vector<32x32xbf16>, vector<32x96xbf16>, vector<32x96xf32> -> vector<32x96xf32>
    %c1_100 = arith.constant 1 : index
    %c0_101 = arith.constant 0 : index
    %c0_102 = arith.constant 0 : index
    %254 = vector.load %arg6[%c1_100, %c0_101, %c0_102] : memref<2x1x96xf32, #tpu.memory_space<vmem>>, vector<1x1x96xf32>
    %255 = vector.shape_cast %254 : vector<1x1x96xf32> to vector<1x96xf32>
    %256 = vector.broadcast %255 : vector<1x96xf32> to vector<32x96xf32>
    %257 = arith.addf %253, %256 : vector<32x96xf32>
    %258 = vector.extract_strided_slice %257 {offsets = [0, 0], sizes = [16, 16], strides = [1, 1]} : vector<32x96xf32> to vector<16x16xf32>
    %259 = arith.truncf %258 : vector<16x16xf32> to vector<16x16xbf16>
    %260 = vector.extract_strided_slice %257 {offsets = [0, 32], sizes = [16, 16], strides = [1, 1]} : vector<32x96xf32> to vector<16x16xf32>
    %261 = arith.truncf %260 : vector<16x16xf32> to vector<16x16xbf16>
    %262 = vector.extract_strided_slice %257 {offsets = [0, 64], sizes = [16, 16], strides = [1, 1]} : vector<32x96xf32> to vector<16x16xf32>
    %263 = arith.truncf %262 : vector<16x16xf32> to vector<16x16xbf16>
    %cst_103 = arith.constant dense<0.000000e+00> : vector<16x16xf32>
    %264 = tpu.matmul %259, %261, %cst_103 {dimension_numbers = #tpu.dot_dimension_numbers<[1], [1], [0], [0], [0, 0, 1, 0], [], []>} : vector<16x16xbf16>, vector<16x16xbf16>, vector<16x16xf32> -> vector<16x16xf32>
    %265 = arith.addf %264, %15 : vector<16x16xf32>
    %cst_104 = arith.constant dense<0xFF800000> : vector<16xf32>
    %266 = vector.multi_reduction <maximumf>, %265, %cst_104 [1] : vector<16x16xf32> to vector<16xf32>
    %267 = vector.shape_cast %266 : vector<16xf32> to vector<16x1xf32>
    %268 = vector.broadcast %267 : vector<16x1xf32> to vector<16x16xf32>
    %269 = arith.subf %265, %268 : vector<16x16xf32>
    %270 = math.exp %269 : vector<16x16xf32>
    %cst_105 = arith.constant dense<0.000000e+00> : vector<16xf32>
    %271 = vector.multi_reduction <add>, %270, %cst_105 [1] : vector<16x16xf32> to vector<16xf32>
    %272 = vector.shape_cast %271 : vector<16xf32> to vector<16x1xf32>
    %273 = tpu.reciprocal %272 {approx = true} : vector<16x1xf32> -> vector<16x1xf32>
    %274 = vector.broadcast %273 : vector<16x1xf32> to vector<16x16xf32>
    %275 = arith.mulf %270, %274 : vector<16x16xf32>
    %276 = arith.truncf %275 : vector<16x16xf32> to vector<16x16xbf16>
    %cst_106 = arith.constant dense<0.000000e+00> : vector<16x16xf32>
    %277 = tpu.matmul %276, %263, %cst_106 {dimension_numbers = #tpu.dot_dimension_numbers<[1], [0], [0], [1], [0, 0, 1, 1], [], []>} : vector<16x16xbf16>, vector<16x16xbf16>, vector<16x16xf32> -> vector<16x16xf32>
    %278 = vector.extract_strided_slice %257 {offsets = [0, 16], sizes = [16, 16], strides = [1, 1]} : vector<32x96xf32> to vector<16x16xf32>
    %279 = arith.truncf %278 : vector<16x16xf32> to vector<16x16xbf16>
    %280 = vector.extract_strided_slice %257 {offsets = [0, 48], sizes = [16, 16], strides = [1, 1]} : vector<32x96xf32> to vector<16x16xf32>
    %281 = arith.truncf %280 : vector<16x16xf32> to vector<16x16xbf16>
    %282 = vector.extract_strided_slice %257 {offsets = [0, 80], sizes = [16, 16], strides = [1, 1]} : vector<32x96xf32> to vector<16x16xf32>
    %283 = arith.truncf %282 : vector<16x16xf32> to vector<16x16xbf16>
    %cst_107 = arith.constant dense<0.000000e+00> : vector<16x16xf32>
    %284 = tpu.matmul %279, %281, %cst_107 {dimension_numbers = #tpu.dot_dimension_numbers<[1], [1], [0], [0], [0, 0, 1, 0], [], []>} : vector<16x16xbf16>, vector<16x16xbf16>, vector<16x16xf32> -> vector<16x16xf32>
    %285 = arith.addf %284, %15 : vector<16x16xf32>
    %cst_108 = arith.constant dense<0xFF800000> : vector<16xf32>
    %286 = vector.multi_reduction <maximumf>, %285, %cst_108 [1] : vector<16x16xf32> to vector<16xf32>
    %287 = vector.shape_cast %286 : vector<16xf32> to vector<16x1xf32>
    %288 = vector.broadcast %287 : vector<16x1xf32> to vector<16x16xf32>
    %289 = arith.subf %285, %288 : vector<16x16xf32>
    %290 = math.exp %289 : vector<16x16xf32>
    %cst_109 = arith.constant dense<0.000000e+00> : vector<16xf32>
    %291 = vector.multi_reduction <add>, %290, %cst_109 [1] : vector<16x16xf32> to vector<16xf32>
    %292 = vector.shape_cast %291 : vector<16xf32> to vector<16x1xf32>
    %293 = tpu.reciprocal %292 {approx = true} : vector<16x1xf32> -> vector<16x1xf32>
    %294 = vector.broadcast %293 : vector<16x1xf32> to vector<16x16xf32>
    %295 = arith.mulf %290, %294 : vector<16x16xf32>
    %296 = arith.truncf %295 : vector<16x16xf32> to vector<16x16xbf16>
    %cst_110 = arith.constant dense<0.000000e+00> : vector<16x16xf32>
    %297 = tpu.matmul %296, %283, %cst_110 {dimension_numbers = #tpu.dot_dimension_numbers<[1], [0], [0], [1], [0, 0, 1, 1], [], []>} : vector<16x16xbf16>, vector<16x16xbf16>, vector<16x16xf32> -> vector<16x16xf32>
    %298 = tpu.concatenate %277, %297 in 1 : vector<16x16xf32>, vector<16x16xf32> -> vector<16x32xf32>
    %299 = vector.extract_strided_slice %257 {offsets = [16, 0], sizes = [16, 16], strides = [1, 1]} : vector<32x96xf32> to vector<16x16xf32>
    %300 = arith.truncf %299 : vector<16x16xf32> to vector<16x16xbf16>
    %301 = vector.extract_strided_slice %257 {offsets = [16, 32], sizes = [16, 16], strides = [1, 1]} : vector<32x96xf32> to vector<16x16xf32>
    %302 = arith.truncf %301 : vector<16x16xf32> to vector<16x16xbf16>
    %303 = vector.extract_strided_slice %257 {offsets = [16, 64], sizes = [16, 16], strides = [1, 1]} : vector<32x96xf32> to vector<16x16xf32>
    %304 = arith.truncf %303 : vector<16x16xf32> to vector<16x16xbf16>
    %cst_111 = arith.constant dense<0.000000e+00> : vector<16x16xf32>
    %305 = tpu.matmul %300, %302, %cst_111 {dimension_numbers = #tpu.dot_dimension_numbers<[1], [1], [0], [0], [0, 0, 1, 0], [], []>} : vector<16x16xbf16>, vector<16x16xbf16>, vector<16x16xf32> -> vector<16x16xf32>
    %306 = arith.addf %305, %15 : vector<16x16xf32>
    %cst_112 = arith.constant dense<0xFF800000> : vector<16xf32>
    %307 = vector.multi_reduction <maximumf>, %306, %cst_112 [1] : vector<16x16xf32> to vector<16xf32>
    %308 = vector.shape_cast %307 : vector<16xf32> to vector<16x1xf32>
    %309 = vector.broadcast %308 : vector<16x1xf32> to vector<16x16xf32>
    %310 = arith.subf %306, %309 : vector<16x16xf32>
    %311 = math.exp %310 : vector<16x16xf32>
    %cst_113 = arith.constant dense<0.000000e+00> : vector<16xf32>
    %312 = vector.multi_reduction <add>, %311, %cst_113 [1] : vector<16x16xf32> to vector<16xf32>
    %313 = vector.shape_cast %312 : vector<16xf32> to vector<16x1xf32>
    %314 = tpu.reciprocal %313 {approx = true} : vector<16x1xf32> -> vector<16x1xf32>
    %315 = vector.broadcast %314 : vector<16x1xf32> to vector<16x16xf32>
    %316 = arith.mulf %311, %315 : vector<16x16xf32>
    %317 = arith.truncf %316 : vector<16x16xf32> to vector<16x16xbf16>
    %cst_114 = arith.constant dense<0.000000e+00> : vector<16x16xf32>
    %318 = tpu.matmul %317, %304, %cst_114 {dimension_numbers = #tpu.dot_dimension_numbers<[1], [0], [0], [1], [0, 0, 1, 1], [], []>} : vector<16x16xbf16>, vector<16x16xbf16>, vector<16x16xf32> -> vector<16x16xf32>
    %319 = vector.extract_strided_slice %257 {offsets = [16, 16], sizes = [16, 16], strides = [1, 1]} : vector<32x96xf32> to vector<16x16xf32>
    %320 = arith.truncf %319 : vector<16x16xf32> to vector<16x16xbf16>
    %321 = vector.extract_strided_slice %257 {offsets = [16, 48], sizes = [16, 16], strides = [1, 1]} : vector<32x96xf32> to vector<16x16xf32>
    %322 = arith.truncf %321 : vector<16x16xf32> to vector<16x16xbf16>
    %323 = vector.extract_strided_slice %257 {offsets = [16, 80], sizes = [16, 16], strides = [1, 1]} : vector<32x96xf32> to vector<16x16xf32>
    %324 = arith.truncf %323 : vector<16x16xf32> to vector<16x16xbf16>
    %cst_115 = arith.constant dense<0.000000e+00> : vector<16x16xf32>
    %325 = tpu.matmul %320, %322, %cst_115 {dimension_numbers = #tpu.dot_dimension_numbers<[1], [1], [0], [0], [0, 0, 1, 0], [], []>} : vector<16x16xbf16>, vector<16x16xbf16>, vector<16x16xf32> -> vector<16x16xf32>
    %326 = arith.addf %325, %15 : vector<16x16xf32>
    %cst_116 = arith.constant dense<0xFF800000> : vector<16xf32>
    %327 = vector.multi_reduction <maximumf>, %326, %cst_116 [1] : vector<16x16xf32> to vector<16xf32>
    %328 = vector.shape_cast %327 : vector<16xf32> to vector<16x1xf32>
    %329 = vector.broadcast %328 : vector<16x1xf32> to vector<16x16xf32>
    %330 = arith.subf %326, %329 : vector<16x16xf32>
    %331 = math.exp %330 : vector<16x16xf32>
    %cst_117 = arith.constant dense<0.000000e+00> : vector<16xf32>
    %332 = vector.multi_reduction <add>, %331, %cst_117 [1] : vector<16x16xf32> to vector<16xf32>
    %333 = vector.shape_cast %332 : vector<16xf32> to vector<16x1xf32>
    %334 = tpu.reciprocal %333 {approx = true} : vector<16x1xf32> -> vector<16x1xf32>
    %335 = vector.broadcast %334 : vector<16x1xf32> to vector<16x16xf32>
    %336 = arith.mulf %331, %335 : vector<16x16xf32>
    %337 = arith.truncf %336 : vector<16x16xf32> to vector<16x16xbf16>
    %cst_118 = arith.constant dense<0.000000e+00> : vector<16x16xf32>
    %338 = tpu.matmul %337, %324, %cst_118 {dimension_numbers = #tpu.dot_dimension_numbers<[1], [0], [0], [1], [0, 0, 1, 1], [], []>} : vector<16x16xbf16>, vector<16x16xbf16>, vector<16x16xf32> -> vector<16x16xf32>
    %339 = tpu.concatenate %318, %338 in 1 : vector<16x16xf32>, vector<16x16xf32> -> vector<16x32xf32>
    %340 = tpu.concatenate %298, %339 in 0 : vector<16x32xf32>, vector<16x32xf32> -> vector<32x32xf32>
    %341 = arith.truncf %340 : vector<32x32xf32> to vector<32x32xbf16>
    %c1_119 = arith.constant 1 : index
    %c0_120 = arith.constant 0 : index
    %c0_121 = arith.constant 0 : index
    %342 = vector.load %arg7[%c1_119, %c0_120, %c0_121] : memref<2x32x32xf32, #tpu.memory_space<vmem>>, vector<1x32x32xf32>
    %343 = vector.shape_cast %342 : vector<1x32x32xf32> to vector<32x32xf32>
    %344 = arith.truncf %343 : vector<32x32xf32> to vector<32x32xbf16>
    %cst_122 = arith.constant dense<0.000000e+00> : vector<32x32xf32>
    %345 = tpu.matmul %341, %344, %cst_122 {dimension_numbers = #tpu.dot_dimension_numbers<[1], [0], [0], [1], [0, 0, 1, 1], [], []>} : vector<32x32xbf16>, vector<32x32xbf16>, vector<32x32xf32> -> vector<32x32xf32>
    %c1_123 = arith.constant 1 : index
    %c0_124 = arith.constant 0 : index
    %c0_125 = arith.constant 0 : index
    %346 = vector.load %arg8[%c1_123, %c0_124, %c0_125] : memref<2x1x32xf32, #tpu.memory_space<vmem>>, vector<1x1x32xf32>
    %347 = vector.shape_cast %346 : vector<1x1x32xf32> to vector<1x32xf32>
    %348 = vector.broadcast %347 : vector<1x32xf32> to vector<32x32xf32>
    %349 = arith.addf %345, %348 : vector<32x32xf32>
    %350 = arith.addf %224, %349 : vector<32x32xf32>
    %c1_126 = arith.constant 1 : index
    %c0_127 = arith.constant 0 : index
    %c0_128 = arith.constant 0 : index
    %351 = vector.load %arg9[%c1_126, %c0_127, %c0_128] : memref<2x1x32xf32, #tpu.memory_space<vmem>>, vector<1x1x32xf32>
    %352 = vector.shape_cast %351 : vector<1x1x32xf32> to vector<1x32xf32>
    %c1_129 = arith.constant 1 : index
    %c0_130 = arith.constant 0 : index
    %c0_131 = arith.constant 0 : index
    %353 = vector.load %arg10[%c1_129, %c0_130, %c0_131] : memref<2x1x32xf32, #tpu.memory_space<vmem>>, vector<1x1x32xf32>
    %354 = vector.shape_cast %353 : vector<1x1x32xf32> to vector<1x32xf32>
    %cst_132 = arith.constant dense<0.000000e+00> : vector<32xf32>
    %355 = vector.multi_reduction <add>, %350, %cst_132 [1] : vector<32x32xf32> to vector<32xf32>
    %356 = vector.shape_cast %355 : vector<32xf32> to vector<32x1xf32>
    %cst_133 = arith.constant 3.200000e+01 : f32
    %357 = vector.broadcast %cst_133 : f32 to vector<32x1xf32>
    %358 = arith.divf %356, %357 : vector<32x1xf32>
    %359 = vector.broadcast %358 : vector<32x1xf32> to vector<32x32xf32>
    %360 = arith.subf %350, %359 : vector<32x32xf32>
    %361 = arith.mulf %360, %360 : vector<32x32xf32>
    %cst_134 = arith.constant dense<0.000000e+00> : vector<32xf32>
    %362 = vector.multi_reduction <add>, %361, %cst_134 [1] : vector<32x32xf32> to vector<32xf32>
    %363 = vector.shape_cast %362 : vector<32xf32> to vector<32x1xf32>
    %cst_135 = arith.constant 3.200000e+01 : f32
    %364 = vector.broadcast %cst_135 : f32 to vector<32x1xf32>
    %365 = arith.divf %363, %364 : vector<32x1xf32>
    %cst_136 = arith.constant 9.99999974E-6 : f32
    %366 = vector.broadcast %cst_136 : f32 to vector<32x1xf32>
    %367 = arith.addf %365, %366 : vector<32x1xf32>
    %368 = math.rsqrt %367 : vector<32x1xf32>
    %369 = vector.broadcast %368 : vector<32x1xf32> to vector<32x32xf32>
    %370 = arith.mulf %360, %369 : vector<32x32xf32>
    %371 = vector.broadcast %352 : vector<1x32xf32> to vector<32x32xf32>
    %372 = arith.mulf %370, %371 : vector<32x32xf32>
    %373 = vector.broadcast %354 : vector<1x32xf32> to vector<32x32xf32>
    %374 = arith.addf %372, %373 : vector<32x32xf32>
    %375 = arith.truncf %374 : vector<32x32xf32> to vector<32x32xbf16>
    %c1_137 = arith.constant 1 : index
    %c0_138 = arith.constant 0 : index
    %c0_139 = arith.constant 0 : index
    %376 = vector.load %arg11[%c1_137, %c0_138, %c0_139] : memref<2x32x64xf32, #tpu.memory_space<vmem>>, vector<1x32x64xf32>
    %377 = vector.shape_cast %376 : vector<1x32x64xf32> to vector<32x64xf32>
    %378 = arith.truncf %377 : vector<32x64xf32> to vector<32x64xbf16>
    %cst_140 = arith.constant dense<0.000000e+00> : vector<32x64xf32>
    %379 = tpu.matmul %375, %378, %cst_140 {dimension_numbers = #tpu.dot_dimension_numbers<[1], [0], [0], [1], [0, 0, 1, 1], [], []>} : vector<32x32xbf16>, vector<32x64xbf16>, vector<32x64xf32> -> vector<32x64xf32>
    %c1_141 = arith.constant 1 : index
    %c0_142 = arith.constant 0 : index
    %c0_143 = arith.constant 0 : index
    %380 = vector.load %arg12[%c1_141, %c0_142, %c0_143] : memref<2x1x64xf32, #tpu.memory_space<vmem>>, vector<1x1x64xf32>
    %381 = vector.shape_cast %380 : vector<1x1x64xf32> to vector<1x64xf32>
    %382 = vector.broadcast %381 : vector<1x64xf32> to vector<32x64xf32>
    %383 = arith.addf %379, %382 : vector<32x64xf32>
    %cst_144 = arith.constant 5.000000e-01 : f32
    %384 = vector.broadcast %cst_144 : f32 to vector<32x64xf32>
    %385 = arith.mulf %384, %383 : vector<32x64xf32>
    %cst_145 = arith.constant 0.707106769 : f32
    %386 = vector.broadcast %cst_145 : f32 to vector<32x64xf32>
    %387 = arith.mulf %383, %386 : vector<32x64xf32>
    %388 = math.absf %387 : vector<32x64xf32>
    %cst_146 = arith.constant 0.327591091 : f32
    %389 = vector.broadcast %cst_146 : f32 to vector<32x64xf32>
    %390 = arith.mulf %389, %388 : vector<32x64xf32>
    %cst_147 = arith.constant 1.000000e+00 : f32
    %391 = vector.broadcast %cst_147 : f32 to vector<32x64xf32>
    %392 = arith.addf %391, %390 : vector<32x64xf32>
    %cst_148 = arith.constant 1.000000e+00 : f32
    %393 = vector.broadcast %cst_148 : f32 to vector<32x64xf32>
    %394 = arith.divf %393, %392 : vector<32x64xf32>
    %cst_149 = arith.constant 1.06140542 : f32
    %395 = vector.broadcast %cst_149 : f32 to vector<32x64xf32>
    %396 = arith.mulf %395, %394 : vector<32x64xf32>
    %cst_150 = arith.constant -1.45315206 : f32
    %397 = vector.broadcast %cst_150 : f32 to vector<32x64xf32>
    %398 = arith.addf %396, %397 : vector<32x64xf32>
    %399 = arith.mulf %398, %394 : vector<32x64xf32>
    %cst_151 = arith.constant 1.42141378 : f32
    %400 = vector.broadcast %cst_151 : f32 to vector<32x64xf32>
    %401 = arith.addf %399, %400 : vector<32x64xf32>
    %402 = arith.mulf %401, %394 : vector<32x64xf32>
    %cst_152 = arith.constant -0.284496725 : f32
    %403 = vector.broadcast %cst_152 : f32 to vector<32x64xf32>
    %404 = arith.addf %402, %403 : vector<32x64xf32>
    %405 = arith.mulf %404, %394 : vector<32x64xf32>
    %cst_153 = arith.constant 0.254829586 : f32
    %406 = vector.broadcast %cst_153 : f32 to vector<32x64xf32>
    %407 = arith.addf %405, %406 : vector<32x64xf32>
    %408 = arith.mulf %407, %394 : vector<32x64xf32>
    %cst_154 = arith.constant 0.000000e+00 : f32
    %409 = vector.broadcast %cst_154 : f32 to vector<32x64xf32>
    %410 = arith.subf %409, %388 : vector<32x64xf32>
    %411 = arith.mulf %410, %388 : vector<32x64xf32>
    %412 = math.exp %411 : vector<32x64xf32>
    %413 = arith.mulf %408, %412 : vector<32x64xf32>
    %cst_155 = arith.constant 1.000000e+00 : f32
    %414 = vector.broadcast %cst_155 : f32 to vector<32x64xf32>
    %415 = arith.subf %414, %413 : vector<32x64xf32>
    %cst_156 = arith.constant 0.000000e+00 : f32
    %416 = vector.broadcast %cst_156 : f32 to vector<32x64xf32>
    %417 = arith.cmpf oge, %387, %416 : vector<32x64xf32>
    %cst_157 = arith.constant 0.000000e+00 : f32
    %418 = vector.broadcast %cst_157 : f32 to vector<32x64xf32>
    %419 = arith.subf %418, %415 : vector<32x64xf32>
    %420 = arith.select %417, %415, %419 : vector<32x64xi1>, vector<32x64xf32>
    %cst_158 = arith.constant 1.000000e+00 : f32
    %421 = vector.broadcast %cst_158 : f32 to vector<32x64xf32>
    %422 = arith.addf %421, %420 : vector<32x64xf32>
    %423 = arith.mulf %385, %422 : vector<32x64xf32>
    %424 = arith.truncf %423 : vector<32x64xf32> to vector<32x64xbf16>
    %c1_159 = arith.constant 1 : index
    %c0_160 = arith.constant 0 : index
    %c0_161 = arith.constant 0 : index
    %425 = vector.load %arg13[%c1_159, %c0_160, %c0_161] : memref<2x64x32xf32, #tpu.memory_space<vmem>>, vector<1x64x32xf32>
    %426 = vector.shape_cast %425 : vector<1x64x32xf32> to vector<64x32xf32>
    %427 = arith.truncf %426 : vector<64x32xf32> to vector<64x32xbf16>
    %cst_162 = arith.constant dense<0.000000e+00> : vector<32x32xf32>
    %428 = tpu.matmul %424, %427, %cst_162 {dimension_numbers = #tpu.dot_dimension_numbers<[1], [0], [0], [1], [0, 0, 1, 1], [], []>} : vector<32x64xbf16>, vector<64x32xbf16>, vector<32x32xf32> -> vector<32x32xf32>
    %c1_163 = arith.constant 1 : index
    %c0_164 = arith.constant 0 : index
    %c0_165 = arith.constant 0 : index
    %429 = vector.load %arg14[%c1_163, %c0_164, %c0_165] : memref<2x1x32xf32, #tpu.memory_space<vmem>>, vector<1x1x32xf32>
    %430 = vector.shape_cast %429 : vector<1x1x32xf32> to vector<1x32xf32>
    %431 = vector.broadcast %430 : vector<1x32xf32> to vector<32x32xf32>
    %432 = arith.addf %428, %431 : vector<32x32xf32>
    %433 = arith.addf %350, %432 : vector<32x32xf32>
    %c0_166 = arith.constant 0 : index
    %c0_167 = arith.constant 0 : index
    %434 = vector.load %arg15[%c0_166, %c0_167] : memref<1x32xf32, #tpu.memory_space<vmem>>, vector<1x32xf32>
    %c0_168 = arith.constant 0 : index
    %c0_169 = arith.constant 0 : index
    %435 = vector.load %arg16[%c0_168, %c0_169] : memref<1x32xf32, #tpu.memory_space<vmem>>, vector<1x32xf32>
    %cst_170 = arith.constant dense<0.000000e+00> : vector<32xf32>
    %436 = vector.multi_reduction <add>, %433, %cst_170 [1] : vector<32x32xf32> to vector<32xf32>
    %437 = vector.shape_cast %436 : vector<32xf32> to vector<32x1xf32>
    %cst_171 = arith.constant 3.200000e+01 : f32
    %438 = vector.broadcast %cst_171 : f32 to vector<32x1xf32>
    %439 = arith.divf %437, %438 : vector<32x1xf32>
    %440 = vector.broadcast %439 : vector<32x1xf32> to vector<32x32xf32>
    %441 = arith.subf %433, %440 : vector<32x32xf32>
    %442 = arith.mulf %441, %441 : vector<32x32xf32>
    %cst_172 = arith.constant dense<0.000000e+00> : vector<32xf32>
    %443 = vector.multi_reduction <add>, %442, %cst_172 [1] : vector<32x32xf32> to vector<32xf32>
    %444 = vector.shape_cast %443 : vector<32xf32> to vector<32x1xf32>
    %cst_173 = arith.constant 3.200000e+01 : f32
    %445 = vector.broadcast %cst_173 : f32 to vector<32x1xf32>
    %446 = arith.divf %444, %445 : vector<32x1xf32>
    %cst_174 = arith.constant 9.99999974E-6 : f32
    %447 = vector.broadcast %cst_174 : f32 to vector<32x1xf32>
    %448 = arith.addf %446, %447 : vector<32x1xf32>
    %449 = math.rsqrt %448 : vector<32x1xf32>
    %450 = vector.broadcast %449 : vector<32x1xf32> to vector<32x32xf32>
    %451 = arith.mulf %441, %450 : vector<32x32xf32>
    %452 = vector.broadcast %434 : vector<1x32xf32> to vector<32x32xf32>
    %453 = arith.mulf %451, %452 : vector<32x32xf32>
    %454 = vector.broadcast %435 : vector<1x32xf32> to vector<32x32xf32>
    %455 = arith.addf %453, %454 : vector<32x32xf32>
    %c0_175 = arith.constant 0 : index
    %c0_176 = arith.constant 0 : index
    %456 = vector.load %arg17[%c0_175, %c0_176] : memref<32x32xf32, #tpu.memory_space<vmem>>, vector<32x32xf32>
    tpu.vector_store %arg17[%c0_175, %c0_176], %455 {strides = array<i32>} : memref<32x32xf32, #tpu.memory_space<vmem>>, vector<32x32xf32>,
    return
  }
  func.func @transform_0(%arg0: i32) -> (i32, i32) {
    %c0_i32 = arith.constant 0 : i32
    %c0_i32_0 = arith.constant 0 : i32
    return %arg0, %c0_i32 : i32, i32
  }
  func.func @transform_1(%arg0: i32) -> (i32, i32) {
    %c0_i32 = arith.constant 0 : i32
    %c0_i32_0 = arith.constant 0 : i32
    %c0_i32_1 = arith.constant 0 : i32
    return %c0_i32, %c0_i32_0 : i32, i32
  }
  func.func @transform_2(%arg0: i32) -> (i32, i32, i32) {
    %c0_i32 = arith.constant 0 : i32
    %c0_i32_0 = arith.constant 0 : i32
    %c0_i32_1 = arith.constant 0 : i32
    %c0_i32_2 = arith.constant 0 : i32
    return %c0_i32, %c0_i32_0, %c0_i32_1 : i32, i32, i32
  }
  func.func @transform_3(%arg0: i32) -> (i32, i32, i32) {
    %c0_i32 = arith.constant 0 : i32
    %c0_i32_0 = arith.constant 0 : i32
    %c0_i32_1 = arith.constant 0 : i32
    %c0_i32_2 = arith.constant 0 : i32
    return %c0_i32, %c0_i32_0, %c0_i32_1 : i32, i32, i32
  }
  func.func @transform_4(%arg0: i32) -> (i32, i32, i32) {
    %c0_i32 = arith.constant 0 : i32
    %c0_i32_0 = arith.constant 0 : i32
    %c0_i32_1 = arith.constant 0 : i32
    %c0_i32_2 = arith.constant 0 : i32
    return %c0_i32, %c0_i32_0, %c0_i32_1 : i32, i32, i32
  }
  func.func @transform_5(%arg0: i32) -> (i32, i32, i32) {
    %c0_i32 = arith.constant 0 : i32
    %c0_i32_0 = arith.constant 0 : i32
    %c0_i32_1 = arith.constant 0 : i32
    %c0_i32_2 = arith.constant 0 : i32
    return %c0_i32, %c0_i32_0, %c0_i32_1 : i32, i32, i32
  }
  func.func @transform_6(%arg0: i32) -> (i32, i32, i32) {
    %c0_i32 = arith.constant 0 : i32
    %c0_i32_0 = arith.constant 0 : i32
    %c0_i32_1 = arith.constant 0 : i32
    %c0_i32_2 = arith.constant 0 : i32
    return %c0_i32, %c0_i32_0, %c0_i32_1 : i32, i32, i32
  }
  func.func @transform_7(%arg0: i32) -> (i32, i32, i32) {
    %c0_i32 = arith.constant 0 : i32
    %c0_i32_0 = arith.constant 0 : i32
    %c0_i32_1 = arith.constant 0 : i32
    %c0_i32_2 = arith.constant 0 : i32
    return %c0_i32, %c0_i32_0, %c0_i32_1 : i32, i32, i32
  }
  func.func @transform_8(%arg0: i32) -> (i32, i32, i32) {
    %c0_i32 = arith.constant 0 : i32
    %c0_i32_0 = arith.constant 0 : i32
    %c0_i32_1 = arith.constant 0 : i32
    %c0_i32_2 = arith.constant 0 : i32
    return %c0_i32, %c0_i32_0, %c0_i32_1 : i32, i32, i32
  }
  func.func @transform_9(%arg0: i32) -> (i32, i32, i32) {
    %c0_i32 = arith.constant 0 : i32
    %c0_i32_0 = arith.constant 0 : i32
    %c0_i32_1 = arith.constant 0 : i32
    %c0_i32_2 = arith.constant 0 : i32
    return %c0_i32, %c0_i32_0, %c0_i32_1 : i32, i32, i32
  }
  func.func @transform_10(%arg0: i32) -> (i32, i32, i32) {
    %c0_i32 = arith.constant 0 : i32
    %c0_i32_0 = arith.constant 0 : i32
    %c0_i32_1 = arith.constant 0 : i32
    %c0_i32_2 = arith.constant 0 : i32
    return %c0_i32, %c0_i32_0, %c0_i32_1 : i32, i32, i32
  }
  func.func @transform_11(%arg0: i32) -> (i32, i32, i32) {
    %c0_i32 = arith.constant 0 : i32
    %c0_i32_0 = arith.constant 0 : i32
    %c0_i32_1 = arith.constant 0 : i32
    %c0_i32_2 = arith.constant 0 : i32
    return %c0_i32, %c0_i32_0, %c0_i32_1 : i32, i32, i32
  }
  func.func @transform_12(%arg0: i32) -> (i32, i32, i32) {
    %c0_i32 = arith.constant 0 : i32
    %c0_i32_0 = arith.constant 0 : i32
    %c0_i32_1 = arith.constant 0 : i32
    %c0_i32_2 = arith.constant 0 : i32
    return %c0_i32, %c0_i32_0, %c0_i32_1 : i32, i32, i32
  }
  func.func @transform_13(%arg0: i32) -> (i32, i32, i32) {
    %c0_i32 = arith.constant 0 : i32
    %c0_i32_0 = arith.constant 0 : i32
    %c0_i32_1 = arith.constant 0 : i32
    %c0_i32_2 = arith.constant 0 : i32
    return %c0_i32, %c0_i32_0, %c0_i32_1 : i32, i32, i32
  }
  func.func @transform_14(%arg0: i32) -> (i32, i32) {
    %c0_i32 = arith.constant 0 : i32
    %c0_i32_0 = arith.constant 0 : i32
    %c0_i32_1 = arith.constant 0 : i32
    return %c0_i32, %c0_i32_0 : i32, i32
  }
  func.func @transform_15(%arg0: i32) -> (i32, i32) {
    %c0_i32 = arith.constant 0 : i32
    %c0_i32_0 = arith.constant 0 : i32
    %c0_i32_1 = arith.constant 0 : i32
    return %c0_i32, %c0_i32_0 : i32, i32
  }
  func.func @transform_16(%arg0: i32) -> (i32, i32) {
    %c0_i32 = arith.constant 0 : i32
    %c0_i32_0 = arith.constant 0 : i32
    return %arg0, %c0_i32 : i32, i32
  }
}

</mosaic_0001>

<bundles_post_ra>
// kernel: tpu_custom_call.1
= control target key start
LH: loop header
LB: loop body
LE: loop exit
PB: predicated region body
PF: predicated region fallthrough
CT: control target
= control target key end

     0   :  { %s2992_s0 = inlined_call_operand.vmem [shape: s32[32,1], index: 0, kind: input, shape index: {}]   ;;  %s2993_s1 = inlined_call_operand.vmem [shape: f32[16,32], index: 1, kind: input, shape index: {}]   ;;  %s2994_s2 = inlined_call_operand.vmem [shape: f32[2,1,32], index: 2, kind: input, shape index: {}]   ;;  %s2995_s3 = inlined_call_operand.vmem [shape: f32[2,1,32], index: 3, kind: input, shape index: {}]   ;;  %s2996_s4 = inlined_call_operand.vmem [shape: f32[2,32,96], index: 4, kind: input, shape index: {}]   ;;  %s2997_s5 = inlined_call_operand.vmem [shape: f32[2,1,96], index: 5, kind: input, shape index: {}]   ;;  %s2998_s6 = inlined_call_operand.vmem [shape: f32[2,32,32], index: 6, kind: input, shape index: {}]   ;;  %s2999_s7 = inlined_call_operand.vmem [shape: f32[2,1,32], index: 7, kind: input, shape index: {}]   ;;  %s3000_s8 = inlined_call_operand.vmem [shape: f32[2,1,32], index: 8, kind: input, shape index: {}]   ;;  %s3001_s9 = inlined_call_operand.vmem [shape: f32[2,1,32], index: 9, kind: input, shape index: {}]   ;;  %s3002_s10 = inlined_call_operand.vmem [shape: f32[2,32,64], index: 10, kind: input, shape index: {}]   ;;  %s3003_s11 = inlined_call_operand.vmem [shape: f32[2,1,64], index: 11, kind: input, shape index: {}]   ;;  %s3004_s12 = inlined_call_operand.vmem [shape: f32[2,64,32], index: 12, kind: input, shape index: {}]   ;;  %s3005_s13 = inlined_call_operand.vmem [shape: f32[2,1,32], index: 13, kind: input, shape index: {}]   ;;  %s3006_s14 = inlined_call_operand.vmem [shape: f32[1,32], index: 14, kind: input, shape index: {}]   ;;  %s3007_s15 = inlined_call_operand.vmem [shape: f32[1,32], index: 15, kind: input, shape index: {}]   ;;  %s3008_s16 = inlined_call_operand.hbm [shape: f32[32,32], index: 16, kind: output, shape index: {}]  }
   0x1   :  { %3010 = sst [smem:[#allocation5_spill]] %s2992_s0 }
   0x2   :  { %s3011_s23 = sld [smem:[#allocation5_spill]]  ;;  %v2191_v2 = vmov 0  }
   0x3   :  { %1987 = vset.pattern.permute.xlu0 %v2191_v2  ;;  %1988 = vset.pattern.permute.xlu1 %v2191_v2 }
   0x8   :  { %v55_v0 = vld [vmem:[%s3011_s23] sm:$0xff]  ;;  %v57_v1 = vld [vmem:[%s3011_s23 + $0x10] sm:$0xff]  ;;  %v56_v3 = vld [vmem:[%s3011_s23 + $0x8] sm:$0xff] }
   0x9   :  { %62 = vperm.xlu0 %1987, %v55_v0   ;;  %68 = vperm.xlu1 %1988, %v57_v1   ;;  %v58_v4 = vld [vmem:[%s3011_s23 + $0x18] sm:$0xff] }
   0xa   :  { %21 = vsyncpa [#allocation3], 0  ;;  %v87_v5 = vld [vmem:[%s2993_s1] sm:$0xff]  ;;  %v88_v6 = vld [vmem:[%s2993_s1 + $0x8] sm:$0xff]  ;;  %v59_v8 = vlaneseq  ;;  %v2192_v13 = vmov 0.0   ;;  %vm90_vm2 = vcmask 130048  }
   0xb   :  { %v89_v7 = vpack.c.bf16 %v88_v6, %v87_v5  ;;  %vm125_vm5 = vcmask 261120   ;;  %v2193_v29 = vmov 32.0   ;;  %v239_v56 = vld [vmem:[%s2996_s4 + $0x10] sm:$0xff]  ;;  %v240_v57 = vld [vmem:[%s2996_s4 + $0x18] sm:$0xff]  ;;  %v237_v61 = vld [vmem:[%s2996_s4] sm:$0xff]  ;;  %s2194_s17 = smov 96  }
   0xc   :  { %v2308_v10 = vand.u32 127, %v59_v8  ;;  %2027 = vrcp.f32 %v2193_v29  ;;  %v242_v58 = vpack.c.bf16 %v240_v57, %v239_v56  ;;  %v238_v62 = vld [vmem:[%s2996_s4 + $0x8] sm:$0xff]  ;;  %s2195_s18 = smov 64   ;;  %s2196_s1 = smov 80  }
   0xd   :  { %104 = vmatpush.bf16.msra.mxu0 %v89_v7  ;;  %v241_v63 = vpack.c.bf16 %v238_v62, %v237_v61  ;;  %s2197_s19 = smov 112   ;;  %s2199_s20 = smov 48  }
   0xe   :  { %259 = vmatpush.bf16.msra.mxu1 %v242_v58  ;;  %1972 = vmatpush.bf16.msra.mxu2 %v242_v58  ;;  %s2200_s25 = smov 16   ;;  %s1894_s23 = sshll.u32 %s3008_s16, 4  ;;  %s1895_s23 = int_to_ptr.hbm [resolvable:$true] %s1894_s23 }
  0x11   :  { %65 = vperm.xlu0 %1987, %v56_v3   ;;  %71 = vperm.xlu1 %1988, %v58_v4  }
  0x12   :  { %v2028_v30 = vpop.eup %2027  ;;  %260 = vmatpush.bf16.msra.mxu1 %v241_v63  ;;  %1973 = vmatpush.bf16.msra.mxu2 %v241_v63 }
  0x13   :  { %v139_v31 = vmul.f32 32.0, %v2028_v30  ;;  %vm143_vm6 = vweird.f32 %v2028_v30 }
  0x15   :  { %v140_v32 = vsub.f32 1.0, %v139_v31 }
  0x17   :  { %v141_v33 = vmul.f32 %v2028_v30, %v140_v32 }
  0x19   :  { %v142_v34 = vadd.f32 %v2028_v30, %v141_v33 }
  0x1b   :  { %v2332_v35 = vsel %vm143_vm6, %v2028_v30, %v142_v34  ;;  %v2009_v30 = vld [vmem:[%s2994_s2] ss:$0 sm:$0xff] }
  0x7b   :  { %v63_v9 = vpop.permute.xlu0 %62  ;;  %v69_v11 = vpop.permute.xlu1 %68 }
  0x7c   :  { %vm73_vm0 = vcmp.eq.s32.totalorder %v63_v9, %v2308_v10  ;;  %vm75_vm3 = vcmp.eq.s32.totalorder %v69_v11, %v2308_v10 }
  0x7d   :  { %v1906_v14 = vsel %vm73_vm0, 1.0, %v2192_v13  ;;  %v1908_v18 = vsel %vm75_vm3, 1.0, %v2192_v13 }
  0x83   :  { %v66_v12 = vpop.permute.xlu0 %65  ;;  %v72_v17 = vpop.permute.xlu1 %71 }
  0x84   :  { %vm74_vm1 = vcmp.eq.s32.totalorder %v66_v12, %v2308_v10  ;;  %vm76_vm4 = vcmp.eq.s32.totalorder %v72_v17, %v2308_v10 }
  0x85   :  { %v1907_v15 = vsel %vm74_vm1, 1.0, %v2192_v13  ;;  %v1909_v19 = vsel %vm76_vm4, 1.0, %v2192_v13 }
  0x86   :  { %v85_v16 = vpack.c.bf16 %v1907_v15, %v1906_v14  ;;  %v86_v20 = vpack.c.bf16 %v1909_v19, %v1908_v18 }
  0x88   :  { %1910 = vmatmul.msk.bf16.vlgmr.msra.gmra.mxu0 %vm90_vm2, %v85_v16 }
  0x98   :  { %1911 = vmatmul.msk.bf16.gmra.mxu0 %vm90_vm2, %v86_v20 }
 0x105   :  { %v2316_v21 = vpop.f32.mrf.mxu0 }
 0x106   :  { %v126_v22 = vsel %vm125_vm5, %v2316_v21, 0.0 }
 0x107   :  { %127 = vadd.xlane.f32.xlu2 %v126_v22 }
 0x10d   :  { %v2320_v23 = vpop.f32.mrf.mxu0 }
 0x10e   :  { %v129_v24 = vsel %vm125_vm5, %v2320_v23, 0.0 }
 0x10f   :  { %130 = vadd.xlane.f32.xlu2 %v129_v24 }
 0x115   :  { %v2324_v25 = vpop.f32.mrf.mxu0 }
 0x116   :  { %v132_v26 = vsel %vm125_vm5, %v2324_v25, 0.0 }
 0x117   :  { %133 = vadd.xlane.f32.xlu2 %v132_v26 }
 0x11d   :  { %v2328_v27 = vpop.f32.mrf.mxu0 }
 0x11e   :  { %v135_v28 = vsel %vm125_vm5, %v2328_v27, 0.0 }
 0x11f   :  { %136 = vadd.xlane.f32.xlu2 %v135_v28 }
 0x17a   :  { %v128_v36 = vpop.xlane.xlu2 %127 }
 0x17b   :  { %v145_v37 = vmul.f32 %v2332_v35, %v128_v36 }
 0x17d   :  { %v2336_v38 = vsub.f32 %v2316_v21, %v145_v37 }
 0x17f   :  { %v153_v39 = vmul.f32 %v2336_v38, %v2336_v38 }
 0x181   :  { %v157_v40 = vsel %vm125_vm5, %v153_v39, 0.0  ;;  %v2010_v39 = vld [vmem:[%s2995_s3] ss:$0 sm:$0xff] }
 0x182   :  { %158 = vadd.xlane.f32.xlu0 %v157_v40  ;;  %v131_v41 = vpop.xlane.xlu2 %130 }
 0x183   :  { %v146_v42 = vmul.f32 %v2332_v35, %v131_v41 }
 0x185   :  { %v2343_v43 = vsub.f32 %v2320_v23, %v146_v42 }
 0x187   :  { %v154_v44 = vmul.f32 %v2343_v43, %v2343_v43 }
 0x189   :  { %v160_v45 = vsel %vm125_vm5, %v154_v44, 0.0 }
 0x18a   :  { %161 = vadd.xlane.f32.xlu1 %v160_v45  ;;  %v134_v46 = vpop.xlane.xlu2 %133 }
 0x18b   :  { %v147_v47 = vmul.f32 %v2332_v35, %v134_v46 }
 0x18d   :  { %v2350_v48 = vsub.f32 %v2324_v25, %v147_v47 }
 0x18f   :  { %v155_v49 = vmul.f32 %v2350_v48, %v2350_v48 }
 0x191   :  { %v163_v50 = vsel %vm125_vm5, %v155_v49, 0.0 }
 0x192   :  { %164 = vadd.xlane.f32.xlu2 %v163_v50  ;;  %v137_v51 = vpop.xlane.xlu2 %136 }
 0x193   :  { %v148_v52 = vmul.f32 %v2332_v35, %v137_v51 }
 0x195   :  { %v2357_v53 = vsub.f32 %v2328_v27, %v148_v52 }
 0x197   :  { %v156_v54 = vmul.f32 %v2357_v53, %v2357_v53 }
 0x199   :  { %v166_v55 = vsel %vm125_vm5, %v156_v54, 0.0 }
 0x19a   :  { %167 = vadd.xlane.f32.xlu2 %v166_v55 }
 0x1f5   :  { %v159_v59 = vpop.xlane.xlu0 %158 }
 0x1f6   :  { %v169_v60 = vmul.f32 %v159_v59, %v2332_v35 }
 0x1f8   :  { %v173_v0 = vadd.f32 1e-05, %v169_v60 }
 0x1fa   :  { %2029 = vrsqrt.f32 %v173_v0  ;;  %vm183_vm8 = vweird.f32 %v173_v0 }
 0x1fd   :  { %v162_v1 = vpop.xlane.xlu1 %161 }
 0x1fe   :  { %v170_v2 = vmul.f32 %v162_v1, %v2332_v35 }
 0x200   :  { %v2030_v3 = vpop.eup %2029  ;;  %v174_v4 = vadd.f32 1e-05, %v170_v2 }
 0x201   :  { %v178_v5 = vmul.f32 %v2030_v3, %v173_v0  ;;  %vm184_vm7 = vweird.f32 %v2030_v3  ;;  %v2011_v0 = vld [vmem:[%s2997_s5] ss:$0 sm:$0xff] }
 0x202   :  { %2031 = vrsqrt.f32 %v174_v4  ;;  %vm185_vm9 = vmor %vm183_vm8, %vm184_vm7  ;;  %vm193_vm11 = vweird.f32 %v174_v4 }
 0x203   :  { %v179_v6 = vmul.f32 %v2030_v3, %v178_v5 }
 0x205   :  { %v180_v7 = vmul.f32 0.5, %v179_v6  ;;  %v165_v9 = vpop.xlane.xlu2 %164 }
 0x206   :  { %v171_v11 = vmul.f32 %v165_v9, %v2332_v35 }
 0x207   :  { %v181_v12 = vsub.f32 1.5, %v180_v7 }
 0x208   :  { %v2032_v13 = vpop.eup %2031  ;;  %v175_v14 = vadd.f32 1e-05, %v171_v11 }
 0x209   :  { %v182_v15 = vmul.f32 %v2030_v3, %v181_v12  ;;  %v188_v16 = vmul.f32 %v2032_v13, %v174_v4  ;;  %vm194_vm10 = vweird.f32 %v2032_v13 }
 0x20a   :  { %2033 = vrsqrt.f32 %v175_v14  ;;  %vm195_vm12 = vmor %vm193_vm11, %vm194_vm10  ;;  %vm203_vm13 = vweird.f32 %v175_v14 }
 0x20b   :  { %v189_v17 = vmul.f32 %v2032_v13, %v188_v16  ;;  %v186_v18 = vsel %vm185_vm9, %v2030_v3, %v182_v15  ;;  %v117_v16 = vshrl.u32 %v59_v8, 7 }
 0x20c   :  { %v217_v28 = vmul.f32 %v186_v18, %v2336_v38 }
 0x20d   :  { %v190_v19 = vmul.f32 0.5, %v189_v17  ;;  %v168_v20 = vpop.xlane.xlu2 %167  ;;  %vm119_vm4 = vcmp.le.s32.totalorder %v2308_v10, %v117_v16  ;;  %v2198_v17 = vmov -1e+30  }
 0x20e   :  { %v172_v22 = vmul.f32 %v168_v20, %v2332_v35  ;;  %v224_v37 = vmul.f32 %v2009_v30, %v217_v28  ;;  %v2412_v18 = vsel %vm119_vm4, 0.0, %v2198_v17 }
 0x20f   :  { %v191_v24 = vsub.f32 1.5, %v190_v19  ;;  %v118_v19 = vadd.s32 8, %v117_v16 }
 0x210   :  { %v2034_v26 = vpop.eup %2033  ;;  %v176_v29 = vadd.f32 1e-05, %v172_v22  ;;  %v231_v44 = vadd.f32 %v2010_v39, %v224_v37 }
 0x211   :  { %v192_v31 = vmul.f32 %v2032_v13, %v191_v24  ;;  %v198_v32 = vmul.f32 %v2034_v26, %v175_v14  ;;  %vm204_vm14 = vweird.f32 %v2034_v26  ;;  %vm120_vm6 = vcmp.le.s32.totalorder %v2308_v10, %v118_v19 }
 0x212   :  { %2035 = vrsqrt.f32 %v176_v29  ;;  %vm205_vm15 = vmor %vm203_vm13, %vm204_vm14  ;;  %vm213_vm0 = vweird.f32 %v176_v29 }
 0x213   :  { %v196_v33 = vsel %vm195_vm12, %v2032_v13, %v192_v31  ;;  %v199_v34 = vmul.f32 %v2034_v26, %v198_v32 }
 0x214   :  { %v218_v36 = vmul.f32 %v196_v33, %v2343_v43 }
 0x215   :  { %v200_v38 = vmul.f32 0.5, %v199_v34 }
 0x216   :  { %v225_v40 = vmul.f32 %v2009_v30, %v218_v36 }
 0x217   :  { %v201_v41 = vsub.f32 1.5, %v200_v38 }
 0x218   :  { %v2036_v42 = vpop.eup %2035  ;;  %v232_v45 = vadd.f32 %v2010_v39, %v225_v40 }
 0x219   :  { %v202_v46 = vmul.f32 %v2034_v26, %v201_v41  ;;  %v208_v47 = vmul.f32 %v2036_v42, %v176_v29  ;;  %vm214_vm1 = vweird.f32 %v2036_v42 }
 0x21a   :  { %v235_v49 = vpack.c.bf16 %v232_v45, %v231_v44  ;;  %vm215_vm3 = vmor %vm213_vm0, %vm214_vm1 }
 0x21b   :  { %v209_v50 = vmul.f32 %v2036_v42, %v208_v47  ;;  %v206_v43 = vsel %vm205_vm15, %v2034_v26, %v202_v46  ;;  %v2417_v26 = vsel %vm120_vm6, 0.0, %v2198_v17 }
 0x21c   :  { %1912 = vmatmul.msk.bf16.vlgmr.msra.gmra.mxu1 %vm125_vm5, %v235_v49  ;;  %v219_v54 = vmul.f32 %v206_v43, %v2350_v48 }
 0x21d   :  { %v210_v51 = vmul.f32 0.5, %v209_v50 }
 0x21e   :  { %v226_v58 = vmul.f32 %v2009_v30, %v219_v54 }
 0x21f   :  { %v211_v52 = vsub.f32 1.5, %v210_v51 }
 0x220   :  { %v233_v60 = vadd.f32 %v2010_v39, %v226_v58 }
 0x221   :  { %v212_v55 = vmul.f32 %v2036_v42, %v211_v52 }
 0x223   :  { %v216_v56 = vsel %vm215_vm3, %v2036_v42, %v212_v55 }
 0x224   :  { %v220_v57 = vmul.f32 %v216_v56, %v2357_v53 }
 0x226   :  { %v227_v59 = vmul.f32 %v2009_v30, %v220_v57 }
 0x228   :  { %v234_v61 = vadd.f32 %v2010_v39, %v227_v59 }
 0x22a   :  { %v236_v62 = vpack.c.bf16 %v234_v61, %v233_v60 }
 0x22c   :  { %1913 = vmatmul.msk.bf16.vlgmr.msra.gmra.mxu2 %vm125_vm5, %v236_v62 }
 0x299   :  { %v262_v63 = vpop.f32.mrf.mxu1 }
 0x29a   :  { %v263_v2 = vadd.f32 %v2011_v0, %v262_v63 }
 0x2a1   :  { %v264_v1 = vpop.f32.mrf.mxu1 }
 0x2a2   :  { %v265_v48 = vadd.f32 %v2011_v0, %v264_v1 }
 0x2a4   :  { %v2393_v3 = vpack.c.bf16 %v265_v48, %v263_v2 }
 0x2a6   :  { %274 = vrot.lane.b32.xlu2 %v2393_v3, %s2194_s17 }
 0x2ae   :  { %319 = vrot.lane.b32.xlu2 %v2393_v3, %s2195_s18 }
 0x2af   :  { %v267_v53 = vpop.f32.mrf.mxu2 }
 0x2b0   :  { %v268_v5 = vadd.f32 %v2011_v0, %v267_v53 }
 0x2b7   :  { %v269_v4 = vpop.f32.mrf.mxu2 }
 0x2b8   :  { %v270_v6 = vadd.f32 %v2011_v0, %v269_v4 }
 0x2ba   :  { %v2399_v7 = vpack.c.bf16 %v270_v6, %v268_v5 }
 0x2bc   :  { %485 = vrot.lane.b32.xlu2 %v2399_v7, %s2196_s1 }
 0x2c4   :  { %483 = vrot.lane.b32.xlu2 %v2399_v7, %s2197_s19 }
 0x300   :  { %v275_v9 = vpop.permute.xlu2 %274 }
 0x301   :  { %v280_v11 = vsel %vm90_vm2, %v275_v9, 0 }
 0x302   :  { %289 = vmatpush.bf16.xpose.msrb.mxu2 %v280_v11 }
 0x308   :  { %v320_v12 = vpop.permute.xlu2 %319 }
 0x309   :  { %1914 = vmatmul.msk.bf16.vlgmr.msrb.gmra.mxu2 %vm90_vm2, %v2393_v3  ;;  %332 = vmatpush.bf16.msra.mxu3 %v320_v12 }
 0x316   :  { %v486_v13 = vpop.permute.xlu2 %485 }
 0x317   :  { %v491_v14 = vsel %vm90_vm2, %v486_v13, 0 }
 0x318   :  { %500 = vmatpush.bf16.xpose.msrb.mxu1 %v491_v14 }
 0x31e   :  { %v484_v15 = vpop.permute.xlu2 %483 }
 0x31f   :  { %1920 = vmatmul.msk.bf16.vlgmr.msrb.gmra.mxu1 %vm90_vm2, %v484_v15 }
 0x38c   :  { %v291_v20 = vpop.f32.mrf.mxu2 }
 0x38d   :  { %v292_v22 = vadd.f32 %v291_v20, %v2412_v18 }
 0x38f   :  { %v296_v24 = vsel %vm90_vm2, %v292_v22, -inf }
 0x390   :  { %297 = vmax.xlane.f32.xlu0 %v296_v24 }
 0x394   :  { %v293_v28 = vpop.f32.mrf.mxu2 }
 0x395   :  { %v294_v29 = vadd.f32 %v293_v28, %v2417_v26 }
 0x397   :  { %v299_v8 = vsel %vm90_vm2, %v294_v29, -inf }
 0x398   :  { %300 = vmax.xlane.f32.xlu1 %v299_v8 }
 0x39c   :  { %v502_v40 = vpop.f32.mrf.mxu1 }
 0x39d   :  { %v503_v41 = vadd.f32 %v502_v40, %v2412_v18 }
 0x39f   :  { %v507_v42 = vsel %vm90_vm2, %v503_v41, -inf }
 0x3a4   :  { %v504_v62 = vpop.f32.mrf.mxu1 }
 0x3a5   :  { %v505_v63 = vadd.f32 %v504_v62, %v2417_v26 }
 0x3a7   :  { %v510_v4 = vsel %vm90_vm2, %v505_v63, -inf }
 0x403   :  { %v298_v30 = vpop.xlane.xlu0 %297 }
 0x404   :  { %v302_v31 = vsub.f32 %v292_v22, %v298_v30 }
 0x406   :  { %v304_v32 = vmul.f32 1.442695, %v302_v31 }
 0x408   :  { %2037 = vpow2.f32 %v304_v32 }
 0x40b   :  { %v301_v33 = vpop.xlane.xlu1 %300 }
 0x40c   :  { %v303_v34 = vsub.f32 %v294_v29, %v301_v33 }
 0x40e   :  { %v2038_v36 = vpop.eup %2037  ;;  %v306_v37 = vmul.f32 1.442695, %v303_v34 }
 0x40f   :  { %v308_v39 = vsel %vm90_vm2, %v2038_v36, 0.0 }
 0x410   :  { %2039 = vpow2.f32 %v306_v37  ;;  %309 = vadd.xlane.f32.xlu0 %v308_v39 }
 0x416   :  { %v2040_v10 = vpop.eup %2039 }
 0x417   :  { %v311_v38 = vsel %vm90_vm2, %v2040_v10, 0.0 }
 0x418   :  { %312 = vadd.xlane.f32.xlu1 %v311_v38 }
 0x424   :  { %341 = vrot.lane.b32.xlu0 %v2393_v3, %s2196_s1 }
 0x42c   :  { %418 = vrot.lane.b32.xlu0 %v2399_v7, %s2194_s17 }
 0x431   :  { %339 = vrot.lane.b32.xlu1 %v2393_v3, %s2197_s19 }
 0x456   :  { %508 = vmax.xlane.f32.xlu0 %v507_v42 }
 0x483   :  { %v310_v44 = vpop.xlane.xlu0 %309 }
 0x484   :  { %2041 = vrcp.f32 %v310_v44 }
 0x48a   :  { %v2042_v46 = vpop.eup %2041 }
 0x48b   :  { %v313_v45 = vpop.xlane.xlu1 %312  ;;  %v316_v49 = vmul.f32 %v2042_v46, %v2038_v36 }
 0x48c   :  { %2043 = vrcp.f32 %v313_v45 }
 0x492   :  { %v2044_v47 = vpop.eup %2043 }
 0x493   :  { %v317_v50 = vmul.f32 %v2044_v47, %v2040_v10 }
 0x495   :  { %v318_v43 = vpack.c.bf16 %v317_v50, %v316_v49 }
 0x496   :  { %v342_v51 = vpop.permute.xlu0 %341 }
 0x497   :  { %1915 = vmatmul.msk.bf16.vlgmr.msra.gmra.mxu3 %vm90_vm2, %v318_v43  ;;  %v347_v52 = vsel %vm90_vm2, %v342_v51, 0 }
 0x498   :  { %356 = vmatpush.bf16.xpose.msrb.mxu3 %v347_v52 }
 0x49e   :  { %v419_v54 = vpop.permute.xlu0 %418 }
 0x49f   :  { %v424_v55 = vsel %vm90_vm2, %v419_v54, 0 }
 0x4a0   :  { %433 = vmatpush.bf16.xpose.msrb.mxu0 %v424_v55 }
 0x4a3   :  { %v340_v56 = vpop.permute.xlu1 %339 }
 0x4a7   :  { %1916 = vmatmul.msk.bf16.vlgmr.msrb.gmra.mxu3 %vm90_vm2, %v340_v56  ;;  %1918 = vmatmul.msk.bf16.vlgmr.msrb.gmra.mxu0 %vm90_vm2, %v2399_v7 }
 0x4c9   :  { %v509_v0 = vpop.xlane.xlu0 %508 }
 0x4ca   :  { %v513_v48 = vsub.f32 %v503_v41, %v509_v0 }
 0x4cc   :  { %v515_v6 = vmul.f32 1.442695, %v513_v48 }
 0x4ce   :  { %2045 = vpow2.f32 %v515_v6 }
 0x4d4   :  { %v2449_v12 = vpop.eup %2045 }
 0x4d5   :  { %v519_v13 = vsel %vm90_vm2, %v2449_v12, 0.0 }
 0x51a   :  { %v2437_v57 = vpop.f32.mrf.mxu3 }
 0x522   :  { %v2439_v58 = vpop.f32.mrf.mxu3 }
 0x524   :  { %v435_v5 = vpop.f32.mrf.mxu0 }
 0x525   :  { %v436_v9 = vadd.f32 %v435_v5, %v2412_v18 }
 0x527   :  { %v440_v11 = vsel %vm90_vm2, %v436_v9, -inf }
 0x52a   :  { %v358_v59 = vpop.f32.mrf.mxu3 }
 0x52b   :  { %v359_v60 = vadd.f32 %v358_v59, %v2412_v18 }
 0x52c   :  { %v437_v8 = vpop.f32.mrf.mxu0 }
 0x52d   :  { %v363_v61 = vsel %vm90_vm2, %v359_v60, -inf  ;;  %v438_v31 = vadd.f32 %v437_v8, %v2417_v26 }
 0x52e   :  { %364 = vmax.xlane.f32.xlu2 %v363_v61 }
 0x52f   :  { %v443_v37 = vsel %vm90_vm2, %v438_v31, -inf }
 0x532   :  { %v360_v1 = vpop.f32.mrf.mxu3 }
 0x533   :  { %v361_v2 = vadd.f32 %v360_v1, %v2417_v26 }
 0x535   :  { %v366_v53 = vsel %vm90_vm2, %v361_v2, -inf }
 0x536   :  { %367 = vmax.xlane.f32.xlu1 %v366_v53  ;;  %511 = vmax.xlane.f32.xlu2 %v510_v4 }
 0x53e   :  { %441 = vmax.xlane.f32.xlu2 %v440_v11  ;;  %v564_v11 = vld [vmem:[%s2998_s6 + $0x10] sm:$0xff] }
 0x546   :  { %520 = vadd.xlane.f32.xlu2 %v519_v13 }
 0x55e   :  { %530 = vrot.lane.b32.xlu2 %v2399_v7, %s2199_s20 }
 0x5a1   :  { %v365_v14 = vpop.xlane.xlu2 %364 }
 0x5a2   :  { %v369_v15 = vsub.f32 %v359_v60, %v365_v14 }
 0x5a4   :  { %v371_v16 = vmul.f32 1.442695, %v369_v15 }
 0x5a6   :  { %2047 = vpow2.f32 %v371_v16 }
 0x5a9   :  { %v368_v17 = vpop.xlane.xlu1 %367  ;;  %v512_v19 = vpop.xlane.xlu2 %511 }
 0x5aa   :  { %v370_v20 = vsub.f32 %v361_v2, %v368_v17  ;;  %v514_v28 = vsub.f32 %v505_v63, %v512_v19 }
 0x5ac   :  { %v2048_v22 = vpop.eup %2047  ;;  %v373_v24 = vmul.f32 1.442695, %v370_v20  ;;  %v517_v30 = vmul.f32 1.442695, %v514_v28 }
 0x5ad   :  { %v375_v29 = vsel %vm90_vm2, %v2048_v22, 0.0 }
 0x5ae   :  { %2049 = vpow2.f32 %v373_v24  ;;  %376 = vadd.xlane.f32.xlu1 %v375_v29  ;;  %v563_v24 = vld [vmem:[%s2998_s6 + $0x8] sm:$0xff] }
 0x5af   :  { %2051 = vpow2.f32 %v517_v30 }
 0x5b1   :  { %v442_v32 = vpop.xlane.xlu2 %441 }
 0x5b2   :  { %v446_v34 = vsub.f32 %v436_v9, %v442_v32 }
 0x5b4   :  { %v2050_v33 = vpop.eup %2049  ;;  %v448_v39 = vmul.f32 1.442695, %v446_v34 }
 0x5b5   :  { %v378_v36 = vsel %vm90_vm2, %v2050_v33, 0.0  ;;  %v2052_v10 = vpop.eup %2051 }
 0x5b6   :  { %379 = vadd.xlane.f32.xlu0 %v378_v36  ;;  %444 = vmax.xlane.f32.xlu1 %v443_v37  ;;  %2053 = vpow2.f32 %v448_v39  ;;  %v522_v38 = vsel %vm90_vm2, %v2052_v10, 0.0 }
 0x5b9   :  { %v521_v49 = vpop.xlane.xlu2 %520 }
 0x5bc   :  { %v2054_v40 = vpop.eup %2053 }
 0x5bd   :  { %v452_v41 = vsel %vm90_vm2, %v2054_v40, 0.0 }
 0x5be   :  { %523 = vadd.xlane.f32.xlu1 %v522_v38 }
 0x5c1   :  { %v531_v56 = vpop.permute.xlu2 %530 }
 0x5c6   :  { %453 = vadd.xlane.f32.xlu1 %v452_v41 }
 0x5ca   :  { %386 = vrot.lane.b32.xlu0 %v2393_v3, %s2199_s20 }
 0x5df   :  { %463 = vrot.lane.b32.xlu1 %v2399_v7, %s2195_s18 }
 0x621   :  { %v377_v42 = vpop.xlane.xlu1 %376 }
 0x629   :  { %v445_v44 = vpop.xlane.xlu1 %444  ;;  %v380_v47 = vpop.xlane.xlu0 %379 }
 0x62a   :  { %v447_v45 = vsub.f32 %v438_v31, %v445_v44 }
 0x62c   :  { %v450_v46 = vmul.f32 1.442695, %v447_v45 }
 0x62e   :  { %2055 = vpow2.f32 %v450_v46 }
 0x62f   :  { %2057 = vrcp.f32 %v380_v47 }
 0x630   :  { %2059 = vrcp.f32 %v377_v42 }
 0x631   :  { %v524_v59 = vpop.xlane.xlu1 %523 }
 0x632   :  { %2061 = vrcp.f32 %v524_v59 }
 0x633   :  { %2063 = vrcp.f32 %v521_v49 }
 0x634   :  { %v2056_v50 = vpop.eup %2055 }
 0x635   :  { %v455_v43 = vsel %vm90_vm2, %v2056_v50, 0.0  ;;  %v2058_v51 = vpop.eup %2057 }
 0x636   :  { %456 = vadd.xlane.f32.xlu0 %v455_v43  ;;  %v2060_v52 = vpop.eup %2059  ;;  %v384_v54 = vmul.f32 %v2058_v51, %v2050_v33 }
 0x637   :  { %v383_v3 = vmul.f32 %v2060_v52, %v2048_v22  ;;  %v562_v22 = vld [vmem:[%s2998_s6] sm:$0xff] }
 0x638   :  { %v2062_v60 = vpop.eup %2061  ;;  %v566_v28 = vpack.c.bf16 %v563_v24, %v562_v22 }
 0x639   :  { %v385_v7 = vpack.c.bf16 %v384_v54, %v383_v3  ;;  %v2064_v61 = vpop.eup %2063  ;;  %v454_v62 = vpop.xlane.xlu1 %453  ;;  %v528_v63 = vmul.f32 %v2062_v60, %v2052_v10 }
 0x63a   :  { %v527_v0 = vmul.f32 %v2064_v61, %v2449_v12  ;;  %2065 = vrcp.f32 %v454_v62  ;;  %v565_v12 = vld [vmem:[%s2998_s6 + $0x18] sm:$0xff] }
 0x63b   :  { %v567_v13 = vpack.c.bf16 %v565_v12, %v564_v11 }
 0x63c   :  { %v387_v55 = vpop.permute.xlu0 %386  ;;  %v529_v1 = vpack.c.bf16 %v528_v63, %v527_v0 }
 0x63d   :  { %399 = vmatpush.bf16.msra.mxu2 %v387_v55  ;;  %584 = vmatpush.bf16.msra.mxu0 %v567_v13  ;;  %v709_v13 = vld [vmem:[%s3002_s10 + $0x10] sm:$0xff] }
 0x640   :  { %1917 = vmatmul.msk.bf16.vlgmr.msra.gmra.mxu2 %vm90_vm2, %v385_v7  ;;  %v2066_v53 = vpop.eup %2065 }
 0x641   :  { %543 = vmatpush.bf16.msrb.mxu2 %v531_v56  ;;  %v460_v5 = vmul.f32 %v2066_v53, %v2054_v40  ;;  %585 = vmatpush.bf16.msra.mxu0 %v566_v28 }
 0x650   :  { %1921 = vmatmul.msk.bf16.vlgmr.msrb.gmra.mxu2 %vm90_vm2, %v529_v1 }
 0x651   :  { %v464_v2 = vpop.permute.xlu1 %463 }
 0x652   :  { %476 = vmatpush.bf16.msra.mxu3 %v464_v2 }
 0x6a9   :  { %v457_v48 = vpop.xlane.xlu0 %456 }
 0x6aa   :  { %2067 = vrcp.f32 %v457_v48 }
 0x6b0   :  { %v2068_v4 = vpop.eup %2067 }
 0x6b1   :  { %v461_v6 = vmul.f32 %v2068_v4, %v2056_v50 }
 0x6b3   :  { %v462_v9 = vpack.c.bf16 %v461_v6, %v460_v5 }
 0x6b5   :  { %1919 = vmatmul.msk.bf16.vlgmr.msra.gmra.mxu3 %vm90_vm2, %v462_v9 }
 0x6c3   :  { %v401_v14 = vpop.f32.mrf.mxu2 }
 0x6cb   :  { %v403_v15 = vpop.f32.mrf.mxu2 }
 0x6cc   :  { %v1989_v16 = vpack.i.bf16 %v403_v15, %v401_v14  ;;  %v710_v14 = vld [vmem:[%s3002_s10 + $0x18] sm:$0xff] }
 0x6cd   :  { %v712_v15 = vpack.c.bf16 %v710_v14, %v709_v13 }
 0x6ce   :  { %1990 = vrot.lane.b32.xlu2 %v1989_v16, %s2200_s25 }
 0x6cf   :  { %729 = vmatpush.bf16.msrb.mxu3 %v712_v15 }
 0x6d3   :  { %v545_v17 = vpop.f32.mrf.mxu2 }
 0x6db   :  { %v547_v19 = vpop.f32.mrf.mxu2 }
 0x6dc   :  { %v1994_v20 = vpack.i.bf16 %v547_v19, %v545_v17  ;;  %v707_v19 = vld [vmem:[%s3002_s10] sm:$0xff] }
 0x6de   :  { %1995 = vrot.lane.b32.xlu2 %v1994_v20, %s2200_s25  ;;  %v708_v20 = vld [vmem:[%s3002_s10 + $0x8] sm:$0xff] }
 0x6df   :  { %v711_v24 = vpack.c.bf16 %v708_v20, %v707_v19 }
 0x6e1   :  { %730 = vmatpush.bf16.msrb.mxu3 %v711_v24 }
 0x728   :  { %v1991_v29 = vpop.permute.xlu2 %1990 }
 0x729   :  { %v1993_v8 = vunpack.i.h.bf16 %v1991_v29  ;;  %v1992_v30 = vunpack.i.l.bf16 %v1991_v29 }
 0x72b   :  { %v415_v31 = vsel %vm90_vm2, %v2439_v58, %v1993_v8  ;;  %v414_v32 = vsel %vm90_vm2, %v2437_v57, %v1992_v30  ;;  %v2012_v58 = vld [vmem:[%s2999_s7] ss:$0 sm:$0xff] }
 0x72c   :  { %v560_v33 = vpack.c.bf16 %v415_v31, %v414_v32 }
 0x72e   :  { %1922 = vmatmul.msk.bf16.vlgmr.msra.gmra.mxu0 %vm125_vm5, %v560_v33 }
 0x738   :  { %v478_v34 = vpop.f32.mrf.mxu3  ;;  %v1996_v36 = vpop.permute.xlu2 %1995 }
 0x739   :  { %v1997_v37 = vunpack.i.l.bf16 %v1996_v36  ;;  %v1998_v39 = vunpack.i.h.bf16 %v1996_v36 }
 0x73b   :  { %v558_v38 = vsel %vm90_vm2, %v478_v34, %v1997_v37 }
 0x740   :  { %v480_v10 = vpop.f32.mrf.mxu3 }
 0x741   :  { %v559_v40 = vsel %vm90_vm2, %v480_v10, %v1998_v39 }
 0x742   :  { %v561_v41 = vpack.c.bf16 %v559_v40, %v558_v38 }
 0x744   :  { %1923 = vmatmul.msk.bf16.gmra.mxu0 %vm125_vm5, %v561_v41 }
 0x7ab   :  { %v587_v57 = vpop.f32.mrf.mxu0 }
 0x7ac   :  { %v588_v42 = vadd.f32 %v2012_v58, %v587_v57 }
 0x7ae   :  { %v2496_v44 = vadd.f32 %v588_v42, %v2316_v21 }
 0x7b0   :  { %v603_v45 = vsel %vm125_vm5, %v2496_v44, 0.0 }
 0x7b1   :  { %604 = vadd.xlane.f32.xlu1 %v603_v45  ;;  %v2013_v45 = vld [vmem:[%s3000_s8] ss:$0 sm:$0xff] }
 0x7b3   :  { %v589_v46 = vpop.f32.mrf.mxu0 }
 0x7b4   :  { %v590_v47 = vadd.f32 %v2012_v58, %v589_v46 }
 0x7b6   :  { %v2501_v49 = vadd.f32 %v590_v47, %v2320_v23 }
 0x7b8   :  { %v606_v50 = vsel %vm125_vm5, %v2501_v49, 0.0 }
 0x7b9   :  { %607 = vadd.xlane.f32.xlu2 %v606_v50 }
 0x7c1   :  { %v592_v43 = vpop.f32.mrf.mxu0 }
 0x7c2   :  { %v593_v51 = vadd.f32 %v2012_v58, %v592_v43 }
 0x7c4   :  { %v2506_v52 = vadd.f32 %v593_v51, %v2324_v25  ;;  %v2014_v51 = vld [vmem:[%s3001_s9] ss:$0 sm:$0xff] }
 0x7c6   :  { %v609_v21 = vsel %vm125_vm5, %v2506_v52, 0.0 }
 0x7c7   :  { %610 = vadd.xlane.f32.xlu0 %v609_v21 }
 0x7c9   :  { %v594_v54 = vpop.f32.mrf.mxu0 }
 0x7ca   :  { %v595_v3 = vadd.f32 %v2012_v58, %v594_v54 }
 0x7cc   :  { %v2511_v55 = vadd.f32 %v595_v3, %v2328_v27 }
 0x7ce   :  { %v612_v23 = vsel %vm125_vm5, %v2511_v55, 0.0 }
 0x7cf   :  { %613 = vadd.xlane.f32.xlu0 %v612_v23 }
 0x824   :  { %v605_v56 = vpop.xlane.xlu1 %604 }
 0x825   :  { %v615_v7 = vmul.f32 %v605_v56, %v2332_v35 }
 0x827   :  { %v619_v59 = vsub.f32 %v2496_v44, %v615_v7 }
 0x829   :  { %v623_v25 = vmul.f32 %v619_v59, %v619_v59 }
 0x82b   :  { %v627_v60 = vsel %vm125_vm5, %v623_v25, 0.0 }
 0x82c   :  { %v608_v61 = vpop.xlane.xlu2 %607  ;;  %628 = vadd.xlane.f32.xlu0 %v627_v60 }
 0x82d   :  { %v616_v62 = vmul.f32 %v608_v61, %v2332_v35 }
 0x82f   :  { %v620_v63 = vsub.f32 %v2501_v49, %v616_v62 }
 0x831   :  { %v624_v27 = vmul.f32 %v620_v63, %v620_v63 }
 0x833   :  { %v630_v0 = vsel %vm125_vm5, %v624_v27, 0.0 }
 0x834   :  { %631 = vadd.xlane.f32.xlu0 %v630_v0 }
 0x83a   :  { %v611_v1 = vpop.xlane.xlu0 %610 }
 0x83b   :  { %v617_v2 = vmul.f32 %v611_v1, %v2332_v35 }
 0x83d   :  { %v2523_v48 = vsub.f32 %v2506_v52, %v617_v2 }
 0x83f   :  { %v625_v53 = vmul.f32 %v2523_v48, %v2523_v48 }
 0x841   :  { %v633_v4 = vsel %vm125_vm5, %v625_v53, 0.0 }
 0x842   :  { %v614_v5 = vpop.xlane.xlu0 %613  ;;  %634 = vadd.xlane.f32.xlu1 %v633_v4 }
 0x843   :  { %v618_v6 = vmul.f32 %v614_v5, %v2332_v35 }
 0x845   :  { %v2530_v9 = vsub.f32 %v2511_v55, %v618_v6 }
 0x847   :  { %v626_v11 = vmul.f32 %v2530_v9, %v2530_v9 }
 0x849   :  { %v636_v12 = vsel %vm125_vm5, %v626_v11, 0.0 }
 0x84a   :  { %637 = vadd.xlane.f32.xlu2 %v636_v12 }
 0x89f   :  { %v629_v16 = vpop.xlane.xlu0 %628 }
 0x8a0   :  { %v639_v17 = vmul.f32 %v629_v16, %v2332_v35 }
 0x8a2   :  { %v643_v22 = vadd.f32 1e-05, %v639_v17 }
 0x8a4   :  { %2069 = vrsqrt.f32 %v643_v22  ;;  %vm653_vm8 = vweird.f32 %v643_v22 }
 0x8a7   :  { %v632_v28 = vpop.xlane.xlu0 %631 }
 0x8a8   :  { %v640_v29 = vmul.f32 %v632_v28, %v2332_v35 }
 0x8aa   :  { %v2070_v8 = vpop.eup %2069  ;;  %v644_v30 = vadd.f32 1e-05, %v640_v29 }
 0x8ab   :  { %v648_v31 = vmul.f32 %v2070_v8, %v643_v22  ;;  %vm654_vm7 = vweird.f32 %v2070_v8  ;;  %v2015_v22 = vld [vmem:[%s3003_s11] ss:$0 sm:$0xff] }
 0x8ac   :  { %2071 = vrsqrt.f32 %v644_v30  ;;  %vm655_vm9 = vmor %vm653_vm8, %vm654_vm7  ;;  %vm663_vm11 = vweird.f32 %v644_v30 }
 0x8ad   :  { %v649_v32 = vmul.f32 %v2070_v8, %v648_v31 }
 0x8af   :  { %v650_v33 = vmul.f32 0.5, %v649_v32 }
 0x8b1   :  { %v651_v34 = vsub.f32 1.5, %v650_v33 }
 0x8b2   :  { %v2072_v36 = vpop.eup %2071 }
 0x8b3   :  { %v652_v37 = vmul.f32 %v2070_v8, %v651_v34  ;;  %v658_v39 = vmul.f32 %v2072_v36, %v644_v30  ;;  %vm664_vm10 = vweird.f32 %v2072_v36 }
 0x8b4   :  { %vm665_vm12 = vmor %vm663_vm11, %vm664_vm10 }
 0x8b5   :  { %v659_v10 = vmul.f32 %v2072_v36, %v658_v39  ;;  %v635_v38 = vpop.xlane.xlu1 %634  ;;  %v656_v41 = vsel %vm655_vm9, %v2070_v8, %v652_v37 }
 0x8b6   :  { %v641_v40 = vmul.f32 %v635_v38, %v2332_v35  ;;  %v687_v46 = vmul.f32 %v656_v41, %v619_v59  ;;  %v910_v38 = vld [vmem:[%s3004_s12 + $0x30] sm:$0xff] }
 0x8b7   :  { %v660_v58 = vmul.f32 0.5, %v659_v10 }
 0x8b8   :  { %v645_v57 = vadd.f32 1e-05, %v641_v40  ;;  %v694_v21 = vmul.f32 %v2013_v45, %v687_v46  ;;  %v911_v40 = vld [vmem:[%s3004_s12 + $0x38] sm:$0xff] }
 0x8b9   :  { %v661_v42 = vsub.f32 1.5, %v660_v58  ;;  %v915_v58 = vpack.c.bf16 %v911_v40, %v910_v38 }
 0x8ba   :  { %2073 = vrsqrt.f32 %v645_v57  ;;  %v701_v60 = vadd.f32 %v2014_v51, %v694_v21  ;;  %vm673_vm14 = vweird.f32 %v645_v57 }
 0x8bb   :  { %v662_v47 = vmul.f32 %v2072_v36, %v661_v42  ;;  %931 = vmatpush.bf16.msra.mxu1 %v915_v58 }
 0x8bd   :  { %v666_v50 = vsel %vm665_vm12, %v2072_v36, %v662_v47  ;;  %v638_v43 = vpop.xlane.xlu2 %637 }
 0x8be   :  { %v688_v54 = vmul.f32 %v666_v50, %v620_v63  ;;  %v642_v3 = vmul.f32 %v638_v43, %v2332_v35  ;;  %v908_v50 = vld [vmem:[%s3004_s12 + $0x20] sm:$0xff]  ;;  %v909_v43 = vld [vmem:[%s3004_s12 + $0x28] sm:$0xff] }
 0x8c0   :  { %v2074_v23 = vpop.eup %2073  ;;  %v695_v56 = vmul.f32 %v2013_v45, %v688_v54  ;;  %v646_v7 = vadd.f32 1e-05, %v642_v3  ;;  %v914_v54 = vpack.c.bf16 %v909_v43, %v908_v50 }
 0x8c1   :  { %v668_v25 = vmul.f32 %v2074_v23, %v645_v57  ;;  %vm674_vm13 = vweird.f32 %v2074_v23 }
 0x8c2   :  { %v702_v59 = vadd.f32 %v2014_v51, %v695_v56  ;;  %2075 = vrsqrt.f32 %v646_v7  ;;  %vm675_vm15 = vmor %vm673_vm14, %vm674_vm13  ;;  %vm683_vm1 = vweird.f32 %v646_v7  ;;  %932 = vmatpush.bf16.msra.mxu1 %v914_v54 }
 0x8c3   :  { %v669_v61 = vmul.f32 %v2074_v23, %v668_v25 }
 0x8c4   :  { %v705_v62 = vpack.c.bf16 %v702_v59, %v701_v60 }
 0x8c5   :  { %v670_v27 = vmul.f32 0.5, %v669_v61  ;;  %v906_v61 = vld [vmem:[%s3004_s12 + $0x10] sm:$0xff] }
 0x8c6   :  { %1924 = vmatmul.msk.bf16.vlgmr.msrb.gmra.mxu3 %vm125_vm5, %v705_v62  ;;  %v907_v62 = vld [vmem:[%s3004_s12 + $0x18] sm:$0xff] }
 0x8c7   :  { %v671_v0 = vsub.f32 1.5, %v670_v27 }
 0x8c8   :  { %v2076_v1 = vpop.eup %2075 }
 0x8c9   :  { %v672_v2 = vmul.f32 %v2074_v23, %v671_v0  ;;  %v678_v53 = vmul.f32 %v2076_v1, %v646_v7  ;;  %vm684_vm0 = vweird.f32 %v2076_v1 }
 0x8ca   :  { %vm685_vm3 = vmor %vm683_vm1, %vm684_vm0 }
 0x8cb   :  { %v679_v63 = vmul.f32 %v2076_v1, %v678_v53  ;;  %v676_v4 = vsel %vm675_vm15, %v2074_v23, %v672_v2 }
 0x8cc   :  { %v689_v11 = vmul.f32 %v676_v4, %v2523_v48 }
 0x8cd   :  { %v680_v5 = vmul.f32 0.5, %v679_v63 }
 0x8ce   :  { %v696_v15 = vmul.f32 %v2013_v45, %v689_v11 }
 0x8cf   :  { %v681_v6 = vsub.f32 1.5, %v680_v5 }
 0x8d0   :  { %v703_v17 = vadd.f32 %v2014_v51, %v696_v15  ;;  %v905_v15 = vld [vmem:[%s3004_s12 + $0x8] sm:$0xff] }
 0x8d1   :  { %v682_v12 = vmul.f32 %v2076_v1, %v681_v6 }
 0x8d3   :  { %v686_v13 = vsel %vm685_vm3, %v2076_v1, %v682_v12  ;;  %v913_v1 = vpack.c.bf16 %v907_v62, %v906_v61 }
 0x8d4   :  { %v690_v14 = vmul.f32 %v686_v13, %v2530_v9 }
 0x8d5   :  { %933 = vmatpush.bf16.msra.mxu1 %v913_v1 }
 0x8d6   :  { %v697_v16 = vmul.f32 %v2013_v45, %v690_v14  ;;  %v904_v14 = vld [vmem:[%s3004_s12] sm:$0xff] }
 0x8d8   :  { %v704_v19 = vadd.f32 %v2014_v51, %v697_v16 }
 0x8da   :  { %v706_v20 = vpack.c.bf16 %v704_v19, %v703_v17 }
 0x8dc   :  { %1925 = vmatmul.msk.bf16.gmra.mxu3 %vm125_vm5, %v706_v20 }
 0x949   :  { %v732_v24 = vpop.f32.mrf.mxu3 }
 0x94a   :  { %v2564_v28 = vadd.f32 %v2015_v22, %v732_v24 }
 0x94c   :  { %v2567_v48 = vmul.f32 0.70710677, %v2564_v28 }
 0x94e   :  { %v750_v29 = vand.u32 2147483647, %v2567_v48  ;;  %vm882_vm3 = vcmp.ge.f32.partialorder %v2567_v48, 0.0 }
 0x950   :  { %v754_v9 = vmul.f32 0.3275911, %v750_v29  ;;  %v858_v56 = vsub.f32 0.0, %v750_v29 }
 0x951   :  { %v734_v8 = vpop.f32.mrf.mxu3 }
 0x952   :  { %v758_v30 = vadd.f32 1.0, %v754_v9  ;;  %v2570_v31 = vadd.f32 %v2015_v22, %v734_v8  ;;  %v862_v53 = vmul.f32 %v858_v56, %v750_v29  ;;  %v912_v9 = vpack.c.bf16 %v905_v15, %v904_v14 }
 0x954   :  { %2077 = vrcp.f32 %v758_v30  ;;  %v2573_v32 = vmul.f32 0.70710677, %v2570_v31  ;;  %v773_v41 = vand.u32 2147483648, %v758_v30  ;;  %v771_v42 = vand.u32 2147483647, %v758_v30  ;;  %934 = vmatpush.bf16.msra.mxu1 %v912_v9 }
 0x955   :  { %vm767_vm6 = vweird.f32 %v758_v30  ;;  %v866_v19 = vmul.f32 1.442695, %v862_v53 }
 0x956   :  { %v2576_v33 = vand.u32 2147483647, %v2573_v32  ;;  %v774_v51 = vor.u32 1.1754944e-38, %v773_v41  ;;  %vm772_vm8 = vcmp.eq.f32.partialorder %v771_v42, 8.507059e+37 }
 0x958   :  { %v755_v34 = vmul.f32 0.3275911, %v2576_v33 }
 0x95a   :  { %v2078_v36 = vpop.eup %2077  ;;  %v759_v39 = vadd.f32 1.0, %v755_v34 }
 0x95b   :  { %v763_v37 = vmul.f32 %v2078_v36, %v758_v30  ;;  %vm768_vm4 = vweird.f32 %v2078_v36 }
 0x95c   :  { %2079 = vrcp.f32 %v759_v39  ;;  %vm769_vm7 = vmor %vm767_vm6, %vm768_vm4  ;;  %v786_v63 = vand.u32 2147483647, %v759_v39  ;;  %v788_v4 = vand.u32 2147483648, %v759_v39  ;;  %vm782_vm10 = vweird.f32 %v759_v39 }
 0x95d   :  { %v764_v10 = vsub.f32 1.0, %v763_v37 }
 0x95e   :  { %v789_v20 = vor.u32 1.1754944e-38, %v788_v4  ;;  %vm787_vm12 = vcmp.eq.f32.partialorder %v786_v63, 8.507059e+37 }
 0x95f   :  { %v765_v57 = vmul.f32 %v2078_v36, %v764_v10  ;;  %v737_v45 = vpop.f32.mrf.mxu3 }
 0x960   :  { %v2585_v46 = vadd.f32 %v2015_v22, %v737_v45 }
 0x961   :  { %v766_v47 = vadd.f32 %v2078_v36, %v765_v57 }
 0x962   :  { %v2594_v21 = vmul.f32 0.70710677, %v2585_v46  ;;  %v2080_v3 = vpop.eup %2079 }
 0x963   :  { %v770_v23 = vsel %vm769_vm7, %v2078_v36, %v766_v47  ;;  %v778_v25 = vmul.f32 %v2080_v3, %v759_v39  ;;  %vm783_vm9 = vweird.f32 %v2080_v3 }
 0x964   :  { %v775_v7 = vsel %vm772_vm8, %v774_v51, %v770_v23  ;;  %v2597_v60 = vand.u32 2147483647, %v2594_v21  ;;  %vm784_vm11 = vmor %vm782_vm10, %vm783_vm9  ;;  %vm883_vm8 = vcmp.ge.f32.partialorder %v2573_v32, 0.0  ;;  %vm920_vm9 = vcmask 523264  }
 0x965   :  { %v822_v59 = vmul.f32 1.0614054, %v775_v7  ;;  %v779_v27 = vsub.f32 1.0, %v778_v25  ;;  %vm884_vm10 = vcmp.ge.f32.partialorder %v2594_v21, 0.0  ;;  %v2016_v21 = vld [vmem:[%s3005_s13] ss:$0 sm:$0xff] }
 0x966   :  { %v756_v0 = vmul.f32 0.3275911, %v2597_v60 }
 0x967   :  { %v826_v2 = vadd.f32 -1.4531521, %v822_v59  ;;  %v739_v5 = vpop.f32.mrf.mxu3  ;;  %v780_v6 = vmul.f32 %v2080_v3, %v779_v27 }
 0x968   :  { %v760_v11 = vadd.f32 1.0, %v756_v0  ;;  %v2606_v12 = vadd.f32 %v2015_v22, %v739_v5  ;;  %v859_v22 = vsub.f32 0.0, %v2576_v33 }
 0x969   :  { %v830_v13 = vmul.f32 %v826_v2, %v775_v7  ;;  %v781_v16 = vadd.f32 %v2080_v3, %v780_v6 }
 0x96a   :  { %2081 = vrcp.f32 %v760_v11  ;;  %v2616_v29 = vmul.f32 0.70710677, %v2606_v12  ;;  %v863_v38 = vmul.f32 %v859_v22, %v2576_v33  ;;  %v803_v51 = vand.u32 2147483648, %v760_v11 }
 0x96b   :  { %v834_v17 = vadd.f32 1.4214138, %v830_v13  ;;  %v785_v24 = vsel %vm784_vm11, %v2080_v3, %v781_v16  ;;  %2083 = vpow2.f32 %v866_v19  ;;  %v801_v23 = vand.u32 2147483647, %v760_v11 }
 0x96c   :  { %v790_v30 = vsel %vm787_vm12, %v789_v20, %v785_v24  ;;  %v2619_v36 = vand.u32 2147483647, %v2616_v29  ;;  %v868_v43 = vmul.f32 1.442695, %v863_v38  ;;  %vm797_vm14 = vweird.f32 %v760_v11 }
 0x96d   :  { %v838_v8 = vmul.f32 %v834_v17, %v775_v7  ;;  %v823_v34 = vmul.f32 1.0614054, %v790_v30  ;;  %v804_v62 = vor.u32 1.1754944e-38, %v803_v51  ;;  %vm802_vm0 = vcmp.eq.f32.partialorder %v801_v23, 8.507059e+37 }
 0x96e   :  { %v757_v40 = vmul.f32 0.3275911, %v2619_v36  ;;  %vm885_vm11 = vcmp.ge.f32.partialorder %v2616_v29, 0.0 }
 0x96f   :  { %v842_v37 = vadd.f32 -0.28449672, %v838_v8  ;;  %v827_v10 = vadd.f32 -1.4531521, %v823_v34 }
 0x970   :  { %v2082_v39 = vpop.eup %2081  ;;  %v761_v42 = vadd.f32 1.0, %v757_v40 }
 0x971   :  { %v846_v41 = vmul.f32 %v842_v37, %v775_v7  ;;  %v793_v58 = vmul.f32 %v2082_v39, %v760_v11  ;;  %v831_v57 = vmul.f32 %v827_v10, %v790_v30  ;;  %vm798_vm13 = vweird.f32 %v2082_v39  ;;  %v2084_v56 = vpop.eup %2083 }
 0x972   :  { %2085 = vrcp.f32 %v761_v42  ;;  %vm799_vm15 = vmor %vm797_vm14, %vm798_vm13  ;;  %v818_v16 = vand.u32 2147483648, %v761_v42  ;;  %v816_v22 = vand.u32 2147483647, %v761_v42  ;;  %vm812_vm4 = vweird.f32 %v761_v42 }
 0x973   :  { %v850_v45 = vadd.f32 0.2548296, %v846_v41  ;;  %v794_v47 = vsub.f32 1.0, %v793_v58  ;;  %v835_v50 = vadd.f32 1.4214138, %v831_v57  ;;  %2087 = vpow2.f32 %v868_v43 }
 0x974   :  { %v819_v10 = vor.u32 1.1754944e-38, %v818_v16  ;;  %vm817_vm7 = vcmp.eq.f32.partialorder %v816_v22, 8.507059e+37  ;;  %v861_v41 = vsub.f32 0.0, %v2619_v36 }
 0x975   :  { %v854_v54 = vmul.f32 %v850_v45, %v775_v7  ;;  %v795_v3 = vmul.f32 %v2082_v39, %v794_v47  ;;  %v839_v25 = vmul.f32 %v835_v50, %v790_v30  ;;  %v860_v7 = vsub.f32 0.0, %v2597_v60 }
 0x976   :  { %v742_v45 = vmul.f32 0.5, %v2564_v28  ;;  %v743_v47 = vmul.f32 0.5, %v2570_v31 }
 0x977   :  { %v874_v59 = vmul.f32 %v2084_v56, %v854_v54  ;;  %v796_v33 = vadd.f32 %v2082_v39, %v795_v3  ;;  %v843_v61 = vadd.f32 -0.28449672, %v839_v25  ;;  %v864_v11 = vmul.f32 %v860_v7, %v2597_v60 }
 0x978   :  { %v2086_v0 = vpop.eup %2085  ;;  %v865_v54 = vmul.f32 %v861_v41, %v2619_v36 }
 0x979   :  { %v800_v27 = vsel %vm799_vm15, %v2082_v39, %v796_v33  ;;  %v878_v1 = vsub.f32 1.0, %v874_v59  ;;  %v847_v2 = vmul.f32 %v843_v61, %v790_v30  ;;  %v808_v4 = vmul.f32 %v2086_v0, %v761_v42  ;;  %v2088_v17 = vpop.eup %2087 }
 0x97a   :  { %v805_v53 = vsel %vm802_vm0, %v804_v62, %v800_v27  ;;  %vm813_vm1 = vweird.f32 %v2086_v0  ;;  %v870_v39 = vmul.f32 1.442695, %v864_v11  ;;  %v872_v62 = vmul.f32 1.442695, %v865_v54 }
 0x97b   :  { %v824_v63 = vmul.f32 1.0614054, %v805_v53  ;;  %v851_v5 = vadd.f32 0.2548296, %v847_v2  ;;  %v809_v13 = vsub.f32 1.0, %v808_v4  ;;  %v886_v14 = vsub.f32 0.0, %v878_v1  ;;  %vm814_vm6 = vmor %vm812_vm4, %vm813_vm1 }
 0x97c   :  { %2089 = vpow2.f32 %v870_v39  ;;  %v745_v11 = vmul.f32 0.5, %v2606_v12 }
 0x97d   :  { %v828_v6 = vadd.f32 -1.4531521, %v824_v63  ;;  %v855_v15 = vmul.f32 %v851_v5, %v790_v30  ;;  %v810_v20 = vmul.f32 %v2086_v0, %v809_v13  ;;  %v890_v34 = vsel %vm882_vm3, %v878_v1, %v886_v14 }
 0x97e   :  { %v894_v58 = vadd.f32 1.0, %v890_v34  ;;  %2091 = vpow2.f32 %v872_v62 }
 0x97f   :  { %v832_v19 = vmul.f32 %v828_v6, %v805_v53  ;;  %v875_v24 = vmul.f32 %v2088_v17, %v855_v15  ;;  %v811_v8 = vadd.f32 %v2086_v0, %v810_v20  ;;  %v744_v15 = vmul.f32 0.5, %v2585_v46 }
 0x980   :  { %v898_v3 = vmul.f32 %v894_v58, %v742_v45 }
 0x981   :  { %v836_v9 = vadd.f32 1.4214138, %v832_v19  ;;  %v879_v37 = vsub.f32 1.0, %v875_v24  ;;  %v815_v38 = vsel %vm814_vm6, %v2086_v0, %v811_v8 }
 0x982   :  { %v820_v40 = vsel %vm817_vm7, %v819_v10, %v815_v38  ;;  %v2090_v61 = vpop.eup %2089 }
 0x983   :  { %v840_v30 = vmul.f32 %v836_v9, %v805_v53  ;;  %v887_v60 = vsub.f32 0.0, %v879_v37  ;;  %v825_v48 = vmul.f32 1.0614054, %v820_v40 }
 0x984   :  { %v2092_v63 = vpop.eup %2091 }
 0x985   :  { %v844_v57 = vadd.f32 -0.28449672, %v840_v30  ;;  %v891_v42 = vsel %vm883_vm8, %v879_v37, %v887_v60  ;;  %v829_v51 = vadd.f32 -1.4531521, %v825_v48 }
 0x986   :  { %v895_v50 = vadd.f32 1.0, %v891_v42 }
 0x987   :  { %v848_v43 = vmul.f32 %v844_v57, %v805_v53  ;;  %v833_v25 = vmul.f32 %v829_v51, %v820_v40 }
 0x988   :  { %v899_v23 = vmul.f32 %v895_v50, %v743_v47 }
 0x989   :  { %v852_v56 = vadd.f32 0.2548296, %v848_v43  ;;  %v837_v33 = vadd.f32 1.4214138, %v833_v25 }
 0x98a   :  { %v902_v59 = vpack.c.bf16 %v899_v23, %v898_v3 }
 0x98b   :  { %v856_v32 = vmul.f32 %v852_v56, %v805_v53  ;;  %v841_v27 = vmul.f32 %v837_v33, %v820_v40  ;;  %v1932_v33 = vld [vmem:[%s2996_s4 + $0x30] sm:$0xff] }
 0x98c   :  { %1926 = vmatmul.msk.bf16.vlgmr.msra.gmra.mxu1 %vm920_vm9, %v902_v59 }
 0x98d   :  { %v876_v28 = vmul.f32 %v2090_v61, %v856_v32  ;;  %v845_v31 = vadd.f32 -0.28449672, %v841_v27  ;;  %v1933_v61 = vld [vmem:[%s2996_s4 + $0x38] sm:$0xff] }
 0x98f   :  { %v880_v0 = vsub.f32 1.0, %v876_v28  ;;  %v849_v1 = vmul.f32 %v845_v31, %v820_v40  ;;  %v1064_v28 = vpack.c.bf16 %v1933_v61, %v1932_v33 }
 0x991   :  { %v853_v2 = vadd.f32 0.2548296, %v849_v1  ;;  %v888_v36 = vsub.f32 0.0, %v880_v0  ;;  %1082 = vmatpush.bf16.msra.mxu2 %v1064_v28  ;;  %v1931_v1 = vld [vmem:[%s2996_s4 + $0x28] sm:$0xff] }
 0x993   :  { %v857_v7 = vmul.f32 %v853_v2, %v820_v40  ;;  %v892_v5 = vsel %vm884_vm10, %v880_v0, %v888_v36  ;;  %v1930_v0 = vld [vmem:[%s2996_s4 + $0x20] sm:$0xff] }
 0x994   :  { %v896_v13 = vadd.f32 1.0, %v892_v5  ;;  %v1063_v2 = vpack.c.bf16 %v1931_v1, %v1930_v0 }
 0x995   :  { %v877_v4 = vmul.f32 %v2092_v63, %v857_v7 }
 0x996   :  { %v900_v17 = vmul.f32 %v896_v13, %v744_v15  ;;  %1083 = vmatpush.bf16.msra.mxu2 %v1063_v2  ;;  %v2019_v2 = vld [vmem:[%s2997_s5 + $0x1] ss:$0 sm:$0xff] }
 0x997   :  { %v881_v53 = vsub.f32 1.0, %v877_v4 }
 0x999   :  { %v889_v6 = vsub.f32 0.0, %v881_v53 }
 0x99b   :  { %v893_v14 = vsel %vm885_vm11, %v881_v53, %v889_v6 }
 0x99c   :  { %v897_v16 = vadd.f32 1.0, %v893_v14 }
 0x99e   :  { %v901_v19 = vmul.f32 %v897_v16, %v745_v11 }
 0x9a0   :  { %v903_v20 = vpack.c.bf16 %v901_v19, %v900_v17 }
 0x9a2   :  { %1927 = vmatmul.msk.bf16.gmra.mxu1 %vm920_vm9, %v903_v20 }
 0xa09   :  { %v936_v22 = vpop.f32.mrf.mxu1 }
 0xa0a   :  { %v937_v24 = vadd.f32 %v2016_v21, %v936_v22 }
 0xa0c   :  { %v2641_v9 = vadd.f32 %v937_v24, %v2496_v44 }
 0xa0e   :  { %v954_v46 = vsel %vm125_vm5, %v2641_v9, 0.0 }
 0xa0f   :  { %955 = vadd.xlane.f32.xlu0 %v954_v46  ;;  %v2017_v46 = vld [vmem:[%s2994_s2 + $0x1] ss:$0 sm:$0xff]  ;;  %s2202_s2 = smov 128  }
 0xa11   :  { %v938_v12 = vpop.f32.mrf.mxu1 }
 0xa12   :  { %v939_v29 = vadd.f32 %v2016_v21, %v938_v12 }
 0xa14   :  { %v2646_v8 = vadd.f32 %v939_v29, %v2501_v49 }
 0xa16   :  { %v957_v34 = vsel %vm125_vm5, %v2646_v8, 0.0 }
 0xa17   :  { %958 = vadd.xlane.f32.xlu1 %v957_v34 }
 0xa1f   :  { %v941_v37 = vpop.f32.mrf.mxu1 }
 0xa20   :  { %v942_v39 = vadd.f32 %v2016_v21, %v941_v37  ;;  %v2018_v37 = vld [vmem:[%s2995_s3 + $0x1] ss:$0 sm:$0xff] }
 0xa22   :  { %v2651_v10 = vadd.f32 %v942_v39, %v2506_v52 }
 0xa24   :  { %v960_v44 = vsel %vm125_vm5, %v2651_v10, 0.0 }
 0xa25   :  { %961 = vadd.xlane.f32.xlu2 %v960_v44 }
 0xa27   :  { %v943_v30 = vpop.f32.mrf.mxu1 }
 0xa28   :  { %v944_v38 = vadd.f32 %v2016_v21, %v943_v30 }
 0xa2a   :  { %v2656_v60 = vadd.f32 %v944_v38, %v2511_v55 }
 0xa2c   :  { %v963_v49 = vsel %vm125_vm5, %v2656_v60, 0.0 }
 0xa2d   :  { %964 = vadd.xlane.f32.xlu0 %v963_v49 }
 0xa82   :  { %v956_v40 = vpop.xlane.xlu0 %955 }
 0xa83   :  { %v966_v41 = vmul.f32 %v956_v40, %v2332_v35 }
 0xa85   :  { %v970_v58 = vsub.f32 %v2641_v9, %v966_v41 }
 0xa87   :  { %v974_v52 = vmul.f32 %v970_v58, %v970_v58 }
 0xa89   :  { %v978_v57 = vsel %vm125_vm5, %v974_v52, 0.0 }
 0xa8a   :  { %979 = vadd.xlane.f32.xlu1 %v978_v57  ;;  %v959_v48 = vpop.xlane.xlu1 %958 }
 0xa8b   :  { %v967_v45 = vmul.f32 %v959_v48, %v2332_v35 }
 0xa8d   :  { %v971_v42 = vsub.f32 %v2646_v8, %v967_v45 }
 0xa8f   :  { %v975_v55 = vmul.f32 %v971_v42, %v971_v42 }
 0xa91   :  { %v981_v47 = vsel %vm125_vm5, %v975_v55, 0.0 }
 0xa92   :  { %982 = vadd.xlane.f32.xlu2 %v981_v47 }
 0xa98   :  { %v962_v50 = vpop.xlane.xlu2 %961 }
 0xa99   :  { %v968_v43 = vmul.f32 %v962_v50, %v2332_v35 }
 0xa9b   :  { %v2668_v51 = vsub.f32 %v2651_v10, %v968_v43 }
 0xa9d   :  { %v976_v54 = vmul.f32 %v2668_v51, %v2668_v51 }
 0xa9f   :  { %v984_v3 = vsel %vm125_vm5, %v976_v54, 0.0 }
 0xaa0   :  { %v965_v23 = vpop.xlane.xlu0 %964  ;;  %985 = vadd.xlane.f32.xlu0 %v984_v3 }
 0xaa1   :  { %v969_v56 = vmul.f32 %v965_v23, %v2332_v35 }
 0xaa3   :  { %v2675_v25 = vsub.f32 %v2656_v60, %v969_v56 }
 0xaa5   :  { %v977_v59 = vmul.f32 %v2675_v25, %v2675_v25 }
 0xaa7   :  { %v987_v32 = vsel %vm125_vm5, %v977_v59, 0.0 }
 0xaa8   :  { %988 = vadd.xlane.f32.xlu1 %v987_v32 }
 0xafd   :  { %v980_v62 = vpop.xlane.xlu1 %979 }
 0xafe   :  { %v990_v27 = vmul.f32 %v980_v62, %v2332_v35 }
 0xb00   :  { %v994_v31 = vadd.f32 1e-05, %v990_v27 }
 0xb02   :  { %2093 = vrsqrt.f32 %v994_v31  ;;  %vm1004_vm13 = vweird.f32 %v994_v31 }
 0xb05   :  { %v983_v36 = vpop.xlane.xlu2 %982 }
 0xb06   :  { %v991_v7 = vmul.f32 %v983_v36, %v2332_v35 }
 0xb08   :  { %v2094_v63 = vpop.eup %2093  ;;  %v995_v4 = vadd.f32 1e-05, %v991_v7 }
 0xb09   :  { %v999_v5 = vmul.f32 %v2094_v63, %v994_v31  ;;  %vm1005_vm12 = vweird.f32 %v2094_v63 }
 0xb0a   :  { %2095 = vrsqrt.f32 %v995_v4  ;;  %vm1006_vm14 = vmor %vm1004_vm13, %vm1005_vm12  ;;  %vm1014_vm0 = vweird.f32 %v995_v4 }
 0xb0b   :  { %v1000_v53 = vmul.f32 %v2094_v63, %v999_v5 }
 0xb0d   :  { %v1001_v6 = vmul.f32 0.5, %v1000_v53 }
 0xb0f   :  { %v1002_v13 = vsub.f32 1.5, %v1001_v6 }
 0xb10   :  { %v2096_v14 = vpop.eup %2095 }
 0xb11   :  { %v1003_v15 = vmul.f32 %v2094_v63, %v1002_v13  ;;  %v1009_v11 = vmul.f32 %v2096_v14, %v995_v4  ;;  %vm1015_vm15 = vweird.f32 %v2096_v14 }
 0xb12   :  { %vm1016_vm1 = vmor %vm1014_vm0, %vm1015_vm15 }
 0xb13   :  { %v1010_v16 = vmul.f32 %v2096_v14, %v1009_v11  ;;  %v986_v17 = vpop.xlane.xlu0 %985  ;;  %v1007_v19 = vsel %vm1006_vm14, %v2094_v63, %v1003_v15 }
 0xb14   :  { %v992_v21 = vmul.f32 %v986_v17, %v2332_v35  ;;  %v1038_v12 = vmul.f32 %v1007_v19, %v970_v58 }
 0xb15   :  { %v1011_v20 = vmul.f32 0.5, %v1010_v16 }
 0xb16   :  { %v996_v24 = vadd.f32 1e-05, %v992_v21  ;;  %v1045_v39 = vmul.f32 %v2017_v46, %v1038_v12 }
 0xb17   :  { %v1012_v22 = vsub.f32 1.5, %v1011_v20 }
 0xb18   :  { %2097 = vrsqrt.f32 %v996_v24  ;;  %v1052_v52 = vadd.f32 %v2018_v37, %v1045_v39  ;;  %vm1024_vm4 = vweird.f32 %v996_v24 }
 0xb19   :  { %v1013_v29 = vmul.f32 %v2096_v14, %v1012_v22 }
 0xb1b   :  { %v1017_v34 = vsel %vm1016_vm1, %v2096_v14, %v1013_v29  ;;  %v989_v30 = vpop.xlane.xlu1 %988 }
 0xb1c   :  { %v1039_v44 = vmul.f32 %v1017_v34, %v971_v42  ;;  %v993_v38 = vmul.f32 %v989_v30, %v2332_v35 }
 0xb1e   :  { %v1046_v49 = vmul.f32 %v2017_v46, %v1039_v44  ;;  %v2098_v40 = vpop.eup %2097  ;;  %v997_v41 = vadd.f32 1e-05, %v993_v38 }
 0xb1f   :  { %v1019_v58 = vmul.f32 %v2098_v40, %v996_v24  ;;  %vm1025_vm3 = vweird.f32 %v2098_v40 }
 0xb20   :  { %v1053_v57 = vadd.f32 %v2018_v37, %v1046_v49  ;;  %2099 = vrsqrt.f32 %v997_v41  ;;  %vm1026_vm6 = vmor %vm1024_vm4, %vm1025_vm3  ;;  %vm1034_vm8 = vweird.f32 %v997_v41 }
 0xb21   :  { %v1020_v48 = vmul.f32 %v2098_v40, %v1019_v58 }
 0xb22   :  { %v1056_v45 = vpack.c.bf16 %v1053_v57, %v1052_v52 }
 0xb23   :  { %v1021_v55 = vmul.f32 0.5, %v1020_v48 }
 0xb24   :  { %1935 = vmatmul.msk.bf16.vlgmr.msra.gmra.mxu2 %vm125_vm5, %v1056_v45 }
 0xb25   :  { %v1022_v47 = vsub.f32 1.5, %v1021_v55 }
 0xb26   :  { %v2100_v50 = vpop.eup %2099 }
 0xb27   :  { %v1023_v43 = vmul.f32 %v2098_v40, %v1022_v47  ;;  %v1029_v42 = vmul.f32 %v2100_v50, %v997_v41  ;;  %vm1035_vm7 = vweird.f32 %v2100_v50 }
 0xb28   :  { %vm1036_vm10 = vmor %vm1034_vm8, %vm1035_vm7 }
 0xb29   :  { %v1030_v54 = vmul.f32 %v2100_v50, %v1029_v42  ;;  %v1027_v3 = vsel %vm1026_vm6, %v2098_v40, %v1023_v43 }
 0xb2a   :  { %v1040_v59 = vmul.f32 %v1027_v3, %v2668_v51 }
 0xb2b   :  { %v1031_v23 = vmul.f32 0.5, %v1030_v54 }
 0xb2c   :  { %v1047_v62 = vmul.f32 %v2017_v46, %v1040_v59 }
 0xb2d   :  { %v1032_v56 = vsub.f32 1.5, %v1031_v23 }
 0xb2e   :  { %v1054_v27 = vadd.f32 %v2018_v37, %v1047_v62 }
 0xb2f   :  { %v1033_v32 = vmul.f32 %v2100_v50, %v1032_v56 }
 0xb31   :  { %v1037_v33 = vsel %vm1036_vm10, %v2100_v50, %v1033_v32 }
 0xb32   :  { %v1041_v61 = vmul.f32 %v1037_v33, %v2675_v25 }
 0xb34   :  { %v1048_v28 = vmul.f32 %v2017_v46, %v1041_v61 }
 0xb36   :  { %v1055_v31 = vadd.f32 %v2018_v37, %v1048_v28 }
 0xb38   :  { %v1057_v0 = vpack.c.bf16 %v1055_v31, %v1054_v27 }
 0xb3a   :  { %1936 = vmatmul.msk.bf16.gmra.mxu2 %vm125_vm5, %v1057_v0 }
 0xba7   :  { %v1085_v1 = vpop.f32.mrf.mxu2 }
 0xba8   :  { %v1086_v51 = vadd.f32 %v2019_v2, %v1085_v1 }
 0xbaf   :  { %v1087_v36 = vpop.f32.mrf.mxu2 }
 0xbb0   :  { %v1088_v7 = vadd.f32 %v2019_v2, %v1087_v36 }
 0xbb2   :  { %v2709_v63 = vpack.c.bf16 %v1088_v7, %v1086_v51 }
 0xbb4   :  { %1162 = vrot.lane.b32.xlu0 %v2709_v63, %s2197_s19  ;;  %1164 = vrot.lane.b32.xlu2 %v2709_v63, %s2196_s1 }
 0xbbc   :  { %1097 = vrot.lane.b32.xlu2 %v2709_v63, %s2194_s17 }
 0xbbd   :  { %v1090_v25 = vpop.f32.mrf.mxu2 }
 0xbbe   :  { %v1091_v5 = vadd.f32 %v2019_v2, %v1090_v25 }
 0xbc5   :  { %v1092_v4 = vpop.f32.mrf.mxu2 }
 0xbc6   :  { %v1093_v53 = vadd.f32 %v2019_v2, %v1092_v4 }
 0xbc8   :  { %v2717_v6 = vpack.c.bf16 %v1093_v53, %v1091_v5 }
 0xbca   :  { %1306 = vrot.lane.b32.xlu0 %v2717_v6, %s2197_s19  ;;  %1308 = vrot.lane.b32.xlu1 %v2717_v6, %s2196_s1 }
 0xbd2   :  { %1241 = vrot.lane.b32.xlu1 %v2717_v6, %s2194_s17 }
 0xc0e   :  { %v1165_v13 = vpop.permute.xlu2 %1164 }
 0xc0f   :  { %v1170_v14 = vsel %vm90_vm2, %v1165_v13, 0 }
 0xc10   :  { %1179 = vmatpush.bf16.xpose.msrb.mxu1 %v1170_v14 }
 0xc16   :  { %v1098_v15 = vpop.permute.xlu2 %1097 }
 0xc17   :  { %v1103_v11 = vsel %vm90_vm2, %v1098_v15, 0 }
 0xc18   :  { %1112 = vmatpush.bf16.xpose.msrb.mxu0 %v1103_v11 }
 0xc1f   :  { %1937 = vmatmul.msk.bf16.vlgmr.msrb.gmra.mxu0 %vm90_vm2, %v2709_v63 }
 0xc26   :  { %v1163_v16 = vpop.permute.xlu0 %1162 }
 0xc27   :  { %1939 = vmatmul.msk.bf16.vlgmr.msrb.gmra.mxu1 %vm90_vm2, %v1163_v16 }
 0xc3c   :  { %v1309_v17 = vpop.permute.xlu1 %1308  ;;  %v1307_v20 = vpop.permute.xlu0 %1306 }
 0xc3d   :  { %v1314_v19 = vsel %vm90_vm2, %v1309_v17, 0 }
 0xc3e   :  { %1323 = vmatpush.bf16.xpose.msra.mxu1 %v1314_v19 }
 0xc44   :  { %v1242_v21 = vpop.permute.xlu1 %1241 }
 0xc45   :  { %v1247_v22 = vsel %vm90_vm2, %v1242_v21, 0  ;;  %1943 = vmatmul.msk.bf16.vlgmr.msra.gmra.mxu1 %vm90_vm2, %v1307_v20 }
 0xc46   :  { %1256 = vmatpush.bf16.xpose.msra.mxu0 %v1247_v22 }
 0xc4d   :  { %1941 = vmatmul.msk.bf16.vlgmr.msra.gmra.mxu0 %vm90_vm2, %v2717_v6 }
 0xc9c   :  { %v1114_v29 = vpop.f32.mrf.mxu0 }
 0xc9d   :  { %v1115_v34 = vadd.f32 %v1114_v29, %v2412_v18 }
 0xc9f   :  { %v1119_v30 = vsel %vm90_vm2, %v1115_v34, -inf }
 0xca4   :  { %v1181_v24 = vpop.f32.mrf.mxu1  ;;  %v1116_v38 = vpop.f32.mrf.mxu0 }
 0xca5   :  { %v1182_v46 = vadd.f32 %v1181_v24, %v2412_v18  ;;  %v1117_v52 = vadd.f32 %v1116_v38, %v2417_v26 }
 0xca7   :  { %v1186_v12 = vsel %vm90_vm2, %v1182_v46, -inf  ;;  %v1122_v55 = vsel %vm90_vm2, %v1117_v52, -inf }
 0xca8   :  { %1187 = vmax.xlane.f32.xlu0 %v1186_v12 }
 0xcac   :  { %v1183_v37 = vpop.f32.mrf.mxu1 }
 0xcad   :  { %v1184_v39 = vadd.f32 %v1183_v37, %v2417_v26 }
 0xcaf   :  { %v1189_v44 = vsel %vm90_vm2, %v1184_v39, -inf }
 0xcb0   :  { %1190 = vmax.xlane.f32.xlu2 %v1189_v44  ;;  %1120 = vmax.xlane.f32.xlu0 %v1119_v30 }
 0xcc2   :  { %v1325_v49 = vpop.f32.mrf.mxu1 }
 0xcc3   :  { %v1326_v40 = vadd.f32 %v1325_v49, %v2412_v18 }
 0xcc5   :  { %v1330_v41 = vsel %vm90_vm2, %v1326_v40, -inf }
 0xcc6   :  { %1331 = vmax.xlane.f32.xlu1 %v1330_v41 }
 0xcca   :  { %v1258_v57 = vpop.f32.mrf.mxu0  ;;  %v1327_v58 = vpop.f32.mrf.mxu1 }
 0xccb   :  { %v1328_v48 = vadd.f32 %v1327_v58, %v2417_v26  ;;  %v1259_v47 = vadd.f32 %v1258_v57, %v2412_v18 }
 0xccd   :  { %v1333_v45 = vsel %vm90_vm2, %v1328_v48, -inf  ;;  %v1263_v54 = vsel %vm90_vm2, %v1259_v47, -inf }
 0xcce   :  { %1334 = vmax.xlane.f32.xlu2 %v1333_v45  ;;  %1123 = vmax.xlane.f32.xlu1 %v1122_v55 }
 0xcd2   :  { %v1260_v50 = vpop.f32.mrf.mxu0 }
 0xcd3   :  { %v1261_v43 = vadd.f32 %v1260_v50, %v2417_v26 }
 0xcd5   :  { %v1266_v42 = vsel %vm90_vm2, %v1261_v43, -inf }
 0xcd6   :  { %1267 = vmax.xlane.f32.xlu2 %v1266_v42  ;;  %1264 = vmax.xlane.f32.xlu1 %v1263_v54 }
 0xd1b   :  { %v1188_v3 = vpop.xlane.xlu0 %1187 }
 0xd1c   :  { %v1192_v23 = vsub.f32 %v1182_v46, %v1188_v3 }
 0xd1e   :  { %v1194_v56 = vmul.f32 1.442695, %v1192_v23 }
 0xd20   :  { %2101 = vpow2.f32 %v1194_v56 }
 0xd23   :  { %v1191_v59 = vpop.xlane.xlu2 %1190  ;;  %v1121_v32 = vpop.xlane.xlu0 %1120 }
 0xd24   :  { %v1193_v33 = vsub.f32 %v1184_v39, %v1191_v59  ;;  %v1125_v61 = vsub.f32 %v1115_v34, %v1121_v32 }
 0xd26   :  { %v2102_v62 = vpop.eup %2101  ;;  %v1196_v28 = vmul.f32 1.442695, %v1193_v33  ;;  %v1127_v18 = vmul.f32 1.442695, %v1125_v61 }
 0xd27   :  { %v1198_v27 = vsel %vm90_vm2, %v2102_v62, 0.0 }
 0xd28   :  { %2103 = vpow2.f32 %v1196_v28  ;;  %1199 = vadd.xlane.f32.xlu2 %v1198_v27 }
 0xd29   :  { %2105 = vpow2.f32 %v1127_v18 }
 0xd2e   :  { %v2104_v26 = vpop.eup %2103 }
 0xd2f   :  { %v2752_v31 = vpop.eup %2105  ;;  %v1201_v0 = vsel %vm90_vm2, %v2104_v26, 0.0 }
 0xd30   :  { %1202 = vadd.xlane.f32.xlu0 %v1201_v0  ;;  %v1131_v1 = vsel %vm90_vm2, %v2752_v31, 0.0 }
 0xd31   :  { %1132 = vadd.xlane.f32.xlu2 %v1131_v1 }
 0xd39   :  { %v1332_v2 = vpop.xlane.xlu1 %1331 }
 0xd3a   :  { %v1336_v36 = vsub.f32 %v1326_v40, %v1332_v2 }
 0xd3c   :  { %v1338_v51 = vmul.f32 1.442695, %v1336_v36 }
 0xd3e   :  { %2107 = vpow2.f32 %v1338_v51 }
 0xd41   :  { %v1335_v7 = vpop.xlane.xlu2 %1334  ;;  %v1124_v15 = vpop.xlane.xlu1 %1123 }
 0xd42   :  { %v1337_v25 = vsub.f32 %v1328_v48, %v1335_v7  ;;  %v1126_v11 = vsub.f32 %v1117_v52, %v1124_v15 }
 0xd44   :  { %1209 = vrot.lane.b32.xlu0 %v2709_v63, %s2199_s20  ;;  %v2108_v4 = vpop.eup %2107  ;;  %v1340_v5 = vmul.f32 1.442695, %v1337_v25  ;;  %v1129_v16 = vmul.f32 1.442695, %v1126_v11  ;;  %v1947_v25 = vld [vmem:[%s2998_s6 + $0x30] sm:$0xff] }
 0xd45   :  { %v1342_v53 = vsel %vm90_vm2, %v2108_v4, 0.0 }
 0xd46   :  { %2109 = vpow2.f32 %v1340_v5  ;;  %1343 = vadd.xlane.f32.xlu1 %v1342_v53  ;;  %v1945_v53 = vld [vmem:[%s2998_s6 + $0x20] sm:$0xff] }
 0xd47   :  { %2111 = vpow2.f32 %v1129_v16 }
 0xd49   :  { %v1265_v20 = vpop.xlane.xlu1 %1264  ;;  %v1268_v22 = vpop.xlane.xlu2 %1267 }
 0xd4a   :  { %v1269_v21 = vsub.f32 %v1259_v47, %v1265_v20  ;;  %v1270_v46 = vsub.f32 %v1261_v43, %v1268_v22 }
 0xd4c   :  { %v2110_v13 = vpop.eup %2109  ;;  %v1271_v24 = vmul.f32 1.442695, %v1269_v21  ;;  %v1273_v12 = vmul.f32 1.442695, %v1270_v46 }
 0xd4d   :  { %v1345_v14 = vsel %vm90_vm2, %v2110_v13, 0.0  ;;  %v2112_v17 = vpop.eup %2111 }
 0xd4e   :  { %1346 = vadd.xlane.f32.xlu2 %v1345_v14  ;;  %v1134_v19 = vsel %vm90_vm2, %v2112_v17, 0.0  ;;  %2113 = vpow2.f32 %v1271_v24 }
 0xd4f   :  { %2115 = vpow2.f32 %v1273_v12 }
 0xd54   :  { %v2114_v29 = vpop.eup %2113 }
 0xd55   :  { %v1275_v34 = vsel %vm90_vm2, %v2114_v29, 0.0 }
 0xd5f   :  { %1353 = vrot.lane.b32.xlu1 %v2717_v6, %s2199_s20 }
 0xd66   :  { %1142 = vrot.lane.b32.xlu2 %v2709_v63, %s2195_s18  ;;  %v2116_v63 = vpop.eup %2115 }
 0xd67   :  { %v1278_v37 = vsel %vm90_vm2, %v2116_v63, 0.0 }
 0xd6e   :  { %1135 = vadd.xlane.f32.xlu0 %v1134_v19 }
 0xd82   :  { %1286 = vrot.lane.b32.xlu0 %v2717_v6, %s2195_s18 }
 0xd89   :  { %1276 = vadd.xlane.f32.xlu1 %v1275_v34 }
 0xd8f   :  { %1279 = vadd.xlane.f32.xlu2 %v1278_v37 }
 0xd9b   :  { %v1200_v44 = vpop.xlane.xlu2 %1199 }
 0xda3   :  { %v1203_v39 = vpop.xlane.xlu0 %1202 }
 0xda4   :  { %2117 = vrcp.f32 %v1203_v39  ;;  %v1133_v52 = vpop.xlane.xlu2 %1132 }
 0xda5   :  { %2119 = vrcp.f32 %v1200_v44  ;;  %v2020_v44 = vld [vmem:[%s2999_s7 + $0x1] ss:$0 sm:$0xff] }
 0xdaa   :  { %v2118_v30 = vpop.eup %2117 }
 0xdab   :  { %v2120_v38 = vpop.eup %2119  ;;  %v1207_v49 = vmul.f32 %v2118_v30, %v2104_v26 }
 0xdac   :  { %v1206_v40 = vmul.f32 %v2120_v38, %v2102_v62 }
 0xdae   :  { %v1208_v6 = vpack.c.bf16 %v1207_v49, %v1206_v40 }
 0xdb6   :  { %v1210_v41 = vpop.permute.xlu0 %1209 }
 0xdb7   :  { %1222 = vmatpush.bf16.msrb.mxu2 %v1210_v41 }
 0xdb9   :  { %v1344_v58 = vpop.xlane.xlu1 %1343 }
 0xdba   :  { %1940 = vmatmul.msk.bf16.vlgmr.msrb.gmra.mxu2 %vm90_vm2, %v1208_v6 }
 0xdc1   :  { %v1347_v57 = vpop.xlane.xlu2 %1346 }
 0xdc2   :  { %2121 = vrcp.f32 %v1347_v57 }
 0xdc3   :  { %2123 = vrcp.f32 %v1344_v58 }
 0xdc4   :  { %2125 = vrcp.f32 %v1133_v52 }
 0xdc8   :  { %v2122_v45 = vpop.eup %2121 }
 0xdc9   :  { %v1143_v48 = vpop.permute.xlu2 %1142  ;;  %v2124_v55 = vpop.eup %2123  ;;  %v1351_v47 = vmul.f32 %v2122_v45, %v2110_v13  ;;  %v1946_v13 = vld [vmem:[%s2998_s6 + $0x28] sm:$0xff] }
 0xdca   :  { %1155 = vmatpush.bf16.msra.mxu3 %v1143_v48  ;;  %v1350_v50 = vmul.f32 %v2124_v55, %v2108_v4  ;;  %v2126_v3 = vpop.eup %2125  ;;  %v1948_v4 = vld [vmem:[%s2998_s6 + $0x38] sm:$0xff]  ;;  %v1390_v14 = vpack.c.bf16 %v1946_v13, %v1945_v53  ;;  %v1955_v53 = vld [vmem:[%s3002_s10 + $0x28] sm:$0xff] }
 0xdcb   :  { %v1139_v56 = vmul.f32 %v2126_v3, %v2752_v31  ;;  %v1391_v5 = vpack.c.bf16 %v1948_v4, %v1947_v25 }
 0xdcc   :  { %v1352_v42 = vpack.c.bf16 %v1351_v47, %v1350_v50 }
 0xdcd   :  { %1409 = vmatpush.bf16.msrb.mxu0 %v1391_v5  ;;  %v1954_v5 = vld [vmem:[%s3002_s10 + $0x20] sm:$0xff] }
 0xdce   :  { %v1539_v13 = vpack.c.bf16 %v1955_v53, %v1954_v5 }
 0xdd1   :  { %v1354_v43 = vpop.permute.xlu1 %1353  ;;  %1410 = vmatpush.bf16.msrb.mxu0 %v1390_v14 }
 0xdd2   :  { %1366 = vmatpush.bf16.msra.mxu2 %v1354_v43 }
 0xdd5   :  { %1944 = vmatmul.msk.bf16.vlgmr.msra.gmra.mxu2 %vm90_vm2, %v1352_v42 }
 0xde1   :  { %v1136_v54 = vpop.xlane.xlu0 %1135 }
 0xde2   :  { %2127 = vrcp.f32 %v1136_v54 }
 0xde8   :  { %v2128_v23 = vpop.eup %2127 }
 0xde9   :  { %v1140_v59 = vmul.f32 %v2128_v23, %v2112_v17 }
 0xdeb   :  { %v1141_v32 = vpack.c.bf16 %v1140_v59, %v1139_v56 }
 0xded   :  { %1938 = vmatmul.msk.bf16.vlgmr.msra.gmra.mxu3 %vm90_vm2, %v1141_v32 }
 0xdf4   :  { %v1287_v33 = vpop.permute.xlu0 %1286 }
 0xdf5   :  { %1299 = vmatpush.bf16.msrb.mxu3 %v1287_v33 }
 0xdfc   :  { %v1277_v61 = vpop.xlane.xlu1 %1276 }
 0xdfd   :  { %2129 = vrcp.f32 %v1277_v61 }
 0xe02   :  { %v1280_v62 = vpop.xlane.xlu2 %1279 }
 0xe03   :  { %2131 = vrcp.f32 %v1280_v62  ;;  %v2130_v28 = vpop.eup %2129 }
 0xe04   :  { %v1283_v27 = vmul.f32 %v2130_v28, %v2114_v29 }
 0xe09   :  { %v2132_v18 = vpop.eup %2131 }
 0xe0a   :  { %v1284_v26 = vmul.f32 %v2132_v18, %v2116_v63 }
 0xe0c   :  { %v1285_v0 = vpack.c.bf16 %v1284_v26, %v1283_v27 }
 0xe0e   :  { %1942 = vmatmul.msk.bf16.vlgmr.msrb.gmra.mxu3 %vm90_vm2, %v1285_v0 }
 0xe3d   :  { %v1224_v1 = vpop.f32.mrf.mxu2 }
 0xe45   :  { %v1226_v2 = vpop.f32.mrf.mxu2 }
 0xe46   :  { %v1999_v31 = vpack.i.bf16 %v1226_v2, %v1224_v1 }
 0xe48   :  { %2000 = vrot.lane.b32.xlu0 %v1999_v31, %s2200_s25  ;;  %v1956_v31 = vld [vmem:[%s3002_s10 + $0x30] sm:$0xff] }
 0xe58   :  { %v1368_v36 = vpop.f32.mrf.mxu2 }
 0xe60   :  { %v1370_v51 = vpop.f32.mrf.mxu2 }
 0xe61   :  { %v2004_v7 = vpack.i.bf16 %v1370_v51, %v1368_v36  ;;  %v1957_v36 = vld [vmem:[%s3002_s10 + $0x38] sm:$0xff] }
 0xe63   :  { %2005 = vrot.lane.b32.xlu1 %v2004_v7, %s2200_s25  ;;  %v1540_v7 = vpack.c.bf16 %v1957_v36, %v1956_v31 }
 0xe65   :  { %1558 = vmatpush.bf16.msra.mxu3 %v1540_v7 }
 0xe69   :  { %1559 = vmatpush.bf16.msra.mxu3 %v1539_v13 }
 0xe70   :  { %v1157_v15 = vpop.f32.mrf.mxu3 }
 0xe78   :  { %v1159_v19 = vpop.f32.mrf.mxu3 }
 0xe91   :  { %v1301_v24 = vpop.f32.mrf.mxu3 }
 0xe99   :  { %v1303_v34 = vpop.f32.mrf.mxu3 }
 0xeba   :  { %v2001_v11 = vpop.permute.xlu0 %2000 }
 0xebb   :  { %v2003_v16 = vunpack.i.h.bf16 %v2001_v11  ;;  %v2002_v17 = vunpack.i.l.bf16 %v2001_v11 }
 0xebd   :  { %v1238_v20 = vsel %vm90_vm2, %v1159_v19, %v2003_v16  ;;  %v1237_v21 = vsel %vm90_vm2, %v1157_v15, %v2002_v17 }
 0xebe   :  { %v1383_v22 = vpack.c.bf16 %v1238_v20, %v1237_v21 }
 0xec0   :  { %1950 = vmatmul.msk.bf16.vlgmr.msrb.gmra.mxu0 %vm125_vm5, %v1383_v22 }
 0xed5   :  { %v2006_v46 = vpop.permute.xlu1 %2005 }
 0xed6   :  { %v2008_v12 = vunpack.i.h.bf16 %v2006_v46  ;;  %v2007_v29 = vunpack.i.l.bf16 %v2006_v46 }
 0xed8   :  { %v1381_v63 = vsel %vm90_vm2, %v1301_v24, %v2007_v29  ;;  %v1382_v37 = vsel %vm90_vm2, %v1303_v34, %v2008_v12 }
 0xed9   :  { %v1384_v39 = vpack.c.bf16 %v1382_v37, %v1381_v63  ;;  %v2021_v37 = vld [vmem:[%s3000_s8 + $0x1] ss:$0 sm:$0xff]  ;;  %s2203_s8 = smov 8  }
 0xedb   :  { %1951 = vmatmul.msk.bf16.gmra.mxu0 %vm125_vm5, %v1384_v39 }
 0xf3d   :  { %v1412_v30 = vpop.f32.mrf.mxu0 }
 0xf3e   :  { %v1413_v38 = vadd.f32 %v2020_v44, %v1412_v30 }
 0xf40   :  { %v2799_v49 = vadd.f32 %v1413_v38, %v2641_v9 }
 0xf42   :  { %v1430_v40 = vsel %vm125_vm5, %v2799_v49, 0.0 }
 0xf43   :  { %1431 = vadd.xlane.f32.xlu2 %v1430_v40 }
 0xf45   :  { %v1414_v41 = vpop.f32.mrf.mxu0 }
 0xf46   :  { %v1415_v6 = vadd.f32 %v2020_v44, %v1414_v41  ;;  %v2022_v41 = vld [vmem:[%s3001_s9 + $0x1] ss:$0 sm:$0xff] }
 0xf48   :  { %v2804_v52 = vadd.f32 %v1415_v6, %v2646_v8 }
 0xf4a   :  { %v1433_v57 = vsel %vm125_vm5, %v2804_v52, 0.0 }
 0xf4b   :  { %1434 = vadd.xlane.f32.xlu0 %v1433_v57 }
 0xf58   :  { %v1417_v58 = vpop.f32.mrf.mxu0 }
 0xf59   :  { %v1418_v48 = vadd.f32 %v2020_v44, %v1417_v58 }
 0xf5b   :  { %v2809_v45 = vadd.f32 %v1418_v48, %v2651_v10 }
 0xf5d   :  { %v1436_v9 = vsel %vm125_vm5, %v2809_v45, 0.0 }
 0xf5e   :  { %1437 = vadd.xlane.f32.xlu2 %v1436_v9 }
 0xf60   :  { %v1419_v55 = vpop.f32.mrf.mxu0 }
 0xf61   :  { %v1420_v47 = vadd.f32 %v2020_v44, %v1419_v55 }
 0xf63   :  { %v2814_v50 = vadd.f32 %v1420_v47, %v2656_v60 }
 0xf65   :  { %v1439_v8 = vsel %vm125_vm5, %v2814_v50, 0.0 }
 0xf66   :  { %1440 = vadd.xlane.f32.xlu2 %v1439_v8 }
 0xfb6   :  { %v1432_v43 = vpop.xlane.xlu2 %1431 }
 0xfb7   :  { %v1442_v42 = vmul.f32 %v1432_v43, %v2332_v35 }
 0xfb9   :  { %v1446_v54 = vsub.f32 %v2799_v49, %v1442_v42 }
 0xfbb   :  { %v1450_v10 = vmul.f32 %v1446_v54, %v1446_v54 }
 0xfbd   :  { %v1454_v3 = vsel %vm125_vm5, %v1450_v10, 0.0 }
 0xfbe   :  { %v1435_v23 = vpop.xlane.xlu0 %1434  ;;  %1455 = vadd.xlane.f32.xlu1 %v1454_v3 }
 0xfbf   :  { %v1443_v56 = vmul.f32 %v1435_v23, %v2332_v35 }
 0xfc1   :  { %v1447_v59 = vsub.f32 %v2804_v52, %v1443_v56 }
 0xfc3   :  { %v1451_v60 = vmul.f32 %v1447_v59, %v1447_v59 }
 0xfc5   :  { %v1457_v32 = vsel %vm125_vm5, %v1451_v60, 0.0 }
 0xfc6   :  { %1458 = vadd.xlane.f32.xlu2 %v1457_v32 }
 0xfd1   :  { %v1438_v33 = vpop.xlane.xlu2 %1437 }
 0xfd2   :  { %v1444_v61 = vmul.f32 %v1438_v33, %v2332_v35 }
 0xfd4   :  { %v2826_v62 = vsub.f32 %v2809_v45, %v1444_v61 }
 0xfd6   :  { %v1452_v28 = vmul.f32 %v2826_v62, %v2826_v62 }
 0xfd8   :  { %v1460_v18 = vsel %vm125_vm5, %v1452_v28, 0.0 }
 0xfd9   :  { %1461 = vadd.xlane.f32.xlu2 %v1460_v18  ;;  %v1441_v27 = vpop.xlane.xlu2 %1440 }
 0xfda   :  { %v1445_v26 = vmul.f32 %v1441_v27, %v2332_v35 }
 0xfdc   :  { %v2833_v0 = vsub.f32 %v2814_v50, %v1445_v26 }
 0xfde   :  { %v1453_v1 = vmul.f32 %v2833_v0, %v2833_v0 }
 0xfe0   :  { %v1463_v2 = vsel %vm125_vm5, %v1453_v1, 0.0 }
 0xfe1   :  { %1464 = vadd.xlane.f32.xlu2 %v1463_v2 }
0x1031   :  { %v1456_v51 = vpop.xlane.xlu1 %1455 }
0x1032   :  { %v1466_v25 = vmul.f32 %v1456_v51, %v2332_v35 }
0x1034   :  { %v1470_v4 = vadd.f32 1e-05, %v1466_v25 }
0x1036   :  { %2133 = vrsqrt.f32 %v1470_v4  ;;  %vm1480_vm11 = vweird.f32 %v1470_v4 }
0x1039   :  { %v1459_v14 = vpop.xlane.xlu2 %1458 }
0x103a   :  { %v1467_v15 = vmul.f32 %v1459_v14, %v2332_v35 }
0x103c   :  { %v2134_v11 = vpop.eup %2133  ;;  %v1471_v16 = vadd.f32 1e-05, %v1467_v15 }
0x103d   :  { %v1475_v17 = vmul.f32 %v2134_v11, %v1470_v4  ;;  %vm1481_vm2 = vweird.f32 %v2134_v11  ;;  %v2867_v4 = vld [vmem:[%s3003_s11 + $0x1] ss:$0 sm:$0xff] }
0x103e   :  { %2135 = vrsqrt.f32 %v1471_v16  ;;  %vm1482_vm12 = vmor %vm1480_vm11, %vm1481_vm2  ;;  %vm1490_vm14 = vweird.f32 %v1471_v16 }
0x103f   :  { %v1476_v19 = vmul.f32 %v2134_v11, %v1475_v17 }
0x1041   :  { %v1477_v20 = vmul.f32 0.5, %v1476_v19 }
0x1043   :  { %v1478_v21 = vsub.f32 1.5, %v1477_v20 }
0x1044   :  { %v2136_v22 = vpop.eup %2135 }
0x1045   :  { %v1479_v24 = vmul.f32 %v2134_v11, %v1478_v21  ;;  %v1485_v46 = vmul.f32 %v2136_v22, %v1471_v16  ;;  %vm1491_vm13 = vweird.f32 %v2136_v22 }
0x1046   :  { %vm1492_vm15 = vmor %vm1490_vm14, %vm1491_vm13 }
0x1047   :  { %v1486_v12 = vmul.f32 %v2136_v22, %v1485_v46  ;;  %v1483_v29 = vsel %vm1482_vm12, %v2134_v11, %v1479_v24 }
0x1048   :  { %v1514_v39 = vmul.f32 %v1483_v29, %v1446_v54  ;;  %v1968_v29 = vld [vmem:[%s3004_s12 + $0x78] sm:$0xff] }
0x1049   :  { %v1487_v34 = vmul.f32 0.5, %v1486_v12  ;;  %v1967_v12 = vld [vmem:[%s3004_s12 + $0x70] sm:$0xff] }
0x104a   :  { %v1521_v6 = vmul.f32 %v2021_v37, %v1514_v39 }
0x104b   :  { %v1488_v63 = vsub.f32 1.5, %v1487_v34 }
0x104c   :  { %v1462_v30 = vpop.xlane.xlu2 %1461  ;;  %v1528_v9 = vadd.f32 %v2022_v41, %v1521_v6 }
0x104d   :  { %v1489_v44 = vmul.f32 %v2136_v22, %v1488_v63  ;;  %v1468_v38 = vmul.f32 %v1462_v30, %v2332_v35  ;;  %v1965_v30 = vld [vmem:[%s3004_s12 + $0x60] sm:$0xff] }
0x104f   :  { %v1493_v40 = vsel %vm1492_vm15, %v2136_v22, %v1489_v44  ;;  %v1472_v58 = vadd.f32 1e-05, %v1468_v38  ;;  %v1966_v38 = vld [vmem:[%s3004_s12 + $0x68] sm:$0xff] }
0x1050   :  { %v1515_v57 = vmul.f32 %v1493_v40, %v1447_v59 }
0x1051   :  { %2137 = vrsqrt.f32 %v1472_v58  ;;  %vm1500_vm1 = vweird.f32 %v1472_v58 }
0x1052   :  { %v1522_v48 = vmul.f32 %v2021_v37, %v1515_v57  ;;  %v1744_v57 = vpack.c.bf16 %v1966_v38, %v1965_v30 }
0x1054   :  { %v1529_v55 = vadd.f32 %v2022_v41, %v1522_v48  ;;  %v1465_v47 = vpop.xlane.xlu2 %1464 }
0x1055   :  { %v1469_v8 = vmul.f32 %v1465_v47, %v2332_v35 }
0x1056   :  { %v1532_v43 = vpack.c.bf16 %v1529_v55, %v1528_v9 }
0x1057   :  { %v2138_v42 = vpop.eup %2137  ;;  %v1473_v54 = vadd.f32 1e-05, %v1469_v8 }
0x1058   :  { %1959 = vmatmul.msk.bf16.vlgmr.msra.gmra.mxu3 %vm125_vm5, %v1532_v43  ;;  %v1495_v10 = vmul.f32 %v2138_v42, %v1472_v58  ;;  %vm1501_vm0 = vweird.f32 %v2138_v42  ;;  %v1963_v43 = vld [vmem:[%s3004_s12 + $0x50] sm:$0xff] }
0x1059   :  { %2139 = vrsqrt.f32 %v1473_v54  ;;  %vm1502_vm3 = vmor %vm1500_vm1, %vm1501_vm0  ;;  %vm1510_vm6 = vweird.f32 %v1473_v54 }
0x105a   :  { %v1496_v3 = vmul.f32 %v2138_v42, %v1495_v10 }
0x105c   :  { %v1497_v23 = vmul.f32 0.5, %v1496_v3 }
0x105e   :  { %v1498_v56 = vsub.f32 1.5, %v1497_v23 }
0x105f   :  { %v2140_v60 = vpop.eup %2139 }
0x1060   :  { %v1499_v59 = vmul.f32 %v2138_v42, %v1498_v56  ;;  %v1505_v32 = vmul.f32 %v2140_v60, %v1473_v54  ;;  %vm1511_vm4 = vweird.f32 %v2140_v60 }
0x1061   :  { %vm1512_vm7 = vmor %vm1510_vm6, %vm1511_vm4 }
0x1062   :  { %v1506_v33 = vmul.f32 %v2140_v60, %v1505_v32  ;;  %v1503_v61 = vsel %vm1502_vm3, %v2138_v42, %v1499_v59  ;;  %v1964_v42 = vld [vmem:[%s3004_s12 + $0x58] sm:$0xff] }
0x1063   :  { %v1516_v27 = vmul.f32 %v1503_v61, %v2826_v62  ;;  %v1743_v23 = vpack.c.bf16 %v1964_v42, %v1963_v43 }
0x1064   :  { %v1507_v28 = vmul.f32 0.5, %v1506_v33 }
0x1065   :  { %v1523_v31 = vmul.f32 %v2021_v37, %v1516_v27 }
0x1066   :  { %v1508_v18 = vsub.f32 1.5, %v1507_v28  ;;  %v1961_v28 = vld [vmem:[%s3004_s12 + $0x40] sm:$0xff] }
0x1067   :  { %v1530_v51 = vadd.f32 %v2022_v41, %v1523_v31 }
0x1068   :  { %v1509_v26 = vmul.f32 %v2140_v60, %v1508_v18  ;;  %v1962_v18 = vld [vmem:[%s3004_s12 + $0x48] sm:$0xff] }
0x106a   :  { %v1513_v1 = vsel %vm1512_vm7, %v2140_v60, %v1509_v26 }
0x106b   :  { %v1517_v2 = vmul.f32 %v1513_v1, %v2833_v0 }
0x106d   :  { %v1524_v36 = vmul.f32 %v2021_v37, %v1517_v2  ;;  %v1745_v37 = vpack.c.bf16 %v1968_v29, %v1967_v12  ;;  %v1742_v2 = vpack.c.bf16 %v1962_v18, %v1961_v28 }
0x106f   :  { %v1531_v7 = vadd.f32 %v2022_v41, %v1524_v36  ;;  %1761 = vmatpush.bf16.msrb.mxu1 %v1745_v37 }
0x1071   :  { %v1533_v25 = vpack.c.bf16 %v1531_v7, %v1530_v51 }
0x1073   :  { %1960 = vmatmul.msk.bf16.gmra.mxu3 %vm125_vm5, %v1533_v25  ;;  %1762 = vmatpush.bf16.msrb.mxu1 %v1744_v57 }
0x1077   :  { %1763 = vmatpush.bf16.msrb.mxu1 %v1743_v23 }
0x107b   :  { %1764 = vmatpush.bf16.msrb.mxu1 %v1742_v2 }
0x10db   :  { %v1561_v5 = vpop.f32.mrf.mxu3 }
0x10dc   :  { %v2870_v62 = vadd.f32 %v2867_v4, %v1561_v5 }
0x10de   :  { %v2873_v53 = vmul.f32 0.70710677, %v2870_v62 }
0x10e0   :  { %v1579_v0 = vand.u32 2147483647, %v2873_v53  ;;  %vm1711_vm6 = vcmp.ge.f32.partialorder %v2873_v53, 0.0 }
0x10e2   :  { %v1583_v13 = vmul.f32 0.3275911, %v1579_v0  ;;  %v1687_v6 = vsub.f32 0.0, %v1579_v0 }
0x10e3   :  { %v1563_v14 = vpop.f32.mrf.mxu3 }
0x10e4   :  { %v1587_v15 = vadd.f32 1.0, %v1583_v13  ;;  %v2877_v11 = vadd.f32 %v2867_v4, %v1563_v14  ;;  %v1691_v10 = vmul.f32 %v1687_v6, %v1579_v0 }
0x10e6   :  { %2141 = vrcp.f32 %v1587_v15  ;;  %v2880_v16 = vmul.f32 0.70710677, %v2877_v11  ;;  %v1602_v46 = vand.u32 2147483648, %v1587_v15  ;;  %v1600_v63 = vand.u32 2147483647, %v1587_v15 }
0x10e7   :  { %vm1596_vm10 = vweird.f32 %v1587_v15  ;;  %v1695_v26 = vmul.f32 1.442695, %v1691_v10  ;;  %v1572_v53 = vmul.f32 0.5, %v2877_v11 }
0x10e8   :  { %v2883_v17 = vand.u32 2147483647, %v2880_v16  ;;  %v1603_v44 = vor.u32 1.1754944e-38, %v1602_v46  ;;  %vm1601_vm11 = vcmp.eq.f32.partialorder %v1600_v63, 8.507059e+37  ;;  %vm1712_vm7 = vcmp.ge.f32.partialorder %v2880_v16, 0.0 }
0x10ea   :  { %v1584_v19 = vmul.f32 0.3275911, %v2883_v17  ;;  %v1688_v25 = vsub.f32 0.0, %v2883_v17 }
0x10ec   :  { %v2142_v20 = vpop.eup %2141  ;;  %v1588_v22 = vadd.f32 1.0, %v1584_v19 }
0x10ed   :  { %v1592_v21 = vmul.f32 %v2142_v20, %v1587_v15  ;;  %vm1597_vm8 = vweird.f32 %v2142_v20 }
0x10ee   :  { %2143 = vrcp.f32 %v1588_v22  ;;  %vm1598_vm2 = vmor %vm1596_vm10, %vm1597_vm8  ;;  %v1617_v3 = vand.u32 2147483648, %v1588_v22  ;;  %v1615_v60 = vand.u32 2147483647, %v1588_v22  ;;  %vm1611_vm13 = vweird.f32 %v1588_v22 }
0x10ef   :  { %v1593_v24 = vsub.f32 1.0, %v1592_v21  ;;  %2145 = vpow2.f32 %v1695_v26  ;;  %v1692_v21 = vmul.f32 %v1688_v25, %v2883_v17 }
0x10f0   :  { %v1618_v1 = vor.u32 1.1754944e-38, %v1617_v3  ;;  %vm1616_vm15 = vcmp.eq.f32.partialorder %v1615_v60, 8.507059e+37 }
0x10f1   :  { %v1594_v34 = vmul.f32 %v2142_v20, %v1593_v24 }
0x10f3   :  { %v1595_v39 = vadd.f32 %v2142_v20, %v1594_v34 }
0x10f4   :  { %v2144_v40 = vpop.eup %2143 }
0x10f5   :  { %v1599_v41 = vsel %vm1598_vm2, %v2142_v20, %v1595_v39  ;;  %v1607_v48 = vmul.f32 %v2144_v40, %v1588_v22  ;;  %vm1612_vm12 = vweird.f32 %v2144_v40  ;;  %v2146_v34 = vpop.eup %2145 }
0x10f6   :  { %v1604_v58 = vsel %vm1601_vm11, %v1603_v44, %v1599_v41  ;;  %v1566_v55 = vpop.f32.mrf.mxu3  ;;  %vm1613_vm14 = vmor %vm1611_vm13, %vm1612_vm12 }
0x10f7   :  { %v1651_v9 = vmul.f32 1.0614054, %v1604_v58  ;;  %v1608_v47 = vsub.f32 1.0, %v1607_v48  ;;  %v2899_v8 = vadd.f32 %v2867_v4, %v1566_v55 }
0x10f9   :  { %v1655_v54 = vadd.f32 -1.4531521, %v1651_v9  ;;  %v1609_v56 = vmul.f32 %v2144_v40, %v1608_v47  ;;  %v2908_v59 = vmul.f32 0.70710677, %v2899_v8 }
0x10fb   :  { %v1659_v32 = vmul.f32 %v1655_v54, %v1604_v58  ;;  %v1610_v33 = vadd.f32 %v2144_v40, %v1609_v56  ;;  %v2911_v61 = vand.u32 2147483647, %v2908_v59  ;;  %vm1713_vm12 = vcmp.ge.f32.partialorder %v2908_v59, 0.0  ;;  %v2024_v59 = vld [vmem:[%s3005_s13 + $0x1] ss:$0 sm:$0xff] }
0x10fd   :  { %v1663_v27 = vadd.f32 1.4214138, %v1659_v32  ;;  %v1614_v31 = vsel %vm1613_vm14, %v2144_v40, %v1610_v33  ;;  %v1585_v36 = vmul.f32 0.3275911, %v2911_v61  ;;  %v1689_v32 = vsub.f32 0.0, %v2911_v61 }
0x10fe   :  { %v1619_v7 = vsel %vm1616_vm15, %v1618_v1, %v1614_v31  ;;  %v1568_v5 = vpop.f32.mrf.mxu3 }
0x10ff   :  { %v1667_v51 = vmul.f32 %v1663_v27, %v1604_v58  ;;  %v1652_v0 = vmul.f32 1.0614054, %v1619_v7  ;;  %v1589_v13 = vadd.f32 1.0, %v1585_v36  ;;  %v2922_v14 = vadd.f32 %v2867_v4, %v1568_v5 }
0x1100   :  { %v1697_v4 = vmul.f32 1.442695, %v1692_v21  ;;  %v1693_v31 = vmul.f32 %v1689_v32, %v2911_v61  ;;  %v1573_v32 = vmul.f32 0.5, %v2899_v8 }
0x1101   :  { %v1671_v15 = vadd.f32 -0.28449672, %v1667_v51  ;;  %v1656_v19 = vadd.f32 -1.4531521, %v1652_v0  ;;  %2147 = vrcp.f32 %v1589_v13  ;;  %v2926_v24 = vmul.f32 0.70710677, %v2922_v14 }
0x1102   :  { %2149 = vpow2.f32 %v1697_v4  ;;  %v1632_v48 = vand.u32 2147483648, %v1589_v13  ;;  %v1630_v55 = vand.u32 2147483647, %v1589_v13  ;;  %vm1626_vm1 = vweird.f32 %v1589_v13 }
0x1103   :  { %v1675_v20 = vmul.f32 %v1671_v15, %v1604_v58  ;;  %v1660_v22 = vmul.f32 %v1656_v19, %v1619_v7  ;;  %v2929_v29 = vand.u32 2147483647, %v2926_v24  ;;  %v1571_v0 = vmul.f32 0.5, %v2870_v62 }
0x1104   :  { %v1633_v54 = vor.u32 1.1754944e-38, %v1632_v48  ;;  %vm1631_vm4 = vcmp.eq.f32.partialorder %v1630_v55, 8.507059e+37  ;;  %v1699_v16 = vmul.f32 1.442695, %v1693_v31  ;;  %vm1714_vm13 = vcmp.ge.f32.partialorder %v2926_v24, 0.0 }
0x1105   :  { %v1679_v46 = vadd.f32 0.2548296, %v1675_v20  ;;  %v1664_v12 = vadd.f32 1.4214138, %v1660_v22  ;;  %v1586_v44 = vmul.f32 0.3275911, %v2929_v29 }
0x1107   :  { %v1683_v63 = vmul.f32 %v1679_v46, %v1604_v58  ;;  %v2148_v37 = vpop.eup %2147  ;;  %v1668_v39 = vmul.f32 %v1664_v12, %v1619_v7  ;;  %v1590_v17 = vadd.f32 1.0, %v1586_v44 }
0x1108   :  { %v1622_v38 = vmul.f32 %v2148_v37, %v1589_v13  ;;  %vm1627_vm0 = vweird.f32 %v2148_v37  ;;  %v2150_v10 = vpop.eup %2149 }
0x1109   :  { %v1703_v30 = vmul.f32 %v2146_v34, %v1683_v63  ;;  %v1672_v40 = vadd.f32 -0.28449672, %v1668_v39  ;;  %2151 = vrcp.f32 %v1590_v17  ;;  %vm1628_vm3 = vmor %vm1626_vm1, %vm1627_vm0  ;;  %v1645_v36 = vand.u32 2147483647, %v1590_v17 }
0x110a   :  { %v1623_v41 = vsub.f32 1.0, %v1622_v38  ;;  %v1647_v51 = vand.u32 2147483648, %v1590_v17  ;;  %vm1641_vm10 = vweird.f32 %v1590_v17  ;;  %v1690_v63 = vsub.f32 0.0, %v2929_v29 }
0x110b   :  { %v1707_v6 = vsub.f32 1.0, %v1703_v30  ;;  %v1676_v57 = vmul.f32 %v1672_v40, %v1619_v7  ;;  %vm1646_vm11 = vcmp.eq.f32.partialorder %v1645_v36, 8.507059e+37  ;;  %2153 = vpow2.f32 %v1699_v16 }
0x110c   :  { %v1624_v9 = vmul.f32 %v2148_v37, %v1623_v41  ;;  %v1648_v21 = vor.u32 1.1754944e-38, %v1647_v51  ;;  %v1694_v44 = vmul.f32 %v1690_v63, %v2929_v29 }
0x110d   :  { %v1680_v47 = vadd.f32 0.2548296, %v1676_v57  ;;  %v1715_v43 = vsub.f32 0.0, %v1707_v6 }
0x110e   :  { %v1625_v58 = vadd.f32 %v2148_v37, %v1624_v9 }
0x110f   :  { %v1684_v42 = vmul.f32 %v1680_v47, %v1619_v7  ;;  %v2152_v23 = vpop.eup %2151  ;;  %v1719_v18 = vsel %vm1711_vm6, %v1707_v6, %v1715_v43  ;;  %v1701_v6 = vmul.f32 1.442695, %v1694_v44 }
0x1110   :  { %v1629_v3 = vsel %vm1628_vm3, %v2148_v37, %v1625_v58  ;;  %v1637_v28 = vmul.f32 %v2152_v23, %v1590_v17  ;;  %v1723_v7 = vadd.f32 1.0, %v1719_v18  ;;  %vm1642_vm8 = vweird.f32 %v2152_v23 }
0x1111   :  { %v1704_v56 = vmul.f32 %v2150_v10, %v1684_v42  ;;  %v1634_v60 = vsel %vm1631_vm4, %v1633_v54, %v1629_v3  ;;  %vm1643_vm2 = vmor %vm1641_vm10, %vm1642_vm8  ;;  %v2154_v41 = vpop.eup %2153  ;;  %2155 = vpow2.f32 %v1701_v6 }
0x1112   :  { %v1653_v33 = vmul.f32 1.0614054, %v1634_v60  ;;  %v1638_v1 = vsub.f32 1.0, %v1637_v28  ;;  %v1727_v61 = vmul.f32 %v1723_v7, %v1571_v0 }
0x1113   :  { %v1708_v27 = vsub.f32 1.0, %v1704_v56 }
0x1114   :  { %v1657_v26 = vadd.f32 -1.4531521, %v1653_v33  ;;  %v1639_v5 = vmul.f32 %v2152_v23, %v1638_v1  ;;  %v1574_v33 = vmul.f32 0.5, %v2922_v14 }
0x1115   :  { %v1716_v2 = vsub.f32 0.0, %v1708_v27 }
0x1116   :  { %v1661_v25 = vmul.f32 %v1657_v26, %v1634_v60  ;;  %v1640_v20 = vadd.f32 %v2152_v23, %v1639_v5 }
0x1117   :  { %v1720_v13 = vsel %vm1712_vm7, %v1708_v27, %v1716_v2  ;;  %v2156_v54 = vpop.eup %2155 }
0x1118   :  { %v1724_v15 = vadd.f32 1.0, %v1720_v13  ;;  %v1665_v19 = vadd.f32 1.4214138, %v1661_v25  ;;  %v1644_v12 = vsel %vm1643_vm2, %v2152_v23, %v1640_v20 }
0x1119   :  { %v1649_v34 = vsel %vm1646_vm11, %v1648_v21, %v1644_v12 }
0x111a   :  { %v1728_v22 = vmul.f32 %v1724_v15, %v1572_v53  ;;  %v1669_v46 = vmul.f32 %v1665_v19, %v1634_v60  ;;  %v1654_v37 = vmul.f32 1.0614054, %v1649_v34 }
0x111c   :  { %v1731_v4 = vpack.c.bf16 %v1728_v22, %v1727_v61  ;;  %v1673_v62 = vadd.f32 -0.28449672, %v1669_v46  ;;  %v1658_v39 = vadd.f32 -1.4531521, %v1654_v37 }
0x111e   :  { %v1677_v11 = vmul.f32 %v1673_v62, %v1634_v60  ;;  %1970 = vmatmul.msk.bf16.vlgmr.msrb.gmra.mxu1 %vm920_vm9, %v1731_v4  ;;  %v1662_v38 = vmul.f32 %v1658_v39, %v1649_v34 }
0x1120   :  { %v1681_v30 = vadd.f32 0.2548296, %v1677_v11  ;;  %v1666_v17 = vadd.f32 1.4214138, %v1662_v38 }
0x1122   :  { %v1685_v40 = vmul.f32 %v1681_v30, %v1634_v60  ;;  %v1670_v48 = vmul.f32 %v1666_v17, %v1649_v34 }
0x1124   :  { %v1705_v57 = vmul.f32 %v2154_v41, %v1685_v40  ;;  %v1674_v9 = vadd.f32 -0.28449672, %v1670_v48 }
0x1126   :  { %v1709_v55 = vsub.f32 1.0, %v1705_v57  ;;  %v1678_v47 = vmul.f32 %v1674_v9, %v1649_v34 }
0x1128   :  { %v1682_v58 = vadd.f32 0.2548296, %v1678_v47  ;;  %v1717_v43 = vsub.f32 0.0, %v1709_v55 }
0x112a   :  { %v1686_v42 = vmul.f32 %v1682_v58, %v1649_v34  ;;  %v1721_v29 = vsel %vm1713_vm12, %v1709_v55, %v1717_v43 }
0x112b   :  { %v1725_v56 = vadd.f32 1.0, %v1721_v29 }
0x112c   :  { %v1706_v10 = vmul.f32 %v2156_v54, %v1686_v42 }
0x112d   :  { %v1729_v18 = vmul.f32 %v1725_v56, %v1573_v32 }
0x112e   :  { %v1710_v3 = vsub.f32 1.0, %v1706_v10  ;;  %v2025_v10 = vld [vmem:[%s3006_s14] ss:$0 sm:$0xff]  ;;  %s2201_s14 = smov [#allocation2]  }
0x1130   :  { %v1718_v23 = vsub.f32 0.0, %v1710_v3 }
0x1132   :  { %v1722_v60 = vsel %vm1714_vm13, %v1710_v3, %v1718_v23  ;;  %v2026_v23 = vld [vmem:[%s3007_s15] ss:$0 sm:$0xff]  ;;  %s1892_s15 = sshll.u32 %s2201_s14, 4  ;;  %s1893_s15 = int_to_ptr.vmem [resolvable:$true] %s1892_s15 }
0x1133   :  { %v1726_v28 = vadd.f32 1.0, %v1722_v60 }
0x1135   :  { %v1730_v27 = vmul.f32 %v1726_v28, %v1574_v33 }
0x1137   :  { %v1732_v26 = vpack.c.bf16 %v1730_v27, %v1729_v18 }
0x1139   :  { %1971 = vmatmul.msk.bf16.gmra.mxu1 %vm920_vm9, %v1732_v26 }
0x119b   :  { %v1766_v1 = vpop.f32.mrf.mxu1 }
0x119c   :  { %v1767_v2 = vadd.f32 %v2024_v59, %v1766_v1 }
0x119e   :  { %v1776_v31 = vadd.f32 %v1767_v2, %v2799_v49 }
0x11a0   :  { %v1782_v24 = vsel %vm125_vm5, %v1776_v31, 0.0 }
0x11a1   :  { %1783 = vadd.xlane.f32.xlu0 %v1782_v24 }
0x11a3   :  { %v1768_v8 = vpop.f32.mrf.mxu1 }
0x11a4   :  { %v1769_v36 = vadd.f32 %v2024_v59, %v1768_v8 }
0x11a6   :  { %v1777_v14 = vadd.f32 %v1769_v36, %v2804_v52 }
0x11a8   :  { %v1785_v51 = vsel %vm125_vm5, %v1777_v14, 0.0 }
0x11a9   :  { %1786 = vadd.xlane.f32.xlu2 %v1785_v51 }
0x11b6   :  { %v1771_v7 = vpop.f32.mrf.mxu1 }
0x11b7   :  { %v1772_v25 = vadd.f32 %v2024_v59, %v1771_v7 }
0x11b9   :  { %v1778_v5 = vadd.f32 %v1772_v25, %v2809_v45 }
0x11bb   :  { %v1788_v0 = vsel %vm125_vm5, %v1778_v5, 0.0 }
0x11bc   :  { %1789 = vadd.xlane.f32.xlu0 %v1788_v0 }
0x11be   :  { %v1773_v53 = vpop.f32.mrf.mxu1 }
0x11bf   :  { %v1774_v13 = vadd.f32 %v2024_v59, %v1773_v53 }
0x11c1   :  { %v1779_v49 = vadd.f32 %v1774_v13, %v2814_v50 }
0x11c3   :  { %v1791_v15 = vsel %vm125_vm5, %v1779_v49, 0.0 }
0x11c4   :  { %1792 = vadd.xlane.f32.xlu2 %v1791_v15 }
0x1214   :  { %v1784_v19 = vpop.xlane.xlu0 %1783 }
0x1215   :  { %v1794_v52 = vmul.f32 %v1784_v19, %v2332_v35 }
0x1217   :  { %v1798_v20 = vsub.f32 %v1776_v31, %v1794_v52 }
0x1219   :  { %v1802_v16 = vmul.f32 %v1798_v20, %v1798_v20 }
0x121b   :  { %v1806_v21 = vsel %vm125_vm5, %v1802_v16, 0.0 }
0x121c   :  { %1807 = vadd.xlane.f32.xlu0 %v1806_v21  ;;  %v1787_v61 = vpop.xlane.xlu2 %1786 }
0x121d   :  { %v1795_v45 = vmul.f32 %v1787_v61, %v2332_v35 }
0x121f   :  { %v1799_v22 = vsub.f32 %v1777_v14, %v1795_v45 }
0x1221   :  { %v1803_v46 = vmul.f32 %v1799_v22, %v1799_v22 }
0x1223   :  { %v1809_v12 = vsel %vm125_vm5, %v1803_v46, 0.0 }
0x1224   :  { %1810 = vadd.xlane.f32.xlu1 %v1809_v12 }
0x122f   :  { %v1790_v50 = vpop.xlane.xlu0 %1789 }
0x1230   :  { %v1796_v34 = vmul.f32 %v1790_v50, %v2332_v35 }
0x1232   :  { %v2962_v63 = vsub.f32 %v1778_v5, %v1796_v34 }
0x1234   :  { %v1804_v4 = vmul.f32 %v2962_v63, %v2962_v63 }
0x1236   :  { %v1812_v62 = vsel %vm125_vm5, %v1804_v4, 0.0 }
0x1237   :  { %1813 = vadd.xlane.f32.xlu2 %v1812_v62  ;;  %v1793_v37 = vpop.xlane.xlu2 %1792 }
0x1238   :  { %v1797_v11 = vmul.f32 %v1793_v37, %v2332_v35 }
0x123a   :  { %v2968_v39 = vsub.f32 %v1779_v49, %v1797_v11 }
0x123c   :  { %v1805_v44 = vmul.f32 %v2968_v39, %v2968_v39 }
0x123e   :  { %v1815_v30 = vsel %vm125_vm5, %v1805_v44, 0.0 }
0x123f   :  { %1816 = vadd.xlane.f32.xlu0 %v1815_v30 }
0x128f   :  { %v1808_v38 = vpop.xlane.xlu0 %1807 }
0x1290   :  { %v1818_v40 = vmul.f32 %v1808_v38, %v2332_v35 }
0x1292   :  { %v1822_v17 = vadd.f32 1e-05, %v1818_v40 }
0x1294   :  { %2157 = vrsqrt.f32 %v1822_v17  ;;  %vm1832_vm14 = vweird.f32 %v1822_v17 }
0x1297   :  { %v1811_v41 = vpop.xlane.xlu1 %1810 }
0x1298   :  { %v1819_v6 = vmul.f32 %v1811_v41, %v2332_v35 }
0x129a   :  { %v2158_v57 = vpop.eup %2157  ;;  %v1823_v48 = vadd.f32 1e-05, %v1819_v6 }
0x129b   :  { %v1827_v9 = vmul.f32 %v2158_v57, %v1822_v17  ;;  %vm1833_vm9 = vweird.f32 %v2158_v57 }
0x129c   :  { %2159 = vrsqrt.f32 %v1823_v48  ;;  %vm1834_vm15 = vmor %vm1832_vm14, %vm1833_vm9  ;;  %vm1842_vm1 = vweird.f32 %v1823_v48 }
0x129d   :  { %v1828_v55 = vmul.f32 %v2158_v57, %v1827_v9 }
0x129f   :  { %v1829_v47 = vmul.f32 0.5, %v1828_v55 }
0x12a1   :  { %v1830_v58 = vsub.f32 1.5, %v1829_v47 }
0x12a2   :  { %v2160_v43 = vpop.eup %2159 }
0x12a3   :  { %v1831_v42 = vmul.f32 %v2158_v57, %v1830_v58  ;;  %v1837_v54 = vmul.f32 %v2160_v43, %v1823_v48  ;;  %vm1843_vm0 = vweird.f32 %v2160_v43 }
0x12a4   :  { %vm1844_vm3 = vmor %vm1842_vm1, %vm1843_vm0 }
0x12a5   :  { %v1835_v29 = vsel %vm1834_vm15, %v2158_v57, %v1831_v42  ;;  %v1838_v3 = vmul.f32 %v2160_v43, %v1837_v54 }
0x12a6   :  { %v1866_v56 = vmul.f32 %v1835_v29, %v1798_v20 }
0x12a7   :  { %v1839_v60 = vmul.f32 0.5, %v1838_v3 }
0x12a8   :  { %v1873_v32 = vmul.f32 %v2025_v10, %v1866_v56 }
0x12a9   :  { %v1840_v33 = vsub.f32 1.5, %v1839_v60 }
0x12aa   :  { %v1880_v28 = vadd.f32 %v2026_v23, %v1873_v32  ;;  %v1814_v27 = vpop.xlane.xlu2 %1813 }
0x12ab   :  { %v1841_v18 = vmul.f32 %v2160_v43, %v1840_v33  ;;  %v1820_v59 = vmul.f32 %v1814_v27, %v2332_v35 }
0x12ac   :  { %1884 = vst.msk [vmem:[#allocation2] sm:$0xff] %vm125_vm5, %v1880_v28 }
0x12ad   :  { %v1845_v26 = vsel %vm1844_vm3, %v2160_v43, %v1841_v18  ;;  %v1824_v2 = vadd.f32 1e-05, %v1820_v59 }
0x12ae   :  { %v1867_v1 = vmul.f32 %v1845_v26, %v1799_v22 }
0x12af   :  { %2161 = vrsqrt.f32 %v1824_v2  ;;  %vm1852_vm6 = vweird.f32 %v1824_v2 }
0x12b0   :  { %v1874_v31 = vmul.f32 %v2025_v10, %v1867_v1 }
0x12b2   :  { %v1881_v24 = vadd.f32 %v2026_v23, %v1874_v31  ;;  %v1817_v8 = vpop.xlane.xlu0 %1816 }
0x12b3   :  { %v1821_v36 = vmul.f32 %v1817_v8, %v2332_v35 }
0x12b4   :  { %1885 = vst.msk [vmem:[#allocation2 + $0x8] sm:$0xff] %vm125_vm5, %v1881_v24 }
0x12b5   :  { %v2162_v14 = vpop.eup %2161  ;;  %v1825_v51 = vadd.f32 1e-05, %v1821_v36 }
0x12b6   :  { %v1847_v7 = vmul.f32 %v2162_v14, %v1824_v2  ;;  %vm1853_vm4 = vweird.f32 %v2162_v14 }
0x12b7   :  { %2163 = vrsqrt.f32 %v1825_v51  ;;  %vm1854_vm7 = vmor %vm1852_vm6, %vm1853_vm4  ;;  %vm1862_vm10 = vweird.f32 %v1825_v51 }
0x12b8   :  { %v1848_v25 = vmul.f32 %v2162_v14, %v1847_v7 }
0x12ba   :  { %v1849_v5 = vmul.f32 0.5, %v1848_v25 }
0x12bc   :  { %v1850_v0 = vsub.f32 1.5, %v1849_v5 }
0x12bd   :  { %v2164_v53 = vpop.eup %2163 }
0x12be   :  { %v1851_v13 = vmul.f32 %v2162_v14, %v1850_v0  ;;  %v1857_v49 = vmul.f32 %v2164_v53, %v1825_v51  ;;  %vm1863_vm8 = vweird.f32 %v2164_v53 }
0x12bf   :  { %vm1864_vm2 = vmor %vm1862_vm10, %vm1863_vm8 }
0x12c0   :  { %v1855_v15 = vsel %vm1854_vm7, %v2162_v14, %v1851_v13  ;;  %v1858_v19 = vmul.f32 %v2164_v53, %v1857_v49 }
0x12c1   :  { %v1868_v52 = vmul.f32 %v1855_v15, %v2962_v63 }
0x12c2   :  { %v1859_v20 = vmul.f32 0.5, %v1858_v19 }
0x12c3   :  { %v1875_v16 = vmul.f32 %v2025_v10, %v1868_v52 }
0x12c4   :  { %v1860_v35 = vsub.f32 1.5, %v1859_v20 }
0x12c5   :  { %v1882_v21 = vadd.f32 %v2026_v23, %v1875_v16 }
0x12c6   :  { %v1861_v61 = vmul.f32 %v2164_v53, %v1860_v35 }
0x12c7   :  { %1886 = vst.msk [vmem:[#allocation2 + $0x10] sm:$0xff] %vm125_vm5, %v1882_v21 }
0x12c8   :  { %v1865_v45 = vsel %vm1864_vm2, %v2164_v53, %v1861_v61 }
0x12c9   :  { %v1869_v22 = vmul.f32 %v1865_v45, %v2968_v39 }
0x12cb   :  { %v1876_v46 = vmul.f32 %v2025_v10, %v1869_v22 }
0x12cd   :  { %v1883_v12 = vadd.f32 %v2026_v23, %v1876_v46 }
0x12cf   :  { %1887 = vst.msk [vmem:[#allocation2 + $0x18] sm:$0xff] %vm125_vm5, %v1883_v12 }
0x12d0   :  { %1900 = dma.vmem_to_hbm [thread:$0]  %s1893_s15, 512, %s1895_s23, [#allocation3], %s2202_s2, %s2202_s2, %s2203_s8  }
0x12d1   :  { %2189 = dma.done.wait [#allocation3], 512  }
0x12d2   :  { %2190 = vsyncadd [#allocation3], 4294966784 }
0x12d3   :  { %1905 = vsyncpa [#allocation3], 1 }

</bundles_post_ra>
